<compile_context>
chip_gen: v7x
topology: tpu7x:2x2x1
jax: 0.10.0
libtpu: 0.0.40
codegen_flags: <defaults>
</compile_context>

<pallas_src>
import jax
import jax.numpy as jnp
from jax.experimental import pallas as pl
from jax.experimental.pallas import tpu as pltpu

IMAGE_SIZE = 28 * 28   # 784
LABEL_DIM = 10
LATENT_DIM = 20
HIDDEN = 400

# Lane-dense padded dims (multiples of 128 -> unmasked MXU passes & stores).
IMG_PAD = 896          # 784 -> 7*128
HID_PAD = 512          # 400 -> 4*128
LAT_PAD = 64           # mu / logvar each padded to 64 -> fused head width 128


def _round_up(x, m):
    return (x + m - 1) // m * m


def _pad2(a, rows, cols):
    return jnp.pad(a, ((0, rows - a.shape[0]), (0, cols - a.shape[1])))


def cvae_kernel(x_ref, y_ref, eps_ref,
                w1x_ref, w1y_ref, b1_ref,
                wmulv_ref, bmulv_ref,
                w3z_ref, w3y_ref, b3_ref,
                w4_ref, b4_ref,
                recon_ref, mulv_ref):
    x = x_ref[...]      # (TB, IMG_PAD)   bf16, zero in padded cols
    y = y_ref[...]      # (TB, LABEL_DIM) bf16 one-hot
    eps = eps_ref[...]  # (TB, LAT_PAD)   f32,  zero in padded cols

    # encode: h = relu(fc1(cat([x, y], 1)))  -- concat as split matmuls
    h = (jnp.dot(x, w1x_ref[...], preferred_element_type=jnp.float32)
         + jnp.dot(y, w1y_ref[...], preferred_element_type=jnp.float32)
         + b1_ref[...])
    h = jnp.maximum(h, 0.0).astype(jnp.bfloat16)

    # fused mu/logvar head: one (HID_PAD, 2*LAT_PAD) matmul, split afterwards
    mulv = (jnp.dot(h, wmulv_ref[...], preferred_element_type=jnp.float32)
            + bmulv_ref[...])
    mu = mulv[:, :LAT_PAD]
    logvar = mulv[:, LAT_PAD:]

    # reparameterize: padded cols stay 0 (logvar==0 -> std==1, eps==0)
    z = (mu + eps * jnp.exp(0.5 * logvar)).astype(jnp.bfloat16)

    # decode: h3 = relu(fc3(cat([z, y], 1)))
    h3 = (jnp.dot(z, w3z_ref[...], preferred_element_type=jnp.float32)
          + jnp.dot(y, w3y_ref[...], preferred_element_type=jnp.float32)
          + b3_ref[...])
    h3 = jnp.maximum(h3, 0.0).astype(jnp.bfloat16)

    logits = jnp.dot(h3, w4_ref[...], preferred_element_type=jnp.float32) + b4_ref[...]

    recon_ref[...] = jax.nn.sigmoid(logits)
    mulv_ref[...] = mulv


def cvae_forward(x, y, eps, kparams, *, batch_tile=128):
    """x:(B,784) f32, y:(B,10) one-hot f32, eps:(B,20) f32, kparams: pack_params()."""
    B = x.shape[0]
    TB = max(8, min(batch_tile, _round_up(B, 8)))
    Bp = _round_up(B, TB)

    x_p = _pad2(x.astype(jnp.float32), Bp, IMG_PAD).astype(jnp.bfloat16)
    y_p = _pad2(y.astype(jnp.float32), Bp, LABEL_DIM).astype(jnp.bfloat16)
    eps_p = _pad2(eps.astype(jnp.float32), Bp, LAT_PAD)

    def data_spec(cols):
        return pl.BlockSpec((TB, cols), lambda i: (i, 0))

    def weight_spec(w):
        # Constant index map -> weight tile stays VMEM-resident across the grid.
        return pl.BlockSpec(w.shape, lambda i: (0, 0))

    in_specs = [data_spec(IMG_PAD), data_spec(LABEL_DIM), data_spec(LAT_PAD)]
    in_specs += [weight_spec(w) for w in kparams]
    out_specs = (pl.BlockSpec((TB, IMG_PAD), lambda i: (i, 0)),
                 pl.BlockSpec((TB, 2 * LAT_PAD), lambda i: (i, 0)))

    weight_bytes = int(sum(int(w.size) * w.dtype.itemsize for w in kparams))
    act_bytes = int(x_p.size * 2 + y_p.size * 2 + eps_p.size * 4
                    + Bp * IMG_PAD * 4 + Bp * 2 * LAT_PAD * 4)
    flops = 2 * Bp * (IMG_PAD * HID_PAD + LABEL_DIM * HID_PAD
                      + HID_PAD * 2 * LAT_PAD + LAT_PAD * HID_PAD
                      + LABEL_DIM * HID_PAD + HID_PAD * IMG_PAD)
    cost = pl.CostEstimate(flops=int(flops),
                           transcendentals=int(Bp * (LAT_PAD + IMG_PAD)),
                           bytes_accessed=weight_bytes + act_bytes)

    recon_p, mulv_p = pl.pallas_call(
        cvae_kernel,
        grid=(Bp // TB,),
        in_specs=in_specs,
        out_specs=out_specs,
        out_shape=(jax.ShapeDtypeStruct((Bp, IMG_PAD), jnp.float32),
                   jax.ShapeDtypeStruct((Bp, 2 * LAT_PAD), jnp.float32)),
        compiler_params=pltpu.CompilerParams(
            dimension_semantics=("parallel",),
            vmem_limit_bytes=32 * 1024 * 1024,   # working set ~8 MiB; <= v7x 64 MiB
        ),
        cost_estimate=cost,
    )(x_p, y_p, eps_p, *kparams)

    recon = recon_p[:B, :IMAGE_SIZE]
    mu = mulv_p[:B, :LATENT_DIM]
    logvar = mulv_p[:B, LAT_PAD:LAT_PAD + LATENT_DIM]
    return recon, mu, logvar


def init_linear(key, fan_in, fan_out):
    # Mimic torch.nn.Linear default init: U(-1/sqrt(fan_in), 1/sqrt(fan_in)).
    kw, kb = jax.random.split(key)
    bound = 1.0 / jnp.sqrt(float(fan_in))
    w = jax.random.uniform(kw, (fan_in, fan_out), jnp.float32, -bound, bound)
    b = jax.random.uniform(kb, (1, fan_out), jnp.float32, -bound, bound)
    return w, b


def make_params(key):
    """Raw f32 params (transposed vs. PyTorch), concat-facing weights split."""
    k1, k2, k3, k4, k5 = jax.random.split(key, 5)
    w1, b1 = init_linear(k1, IMAGE_SIZE + LABEL_DIM, HIDDEN)
    wmu, bmu = init_linear(k2, HIDDEN, LATENT_DIM)
    wlv, blv = init_linear(k3, HIDDEN, LATENT_DIM)
    w3, b3 = init_linear(k4, LATENT_DIM + LABEL_DIM, HIDDEN)
    w4, b4 = init_linear(k5, HIDDEN, IMAGE_SIZE)
    return dict(
        w1x=w1[:IMAGE_SIZE], w1y=w1[IMAGE_SIZE:], b1=b1,
        wmu=wmu, bmu=bmu, wlv=wlv, blv=blv,
        w3z=w3[:LATENT_DIM], w3y=w3[LATENT_DIM:], b3=b3,
        w4=w4, b4=b4)


def pack_params(p):
    """Zero-pad to lane-dense shapes, fuse mu/logvar head, cast weights to bf16."""
    w1x = _pad2(p["w1x"], IMG_PAD, HID_PAD).astype(jnp.bfloat16)
    w1y = _pad2(p["w1y"], LABEL_DIM, HID_PAD).astype(jnp.bfloat16)
    b1 = _pad2(p["b1"], 1, HID_PAD)

    wmulv = jnp.zeros((HID_PAD, 2 * LAT_PAD), jnp.float32)
    wmulv = wmulv.at[:HIDDEN, :LATENT_DIM].set(p["wmu"])
    wmulv = wmulv.at[:HIDDEN, LAT_PAD:LAT_PAD + LATENT_DIM].set(p["wlv"])
    wmulv = wmulv.astype(jnp.bfloat16)
    bmulv = jnp.zeros((1, 2 * LAT_PAD), jnp.float32)
    bmulv = bmulv.at[:, :LATENT_DIM].set(p["bmu"])
    bmulv = bmulv.at[:, LAT_PAD:LAT_PAD + LATENT_DIM].set(p["blv"])

    w3z = _pad2(p["w3z"], LAT_PAD, HID_PAD).astype(jnp.bfloat16)
    w3y = _pad2(p["w3y"], LABEL_DIM, HID_PAD).astype(jnp.bfloat16)
    b3 = _pad2(p["b3"], 1, HID_PAD)
    w4 = _pad2(p["w4"], HID_PAD, IMG_PAD).astype(jnp.bfloat16)
    b4 = _pad2(p["b4"], 1, IMG_PAD)
    return (w1x, w1y, b1, wmulv, bmulv, w3z, w3y, b3, w4, b4)


def reference_forward(x, y, eps, p):
    """Pure-JAX f32 reference of the exact PyTorch math (unpadded params)."""
    h = jax.nn.relu(x @ p["w1x"] + y @ p["w1y"] + p["b1"])
    mu = h @ p["wmu"] + p["bmu"]
    logvar = h @ p["wlv"] + p["blv"]
    z = mu + eps * jnp.exp(0.5 * logvar)
    h3 = jax.nn.relu(z @ p["w3z"] + y @ p["w3y"] + p["b3"])
    recon = jax.nn.sigmoid(h3 @ p["w4"] + p["b4"])
    return recon, mu, logvar


if __name__ == "__main__":
    key = jax.random.PRNGKey(0)
    kp, kx, ky, keps = jax.random.split(key, 4)

    B = 16
    params = make_params(kp)
    kparams = pack_params(params)

    x = jax.random.uniform(kx, (B, IMAGE_SIZE), jnp.float32)        # flattened 28x28 images
    labels = jax.random.randint(ky, (B,), 0, LABEL_DIM)
    y = jax.nn.one_hot(labels, LABEL_DIM, dtype=jnp.float32)        # conditioning labels
    # TODO(synk): torch.randn_like inside reparameterize() is passed in as an
    # explicit eps input instead of drawing randoms inside the kernel.
    eps = jax.random.normal(keps, (B, LATENT_DIM), jnp.float32)

    recon, mu, logvar = jax.block_until_ready(
        cvae_forward(x, y, eps, kparams, batch_tile=8))   # 2 batch tiles -> exercises the grid

    r_ref, mu_ref, lv_ref = reference_forward(x, y, eps, params)
    assert recon.shape == (B, IMAGE_SIZE)
    assert mu.shape == (B, LATENT_DIM) and logvar.shape == (B, LATENT_DIM)
    # bf16 weights/activations in the kernel vs f32 reference -> loose tolerance.
    assert jnp.allclose(recon, r_ref, atol=3e-2), float(jnp.max(jnp.abs(recon - r_ref)))
    assert jnp.allclose(mu, mu_ref, atol=3e-2), float(jnp.max(jnp.abs(mu - mu_ref)))
    assert jnp.allclose(logvar, lv_ref, atol=3e-2), float(jnp.max(jnp.abs(logvar - lv_ref)))

    print("KERNEL_OK")
</pallas_src>

<mosaic_0001>
module attributes {stable_mosaic.version = 11 : i64} {
  func.func @cvae_kernel(%arg0: i32, %arg1: memref<8x896xbf16, #tpu.memory_space<vmem>>, %arg2: memref<8x10xbf16, #tpu.memory_space<vmem>>, %arg3: memref<8x64xf32, #tpu.memory_space<vmem>>, %arg4: memref<896x512xbf16, #tpu.memory_space<vmem>>, %arg5: memref<10x512xbf16, #tpu.memory_space<vmem>>, %arg6: memref<1x512xf32, #tpu.memory_space<vmem>>, %arg7: memref<512x128xbf16, #tpu.memory_space<vmem>>, %arg8: memref<1x128xf32, #tpu.memory_space<vmem>>, %arg9: memref<64x512xbf16, #tpu.memory_space<vmem>>, %arg10: memref<10x512xbf16, #tpu.memory_space<vmem>>, %arg11: memref<1x512xf32, #tpu.memory_space<vmem>>, %arg12: memref<512x896xbf16, #tpu.memory_space<vmem>>, %arg13: memref<1x896xf32, #tpu.memory_space<vmem>>, %arg14: memref<8x896xf32, #tpu.memory_space<vmem>>, %arg15: memref<8x128xf32, #tpu.memory_space<vmem>>) attributes {dimension_semantics = [#tpu.dimension_semantics<parallel>], iteration_bounds = array<i64: 2>, scalar_prefetch = 0 : i64, scratch_operands = 0 : i64, tpu.core_type = #tpu.core_type<tc>, window_params = [{transform_indices = @transform_0, window_bounds = array<i64: 8, 896>}, {transform_indices = @transform_1, window_bounds = array<i64: 8, 10>}, {transform_indices = @transform_2, window_bounds = array<i64: 8, 64>}, {pipeline_mode = #tpu.pipeline_mode<synchronous>, transform_indices = @transform_3, window_bounds = array<i64: 896, 512>}, {pipeline_mode = #tpu.pipeline_mode<synchronous>, transform_indices = @transform_4, window_bounds = array<i64: 10, 512>}, {pipeline_mode = #tpu.pipeline_mode<synchronous>, transform_indices = @transform_5, window_bounds = array<i64: 1, 512>}, {pipeline_mode = #tpu.pipeline_mode<synchronous>, transform_indices = @transform_6, window_bounds = array<i64: 512, 128>}, {pipeline_mode = #tpu.pipeline_mode<synchronous>, transform_indices = @transform_7, window_bounds = array<i64: 1, 128>}, {pipeline_mode = #tpu.pipeline_mode<synchronous>, transform_indices = @transform_8, window_bounds = array<i64: 64, 512>}, {pipeline_mode = #tpu.pipeline_mode<synchronous>, transform_indices = @transform_9, window_bounds = array<i64: 10, 512>}, {pipeline_mode = #tpu.pipeline_mode<synchronous>, transform_indices = @transform_10, window_bounds = array<i64: 1, 512>}, {pipeline_mode = #tpu.pipeline_mode<synchronous>, transform_indices = @transform_11, window_bounds = array<i64: 512, 896>}, {pipeline_mode = #tpu.pipeline_mode<synchronous>, transform_indices = @transform_12, window_bounds = array<i64: 1, 896>}, {transform_indices = @transform_13, window_bounds = array<i64: 8, 896>}, {transform_indices = @transform_14, window_bounds = array<i64: 8, 128>}]} {
    %c0 = arith.constant 0 : index
    %c0_0 = arith.constant 0 : index
    %0 = vector.load %arg1[%c0, %c0_0] : memref<8x896xbf16, #tpu.memory_space<vmem>>, vector<8x896xbf16>
    %c0_1 = arith.constant 0 : index
    %c0_2 = arith.constant 0 : index
    %1 = vector.load %arg2[%c0_1, %c0_2] : memref<8x10xbf16, #tpu.memory_space<vmem>>, vector<8x10xbf16>
    %c0_3 = arith.constant 0 : index
    %c0_4 = arith.constant 0 : index
    %2 = vector.load %arg3[%c0_3, %c0_4] : memref<8x64xf32, #tpu.memory_space<vmem>>, vector<8x64xf32>
    %c0_5 = arith.constant 0 : index
    %c0_6 = arith.constant 0 : index
    %3 = vector.load %arg4[%c0_5, %c0_6] : memref<896x512xbf16, #tpu.memory_space<vmem>>, vector<896x512xbf16>
    %cst = arith.constant dense<0.000000e+00> : vector<8x512xf32>
    %4 = tpu.matmul %0, %3, %cst {dimension_numbers = #tpu.dot_dimension_numbers<[1], [0], [0], [1], [0, 0, 1, 1], [], []>} : vector<8x896xbf16>, vector<896x512xbf16>, vector<8x512xf32> -> vector<8x512xf32>
    %c0_7 = arith.constant 0 : index
    %c0_8 = arith.constant 0 : index
    %5 = vector.load %arg5[%c0_7, %c0_8] : memref<10x512xbf16, #tpu.memory_space<vmem>>, vector<10x512xbf16>
    %cst_9 = arith.constant dense<0.000000e+00> : vector<8x512xf32>
    %6 = tpu.matmul %1, %5, %cst_9 {dimension_numbers = #tpu.dot_dimension_numbers<[1], [0], [0], [1], [0, 0, 1, 1], [], []>} : vector<8x10xbf16>, vector<10x512xbf16>, vector<8x512xf32> -> vector<8x512xf32>
    %7 = arith.addf %4, %6 : vector<8x512xf32>
    %c0_10 = arith.constant 0 : index
    %c0_11 = arith.constant 0 : index
    %8 = vector.load %arg6[%c0_10, %c0_11] : memref<1x512xf32, #tpu.memory_space<vmem>>, vector<1x512xf32>
    %9 = vector.broadcast %8 : vector<1x512xf32> to vector<8x512xf32>
    %10 = arith.addf %7, %9 : vector<8x512xf32>
    %cst_12 = arith.constant 0.000000e+00 : f32
    %11 = vector.broadcast %cst_12 : f32 to vector<8x512xf32>
    %12 = arith.maximumf %10, %11 : vector<8x512xf32>
    %13 = arith.truncf %12 : vector<8x512xf32> to vector<8x512xbf16>
    %c0_13 = arith.constant 0 : index
    %c0_14 = arith.constant 0 : index
    %14 = vector.load %arg7[%c0_13, %c0_14] : memref<512x128xbf16, #tpu.memory_space<vmem>>, vector<512x128xbf16>
    %cst_15 = arith.constant dense<0.000000e+00> : vector<8x128xf32>
    %15 = tpu.matmul %13, %14, %cst_15 {dimension_numbers = #tpu.dot_dimension_numbers<[1], [0], [0], [1], [0, 0, 1, 1], [], []>} : vector<8x512xbf16>, vector<512x128xbf16>, vector<8x128xf32> -> vector<8x128xf32>
    %c0_16 = arith.constant 0 : index
    %c0_17 = arith.constant 0 : index
    %16 = vector.load %arg8[%c0_16, %c0_17] : memref<1x128xf32, #tpu.memory_space<vmem>>, vector<1x128xf32>
    %17 = vector.broadcast %16 : vector<1x128xf32> to vector<8x128xf32>
    %18 = arith.addf %15, %17 : vector<8x128xf32>
    %19 = vector.extract_strided_slice %18 {offsets = [0, 0], sizes = [8, 64], strides = [1, 1]} : vector<8x128xf32> to vector<8x64xf32>
    %20 = vector.extract_strided_slice %18 {offsets = [0, 64], sizes = [8, 64], strides = [1, 1]} : vector<8x128xf32> to vector<8x64xf32>
    %cst_18 = arith.constant 5.000000e-01 : f32
    %21 = vector.broadcast %cst_18 : f32 to vector<8x64xf32>
    %22 = arith.mulf %21, %20 : vector<8x64xf32>
    %23 = math.exp %22 : vector<8x64xf32>
    %24 = arith.mulf %2, %23 : vector<8x64xf32>
    %25 = arith.addf %19, %24 : vector<8x64xf32>
    %26 = arith.truncf %25 : vector<8x64xf32> to vector<8x64xbf16>
    %c0_19 = arith.constant 0 : index
    %c0_20 = arith.constant 0 : index
    %27 = vector.load %arg9[%c0_19, %c0_20] : memref<64x512xbf16, #tpu.memory_space<vmem>>, vector<64x512xbf16>
    %cst_21 = arith.constant dense<0.000000e+00> : vector<8x512xf32>
    %28 = tpu.matmul %26, %27, %cst_21 {dimension_numbers = #tpu.dot_dimension_numbers<[1], [0], [0], [1], [0, 0, 1, 1], [], []>} : vector<8x64xbf16>, vector<64x512xbf16>, vector<8x512xf32> -> vector<8x512xf32>
    %c0_22 = arith.constant 0 : index
    %c0_23 = arith.constant 0 : index
    %29 = vector.load %arg10[%c0_22, %c0_23] : memref<10x512xbf16, #tpu.memory_space<vmem>>, vector<10x512xbf16>
    %cst_24 = arith.constant dense<0.000000e+00> : vector<8x512xf32>
    %30 = tpu.matmul %1, %29, %cst_24 {dimension_numbers = #tpu.dot_dimension_numbers<[1], [0], [0], [1], [0, 0, 1, 1], [], []>} : vector<8x10xbf16>, vector<10x512xbf16>, vector<8x512xf32> -> vector<8x512xf32>
    %31 = arith.addf %28, %30 : vector<8x512xf32>
    %c0_25 = arith.constant 0 : index
    %c0_26 = arith.constant 0 : index
    %32 = vector.load %arg11[%c0_25, %c0_26] : memref<1x512xf32, #tpu.memory_space<vmem>>, vector<1x512xf32>
    %33 = vector.broadcast %32 : vector<1x512xf32> to vector<8x512xf32>
    %34 = arith.addf %31, %33 : vector<8x512xf32>
    %cst_27 = arith.constant 0.000000e+00 : f32
    %35 = vector.broadcast %cst_27 : f32 to vector<8x512xf32>
    %36 = arith.maximumf %34, %35 : vector<8x512xf32>
    %37 = arith.truncf %36 : vector<8x512xf32> to vector<8x512xbf16>
    %c0_28 = arith.constant 0 : index
    %c0_29 = arith.constant 0 : index
    %38 = vector.load %arg12[%c0_28, %c0_29] : memref<512x896xbf16, #tpu.memory_space<vmem>>, vector<512x896xbf16>
    %cst_30 = arith.constant dense<0.000000e+00> : vector<8x896xf32>
    %39 = tpu.matmul %37, %38, %cst_30 {dimension_numbers = #tpu.dot_dimension_numbers<[1], [0], [0], [1], [0, 0, 1, 1], [], []>} : vector<8x512xbf16>, vector<512x896xbf16>, vector<8x896xf32> -> vector<8x896xf32>
    %c0_31 = arith.constant 0 : index
    %c0_32 = arith.constant 0 : index
    %40 = vector.load %arg13[%c0_31, %c0_32] : memref<1x896xf32, #tpu.memory_space<vmem>>, vector<1x896xf32>
    %41 = vector.broadcast %40 : vector<1x896xf32> to vector<8x896xf32>
    %42 = arith.addf %39, %41 : vector<8x896xf32>
    %43 = arith.negf %42 : vector<8x896xf32>
    %44 = math.exp %43 : vector<8x896xf32>
    %cst_33 = arith.constant 1.000000e+00 : f32
    %45 = vector.broadcast %cst_33 : f32 to vector<8x896xf32>
    %46 = arith.addf %45, %44 : vector<8x896xf32>
    %47 = arith.divf %45, %46 : vector<8x896xf32>
    %c0_34 = arith.constant 0 : index
    %c0_35 = arith.constant 0 : index
    %48 = vector.load %arg14[%c0_34, %c0_35] : memref<8x896xf32, #tpu.memory_space<vmem>>, vector<8x896xf32>
    tpu.vector_store %arg14[%c0_34, %c0_35], %47 {strides = array<i32>} : memref<8x896xf32, #tpu.memory_space<vmem>>, vector<8x896xf32>,
    %c0_36 = arith.constant 0 : index
    %c0_37 = arith.constant 0 : index
    %49 = vector.load %arg15[%c0_36, %c0_37] : memref<8x128xf32, #tpu.memory_space<vmem>>, vector<8x128xf32>
    tpu.vector_store %arg15[%c0_36, %c0_37], %18 {strides = array<i32>} : memref<8x128xf32, #tpu.memory_space<vmem>>, vector<8x128xf32>,
    return
  }
  func.func @transform_0(%arg0: i32) -> (i32, i32) {
    %c0_i32 = arith.constant 0 : i32
    %c0_i32_0 = arith.constant 0 : i32
    return %arg0, %c0_i32 : i32, i32
  }
  func.func @transform_1(%arg0: i32) -> (i32, i32) {
    %c0_i32 = arith.constant 0 : i32
    %c0_i32_0 = arith.constant 0 : i32
    return %arg0, %c0_i32 : i32, i32
  }
  func.func @transform_2(%arg0: i32) -> (i32, i32) {
    %c0_i32 = arith.constant 0 : i32
    %c0_i32_0 = arith.constant 0 : i32
    return %arg0, %c0_i32 : i32, i32
  }
  func.func @transform_3(%arg0: i32) -> (i32, i32) {
    %c0_i32 = arith.constant 0 : i32
    %c0_i32_0 = arith.constant 0 : i32
    %c0_i32_1 = arith.constant 0 : i32
    return %c0_i32, %c0_i32_0 : i32, i32
  }
  func.func @transform_4(%arg0: i32) -> (i32, i32) {
    %c0_i32 = arith.constant 0 : i32
    %c0_i32_0 = arith.constant 0 : i32
    %c0_i32_1 = arith.constant 0 : i32
    return %c0_i32, %c0_i32_0 : i32, i32
  }
  func.func @transform_5(%arg0: i32) -> (i32, i32) {
    %c0_i32 = arith.constant 0 : i32
    %c0_i32_0 = arith.constant 0 : i32
    %c0_i32_1 = arith.constant 0 : i32
    return %c0_i32, %c0_i32_0 : i32, i32
  }
  func.func @transform_6(%arg0: i32) -> (i32, i32) {
    %c0_i32 = arith.constant 0 : i32
    %c0_i32_0 = arith.constant 0 : i32
    %c0_i32_1 = arith.constant 0 : i32
    return %c0_i32, %c0_i32_0 : i32, i32
  }
  func.func @transform_7(%arg0: i32) -> (i32, i32) {
    %c0_i32 = arith.constant 0 : i32
    %c0_i32_0 = arith.constant 0 : i32
    %c0_i32_1 = arith.constant 0 : i32
    return %c0_i32, %c0_i32_0 : i32, i32
  }
  func.func @transform_8(%arg0: i32) -> (i32, i32) {
    %c0_i32 = arith.constant 0 : i32
    %c0_i32_0 = arith.constant 0 : i32
    %c0_i32_1 = arith.constant 0 : i32
    return %c0_i32, %c0_i32_0 : i32, i32
  }
  func.func @transform_9(%arg0: i32) -> (i32, i32) {
    %c0_i32 = arith.constant 0 : i32
    %c0_i32_0 = arith.constant 0 : i32
    %c0_i32_1 = arith.constant 0 : i32
    return %c0_i32, %c0_i32_0 : i32, i32
  }
  func.func @transform_10(%arg0: i32) -> (i32, i32) {
    %c0_i32 = arith.constant 0 : i32
    %c0_i32_0 = arith.constant 0 : i32
    %c0_i32_1 = arith.constant 0 : i32
    return %c0_i32, %c0_i32_0 : i32, i32
  }
  func.func @transform_11(%arg0: i32) -> (i32, i32) {
    %c0_i32 = arith.constant 0 : i32
    %c0_i32_0 = arith.constant 0 : i32
    %c0_i32_1 = arith.constant 0 : i32
    return %c0_i32, %c0_i32_0 : i32, i32
  }
  func.func @transform_12(%arg0: i32) -> (i32, i32) {
    %c0_i32 = arith.constant 0 : i32
    %c0_i32_0 = arith.constant 0 : i32
    %c0_i32_1 = arith.constant 0 : i32
    return %c0_i32, %c0_i32_0 : i32, i32
  }
  func.func @transform_13(%arg0: i32) -> (i32, i32) {
    %c0_i32 = arith.constant 0 : i32
    %c0_i32_0 = arith.constant 0 : i32
    return %arg0, %c0_i32 : i32, i32
  }
  func.func @transform_14(%arg0: i32) -> (i32, i32) {
    %c0_i32 = arith.constant 0 : i32
    %c0_i32_0 = arith.constant 0 : i32
    return %arg0, %c0_i32 : i32, i32
  }
}

</mosaic_0001>

<bundles_post_ra>
// kernel: tpu_custom_call.1
= control target key start
LH: loop header
LB: loop body
LE: loop exit
PB: predicated region body
PF: predicated region fallthrough
CT: control target
= control target key end

     0   :  { %s7981_s0 = inlined_call_operand.hbm [shape: bf16[16,896], index: 0, kind: input, shape index: {}]   ;;  %s7982_s1 = inlined_call_operand.hbm [shape: bf16[16,10], index: 1, kind: input, shape index: {}]   ;;  %s7983_s2 = inlined_call_operand.hbm [shape: f32[16,64], index: 2, kind: input, shape index: {}]   ;;  %s7984_s3 = inlined_call_operand.hbm [shape: bf16[896,512], index: 3, kind: input, shape index: {}]   ;;  %s7985_s4 = inlined_call_operand.hbm [shape: bf16[10,512], index: 4, kind: input, shape index: {}]   ;;  %s7986_s5 = inlined_call_operand.hbm [shape: f32[1,512], index: 5, kind: input, shape index: {}]   ;;  %s7987_s6 = inlined_call_operand.hbm [shape: bf16[512,128], index: 6, kind: input, shape index: {}]   ;;  %s7988_s7 = inlined_call_operand.vmem [shape: f32[1,128], index: 7, kind: input, shape index: {}]   ;;  %s7989_s8 = inlined_call_operand.hbm [shape: bf16[64,512], index: 8, kind: input, shape index: {}]   ;;  %s7990_s9 = inlined_call_operand.vmem [shape: bf16[10,512], index: 9, kind: input, shape index: {}]   ;;  %s7991_s10 = inlined_call_operand.hbm [shape: f32[1,512], index: 10, kind: input, shape index: {}]   ;;  %s7992_s11 = inlined_call_operand.hbm [shape: bf16[512,896], index: 11, kind: input, shape index: {}]   ;;  %s7993_s12 = inlined_call_operand.vmem [shape: f32[1,896], index: 12, kind: input, shape index: {}]   ;;  %s7994_s13 = inlined_call_operand.hbm [shape: f32[16,896], index: 13, kind: output, shape index: {0}]   ;;  %s7995_s14 = inlined_call_operand.hbm [shape: f32[16,128], index: 14, kind: output, shape index: {1}]  }
   0x1   :  { %8021 = sst [smem:[#allocation37_spill]] %s7982_s1 }
   0x2   :  { %8022 = sst [smem:[#allocation38_spill]] %s7984_s3 }
   0x3   :  { %8023 = sst [smem:[#allocation39_spill]] %s7985_s4 }
   0x4   :  { %8024 = sst [smem:[#allocation40_spill]] %s7986_s5 }
   0x5   :  { %8025 = sst [smem:[#allocation41_spill]] %s7988_s7 }
   0x6   :  { %8026 = sst [smem:[#allocation42_spill]] %s7989_s8 }
   0x7   :  { %8027 = sst [smem:[#allocation43_spill]] %s7990_s9 }
   0x8   :  { %8028 = sst [smem:[#allocation44_spill]] %s7993_s12 }
   0x9   :  { %8029 = sst [smem:[#allocation45_spill]] %s7994_s13 }
   0xa   :  { %8030 = sst [smem:[#allocation46_spill]] %s7995_s14 }
   0xb   :  { %20 = vsyncpa [#allocation3], 0 }
   0xc   :  { %22 = vsyncpa [#allocation3 + $0x1], 0 }
   0xd   :  { %23 = vsyncpa [#allocation6], 0 }
   0xe   :  { %25 = vsyncpa [#allocation6 + $0x1], 0 }
   0xf   :  { %26 = vsyncpa [#allocation9], 0 }
  0x10   :  { %27 = vsyncpa [#allocation12], 0 }
  0x11   :  { %28 = vsyncpa [#allocation15], 0 }
  0x12   :  { %29 = vsyncpa [#allocation18], 0 }
  0x13   :  { %30 = vsyncpa [#allocation4], 0 }
  0x14   :  { %32 = vsyncpa [#allocation4 + $0x1], 0 }
  0x15   :  { %33 = vsyncpa [#allocation21], 0 }
  0x16   :  { %35 = vsyncpa [#allocation21 + $0x1], 0  ;;  %s7345_s29 = smov 0   ;;  %s7347_s30 = smov 0  }
  0x17   :  { %s7349_s15 = smov 0   ;;  %s7351_s16 = smov 0  }
  0x18 LB: > { %8031 = sst [smem:[#allocation30_spill]] %s7236_s29  ;;  %s7250_s17 = smov [#allocation8]   ;;  %s7248_s16 = sphi %s7351_s16, %s8080_s16   ;;  %s7244_s15 = sphi %s7349_s15, %s8082_s15   ;;  %s7240_s30 = sphi %s7347_s30, %s8084_s30   ;;  %s7236_s29 = sphi %s7345_s29, %s8083_s29  }
  0x19   : > { %8032 = sst [smem:[#allocation31_spill]] %s7244_s15  ;;  %s398_s18 = sshll.u32 %s7250_s17, 4  ;;  %s7371_s18 = int_to_ptr.vmem [resolvable:$true] %s398_s18 }
  0x1a   : > { %s7366_s19 = sadd.s32 4294967295, %s7248_s16   ;;  %p5271_p0 = scmp.ge.s32.totalorder %s7248_s16, 1 }
  0x1b   : > { %p8003_p1 = scmp.eq.s32.totalorder %s7366_s19, 0  ;;  %p386_p2 = scmp.lt.s32.totalorder %s7248_s16, 3 }
  0x1c   : > { %s7251_s21 = smov [#allocation11]   ;;  %s7252_s24 = smov [#allocation14]  }
  0x1d   : > { %p7373_p3 = pnand %p5271_p0, %p386_p2  ;;  %s425_s22 = sshll.u32 %s7251_s21, 4  ;;  %s7386_s22 = int_to_ptr.vmem [resolvable:$true] %s425_s22 }
  0x1e   : > { %s451_s25 = sshll.u32 %s7252_s24, 4  ;;  %s8036_s3 = sld [smem:[#allocation38_spill]]  ;;  %s7388_s25 = int_to_ptr.vmem [resolvable:$true] %s451_s25 }
  0x1f   : > { %s8033_s20 = scalar_select %p7373_p3, 1, 0 }
  0x20   : > { %p5979_p5 = pneg %p7373_p3 }
  0x21   : > { %8034 = sst [smem:[#allocation32_spill]] %s8033_s20 }
  0x22   : > { %p7382_p6 = pnand %p5979_p5, %p8003_p1 }
  0x24   : > { %s8035_s23 = scalar_select %p7382_p6, 1, 0 }
  0x25   : > { %s6844_s28 = scalar_lea.hbm %s8036_s3, 28672  ;;  %p7398_p8 = pneg %p7382_p6 }
  0x26   : > { %p6845_p7 = scmp.ne.s32.totalorder %s8036_s3, %s6844_s28  ;;  %p6851_p11 = scmp.lt.u32.totalorder %s6844_s28, %s8036_s3 }
  0x27   : > { %s8037_s21 = scalar_select %p7398_p8, 1, 0 }
  0x28   : > { %p6847_p9 = pnand %p7398_p8, %p6845_p7 }
  0x2a   : > { %p6848_p10 = pneg %p6847_p9 }
  0x2c   : > { %p6853_p12 = pnand %p6851_p11, %p6848_p10 }
  0x2e   : > { %6856 = shalt.err (!%p6853_p12)
}
  0x2f   : > { %s6857_s13 = scalar_lea.vmem %s7371_s18, 28672  ;;  %p6865_p5 = scmp.lt.s32.totalorder %s7371_s18, %s7371_s18 }
  0x30   : > { %p6858_p13 = scmp.ne.s32.totalorder %s7371_s18, %s6857_s13  ;;  %p6866_p4 = scmp.lt.s32.totalorder %s6857_s13, %s6857_s13 }
  0x32   : > { %p6860_p0 = pnand %p6858_p13, %p7398_p8  ;;  %p6867_p7 = por %p6866_p4, %p6865_p5 }
  0x34   : > { %p6861_p2 = pneg %p6860_p0 }
  0x36   : > { %p6868_p9 = pnand %p6867_p7, %p6861_p2 }
  0x38   : > { %6871 = shalt.err (!%p6868_p9)
}
  0x39   : > { %s8001_s26 = smov 256   ;;  %s8002_s14 = smov 16  }
  0x3a   : > { %5982 = dma.hbm_to_vmem [thread:$0]  (!%p7382_p6), %s8036_s3, 28672, %s7371_s18, [#allocation9], %s8001_s26, %s8001_s26, %s8002_s14  }
  0x3b   : > { %s8038_s5 = sld [smem:[#allocation40_spill]] }
  0x41   : > { %s6872_s13 = scalar_lea.hbm %s8038_s5, 64 }
  0x42   : > { %p6873_p4 = scmp.ne.s32.totalorder %s8038_s5, %s6872_s13  ;;  %p6879_p12 = scmp.lt.u32.totalorder %s6872_s13, %s8038_s5 }
  0x44   : > { %p6875_p10 = pnand %p6873_p4, %p7398_p8 }
  0x46   : > { %p6876_p11 = pneg %p6875_p10 }
  0x48   : > { %p6881_p13 = pnand %p6879_p12, %p6876_p11 }
  0x4a   : > { %6884 = shalt.err (!%p6881_p13)
}
  0x4b   : > { %s6885_s18 = scalar_lea.vmem %s7386_s22, 64  ;;  %p6893_p7 = scmp.lt.s32.totalorder %s7386_s22, %s7386_s22 }
  0x4c   : > { %p6886_p0 = scmp.ne.s32.totalorder %s7386_s22, %s6885_s18  ;;  %p6894_p9 = scmp.lt.s32.totalorder %s6885_s18, %s6885_s18 }
  0x4e   : > { %p6888_p2 = pnand %p6886_p0, %p7398_p8  ;;  %p6895_p4 = por %p6894_p9, %p6893_p7 }
  0x50   : > { %p6889_p5 = pneg %p6888_p2 }
  0x52   : > { %p6896_p10 = pnand %p6895_p4, %p6889_p5 }
  0x54   : > { %6899 = shalt.err (!%p6896_p10)
}
  0x55   : > { %5988 = dma.hbm_to_vmem [thread:$0]  (!%p7382_p6), %s8038_s5, 64, %s7386_s22, [#allocation12]  }
  0x56   : > { %s8039_s8 = sld [smem:[#allocation42_spill]] }
  0x5c   : > { %s6900_s27 = scalar_lea.hbm %s8039_s8, 2048 }
  0x5d   : > { %p6901_p11 = scmp.ne.s32.totalorder %s8039_s8, %s6900_s27  ;;  %p6907_p0 = scmp.lt.u32.totalorder %s6900_s27, %s8039_s8 }
  0x5f   : > { %p6903_p12 = pnand %p6901_p11, %p7398_p8 }
  0x61   : > { %p6904_p13 = pneg %p6903_p12 }
  0x63   : > { %p6909_p2 = pnand %p6907_p0, %p6904_p13 }
  0x65   : > { %6912 = shalt.err (!%p6909_p2)
}
  0x66   : > { %s6913_s22 = scalar_lea.vmem %s7388_s25, 2048  ;;  %p6921_p4 = scmp.lt.s32.totalorder %s7388_s25, %s7388_s25 }
  0x67   : > { %p6914_p5 = scmp.ne.s32.totalorder %s7388_s25, %s6913_s22  ;;  %p6922_p10 = scmp.lt.s32.totalorder %s6913_s22, %s6913_s22 }
  0x69   : > { %p6916_p7 = pnand %p6914_p5, %p7398_p8  ;;  %p6923_p11 = por %p6922_p10, %p6921_p4 }
  0x6b   : > { %p6917_p9 = pneg %p6916_p7 }
  0x6d   : > { %p6924_p12 = pnand %p6923_p11, %p6917_p9 }
  0x6f   : > { %6927 = shalt.err (!%p6924_p12)
}
  0x70   : > { %5994 = dma.hbm_to_vmem [thread:$0]  (!%p7382_p6), %s8039_s8, 2048, %s7388_s25, [#allocation15], %s8001_s26, %s8001_s26, %s8002_s14  }
  0x71   : > { %s5270_s9 = sadd.s32 4294967294, %s7248_s16   ;;  %s7473_s12 = sadd.s32 1, %s7248_s16  }
  0x72   : > { %8040 = sst [smem:[#allocation33_spill]] %s7473_s12  ;;  %s48_s20 = sadd.s32 1, %s7244_s15 }
  0x73   : > { %s45_s27 = ssub.s32 %s7248_s16, %s7473_s12  ;;  %p55_p13 = scmp.ne.s32.totalorder %s7244_s15, %s7240_s30 }
  0x74   : > { %p46_p0 = scmp.eq.s32.totalorder %s45_s27, 0  ;;  %p56_p2 = scmp.eq.s32.totalorder %s7248_s16, 0 }
  0x75   : > { %p61_p5 = scmp.ne.s32.totalorder %s7240_s30, %s7236_s29  ;;  %p347_p7 = scmp.eq.s32.totalorder %s7366_s19, 1 }
  0x76   : > { %s7485_s28 = scalar_select %p46_p0, %s7244_s15, %s48_s20  }
  0x77   : > { %p57_p9 = por %p56_p2, %p55_p13  ;;  %p7489_p4 = por %p8003_p1, %p61_p5 }
  0x78   : > { %8041 = sst [smem:[#allocation34_spill]] %s7485_s28  ;;  %p7493_p10 = por %p347_p7, %p55_p13 }
  0x79   : > { %s8042_s25 = scalar_select %p7489_p4, 1, 0 }
  0x7a   : > { %s8043_s17 = scalar_select %p7493_p10, 1, 0 }
  0x7b   : > { %p353_p11 = scmp.eq.s32.totalorder %s5270_s9, 1  ;;  %p6025_p12 = scmp.lt.s32.totalorder %s7248_s16, 2 }
  0x7c   : > { %8044 = sst [smem:[#allocation35_spill]] %s8043_s17  ;;  %s7499_s24 = sand.u32 1, %s7244_s15  }
  0x7d   : > { %p7501_p3 = por %p353_p11, %p61_p5  ;;  %s514_s22 = sand.u32 1, %s7248_s16  }
  0x7e   : > { %p7506_p0 = pnand %p6025_p12, %p57_p9  ;;  %s5281_s7 = sshll.u32 %s7499_s24, 2 }
  0x7f   : > { %s8045_s13 = scalar_select %p7501_p3, 1, 0 }
  0x80   : > { %s8047_s18 = scalar_select %p7506_p0, 1, 0 }
  0x81   : > { %8046 = sst [smem:[#allocation36_spill]] %s8045_s13  ;;  %s5282_s20 = sshll.u32 %s7248_s16, 6 }
  0x82   : > { %s8048_s1 = sld [smem:[#allocation37_spill]]  ;;  %s518_s14 = scalar_lea.vmem [#allocation5], %s5281_s7 }
  0x83   : > { %s525_s3 = sshll.u32 %s518_s14, 4  ;;  %s7519_s5 = scalar_lea.sflag [#allocation6], %s514_s22  ;;  %s7517_s3 = int_to_ptr.vmem [resolvable:$true] %s525_s3 }
  0x84   : > { %p7525_p2 = pneg %p7506_p0 }
  0x86   : > { %s8049_s28 = scalar_select %p7525_p2, 1, 0 }
  0x88   : > { %s7515_s9 = scalar_lea.hbm %s8048_s1, %s5282_s20  ;;  %s6933_s7 = scalar_lea.hbm %s8048_s1, 128 }
  0x89   : > { %s6928_s8 = scalar_lea.hbm %s7515_s9, 64  ;;  %p6934_p9 = scmp.lt.u32.totalorder %s7515_s9, %s8048_s1 }
  0x8a   : > { %p6929_p13 = scmp.ne.s32.totalorder %s7515_s9, %s6928_s8  ;;  %p6935_p11 = scmp.lt.u32.totalorder %s6933_s7, %s6928_s8 }
  0x8b   : > { %p6937_p1 = scmp.lt.u32.totalorder %s6928_s8, %s7515_s9 }
  0x8c   : > { %p6931_p5 = pnand %p7525_p2, %p6929_p13  ;;  %p6936_p12 = por %p6935_p11, %p6934_p9 }
  0x8e   : > { %p6932_p7 = pneg %p6931_p5  ;;  %p6938_p3 = por %p6937_p1, %p6936_p12 }
  0x90   : > { %p6939_p10 = pnand %p6938_p3, %p6932_p7 }
  0x92   : > { %6942 = shalt.err (!%p6939_p10)
}
  0x93   : > { %s6943_s22 = scalar_lea.vmem %s7517_s3, 64  ;;  %s7255_s26 = smov [#allocation5]  }
  0x94   : > { %p6944_p13 = scmp.ne.s32.totalorder %s7517_s3, %s6943_s22  ;;  %s6948_s20 = sshll.u32 %s7255_s26, 4  ;;  %s6949_s20 = int_to_ptr.vmem [resolvable:$false] %s6948_s20 }
  0x95   : > { %s6950_s14 = scalar_lea.vmem %s6949_s20, 128  ;;  %p6951_p6 = scmp.lt.s32.totalorder %s7517_s3, %s6949_s20 }
  0x96   : > { %p6946_p5 = pnand %p6944_p13, %p7525_p2  ;;  %p6952_p8 = scmp.lt.s32.totalorder %s6950_s14, %s6943_s22 }
  0x98   : > { %p6947_p4 = pneg %p6946_p5  ;;  %p6953_p9 = por %p6952_p8, %p6951_p6 }
  0x9a   : > { %p6954_p11 = pnand %p6953_p9, %p6947_p4 }
  0x9c   : > { %6957 = shalt.err (!%p6954_p11)
}
  0x9d   : > { %6007 = dma.hbm_to_vmem [thread:$0]  (!%p7506_p0), %s7515_s9, 64, %s7517_s3, %s7519_s5  }
  0x9e   : > { %s7256_s8 = smov [#allocation10]   ;;  %s7257_s27 = smov [#allocation13]  }
  0x9f   : > { %s411_s7 = sshll.u32 %s7256_s8, 4  ;;  %s435_s1 = sshll.u32 %s7257_s27, 4  ;;  %s412_s7 = int_to_ptr.vmem [resolvable:$true] %s411_s7  ;;  %s436_s1 = int_to_ptr.vmem [resolvable:$true] %s435_s1 }
  0xa0   : > { %s8050_s4 = sld [smem:[#allocation39_spill]]  ;;  %p8051_p3 = scmp.ne.s32.totalorder %s8037_s21, 0 }
  0xa6   : > { %s6958_s20 = scalar_lea.hbm %s8050_s4, 512 }
  0xa7   : > { %p6959_p1 = scmp.ne.s32.totalorder %s8050_s4, %s6958_s20  ;;  %p6965_p4 = scmp.lt.u32.totalorder %s6958_s20, %s8050_s4 }
  0xa9   : > { %p6961_p6 = pnand %p6959_p1, %p8051_p3 }
  0xab   : > { %p6962_p8 = pneg %p6961_p6 }
  0xad   : > { %p6967_p10 = pnand %p6965_p4, %p6962_p8 }
  0xaf   : > { %6970 = shalt.err (!%p6967_p10)
}
  0xb0   : > { %s6971_s3 = scalar_lea.vmem %s412_s7, 512  ;;  %p6979_p5 = scmp.lt.s32.totalorder %s412_s7, %s412_s7 }
  0xb1   : > { %p6972_p7 = scmp.ne.s32.totalorder %s412_s7, %s6971_s3  ;;  %p6980_p9 = scmp.lt.s32.totalorder %s6971_s3, %s6971_s3 }
  0xb3   : > { %p6974_p12 = pnand %p6972_p7, %p8051_p3  ;;  %p6981_p11 = por %p6980_p9, %p6979_p5 }
  0xb5   : > { %p6975_p13 = pneg %p6974_p12 }
  0xb7   : > { %p6982_p0 = pnand %p6981_p11, %p6975_p13 }
  0xb9   : > { %6985 = shalt.err (!%p6982_p0)
}
  0xba   : > { %p8052_p1 = scmp.ne.s32.totalorder %s8035_s23, 0  ;;  %s8053_s15 = smov 16  }
  0xbb   : > { %s8054_s9 = smov 256   ;;  %s6986_s26 = scalar_lea.hbm %s7987_s6, 4096 }
  0xbc   : > { %5985 = dma.hbm_to_vmem [thread:$0]  (!%p8052_p1), %s8050_s4, 512, %s412_s7, [#allocation9], %s8054_s9, %s8054_s9, %s8053_s15  }
  0xbd   : > { %p6987_p6 = scmp.ne.s32.totalorder %s7987_s6, %s6986_s26  ;;  %p6993_p4 = scmp.lt.u32.totalorder %s6986_s26, %s7987_s6 }
  0xbf   : > { %p6989_p0 = pnand %p6987_p6, %p8051_p3 }
  0xc1   : > { %p6990_p8 = pneg %p6989_p0 }
  0xc3   : > { %p6995_p10 = pnand %p6993_p4, %p6990_p8 }
  0xc5   : > { %6998 = shalt.err (!%p6995_p10)
}
  0xc6   : > { %s6999_s12 = scalar_lea.vmem %s436_s1, 4096  ;;  %p7007_p5 = scmp.lt.s32.totalorder %s436_s1, %s436_s1 }
  0xc7   : > { %p7000_p7 = scmp.ne.s32.totalorder %s436_s1, %s6999_s12  ;;  %p7008_p9 = scmp.lt.s32.totalorder %s6999_s12, %s6999_s12 }
  0xc9   : > { %p7002_p12 = pnand %p7000_p7, %p8051_p3  ;;  %p7009_p11 = por %p7008_p9, %p7007_p5 }
  0xcb   : > { %p7003_p13 = pneg %p7002_p12 }
  0xcd   : > { %p7010_p2 = pnand %p7009_p11, %p7003_p13 }
  0xcf   : > { %7013 = shalt.err (!%p7010_p2)
}
  0xd0   : > { %s7258_s7 = smov 64   ;;  %s7259_s15 = smov 4  }
  0xd1   : > { %5991 = dma.hbm_to_vmem [thread:$0]  (!%p8052_p1), %s7987_s6, 4096, %s436_s1, [#allocation12], %s7258_s7, %s7258_s7, %s7259_s15  }
  0xd2   : > { %s7260_s8 = smov [#allocation16]   ;;  %s7261_s26 = smov [#allocation17]  }
  0xd3   : > { %s468_s27 = sshll.u32 %s7260_s8, 4  ;;  %s478_s20 = sshll.u32 %s7261_s26, 4  ;;  %s469_s27 = int_to_ptr.vmem [resolvable:$true] %s468_s27  ;;  %s479_s20 = int_to_ptr.vmem [resolvable:$true] %s478_s20 }
  0xd4   : > { %s7014_s3 = scalar_lea.hbm %s7991_s10, 64 }
  0xd5   : > { %p7015_p2 = scmp.ne.s32.totalorder %s7991_s10, %s7014_s3  ;;  %p7021_p8 = scmp.lt.u32.totalorder %s7014_s3, %s7991_s10 }
  0xd7   : > { %p7017_p6 = pnand %p7015_p2, %p8051_p3 }
  0xd9   : > { %p7018_p0 = pneg %p7017_p6 }
  0xdb   : > { %p7023_p4 = pnand %p7021_p8, %p7018_p0 }
  0xdd   : > { %7026 = shalt.err (!%p7023_p4)
}
  0xde   : > { %s7027_s1 = scalar_lea.vmem %s469_s27, 64  ;;  %p7035_p13 = scmp.lt.s32.totalorder %s469_s27, %s469_s27 }
  0xdf   : > { %p7028_p10 = scmp.ne.s32.totalorder %s469_s27, %s7027_s1  ;;  %p7036_p5 = scmp.lt.s32.totalorder %s7027_s1, %s7027_s1 }
  0xe1   : > { %p7030_p7 = pnand %p7028_p10, %p8051_p3  ;;  %p7037_p9 = por %p7036_p5, %p7035_p13 }
  0xe3   : > { %p7031_p12 = pneg %p7030_p7 }
  0xe5   : > { %p7038_p11 = pnand %p7037_p9, %p7031_p12 }
  0xe7   : > { %7041 = shalt.err (!%p7038_p11)
}
  0xe8   : > { %5997 = dma.hbm_to_vmem [thread:$0]  (!%p8052_p1), %s7991_s10, 64, %s469_s27, [#allocation15]  }
  0xe9   : > { %s7042_s15 = scalar_lea.hbm %s7992_s11, 28672 }
  0xea   : > { %p7043_p2 = scmp.ne.s32.totalorder %s7992_s11, %s7042_s15  ;;  %p7049_p8 = scmp.lt.u32.totalorder %s7042_s15, %s7992_s11 }
  0xec   : > { %p7045_p6 = pnand %p7043_p2, %p8051_p3 }
  0xee   : > { %p7046_p0 = pneg %p7045_p6 }
  0xf0   : > { %p7051_p4 = pnand %p7049_p8, %p7046_p0 }
  0xf2   : > { %7054 = shalt.err (!%p7051_p4)
}
  0xf3   : > { %s7055_s22 = scalar_lea.vmem %s479_s20, 28672  ;;  %p7063_p13 = scmp.lt.s32.totalorder %s479_s20, %s479_s20 }
  0xf4   : > { %p7056_p10 = scmp.ne.s32.totalorder %s479_s20, %s7055_s22  ;;  %p7064_p5 = scmp.lt.s32.totalorder %s7055_s22, %s7055_s22 }
  0xf6   : > { %p7058_p7 = pnand %p7056_p10, %p8051_p3  ;;  %p7065_p9 = por %p7064_p5, %p7063_p13 }
  0xf8   : > { %p7059_p12 = pneg %p7058_p7 }
  0xfa   : > { %p7066_p11 = pnand %p7065_p9, %p7059_p12 }
  0xfc   : > { %7069 = shalt.err (!%p7066_p11)
}
  0xfd   : > { %s7262_s27 = smov 448   ;;  %s7263_s14 = smov 28  }
  0xfe   : > { %6000 = dma.hbm_to_vmem [thread:$0]  (!%p8052_p1), %s7992_s11, 28672, %s479_s20, [#allocation18], %s7262_s27, %s7262_s27, %s7263_s14  }
  0xff   : > { %s5936_s21 = smul.u32 28, %s7499_s24  ;;  %s5283_s1 = sshll.u32 %s7499_s24, 3 }
 0x100   : > { %s5937_s4 = smul.u32 448, %s7248_s16  ;;  %s5284_s7 = sshll.u32 %s7248_s16, 7 }
 0x101   : > { %s499_s9 = scalar_lea.vmem [#allocation2], %s5936_s21  ;;  %s7638_s20 = scalar_lea.hbm %s7983_s2, %s5284_s7 }
 0x102   : > { %s7631_s15 = scalar_lea.hbm %s7981_s0, %s5937_s4  ;;  %s507_s13 = sshll.u32 %s499_s9, 4  ;;  %s7633_s13 = int_to_ptr.vmem [resolvable:$true] %s507_s13 }
 0x103   : > { %s496_s26 = scalar_lea.sflag [#allocation3], %s7499_s24  ;;  %s7070_s22 = scalar_lea.hbm %s7631_s15, 448 }
 0x104   : > { %p7071_p3 = scmp.ne.s32.totalorder %s7631_s15, %s7070_s22  ;;  %p8055_p1 = scmp.ne.s32.totalorder %s8049_s28, 0 }
 0x105   : > { %s7075_s3 = scalar_lea.hbm %s7981_s0, 896  ;;  %p7076_p0 = scmp.lt.u32.totalorder %s7631_s15, %s7981_s0 }
 0x106   : > { %p7073_p2 = pnand %p7071_p3, %p8055_p1  ;;  %p7077_p8 = scmp.lt.u32.totalorder %s7075_s3, %s7070_s22 }
 0x107   : > { %p7079_p10 = scmp.lt.u32.totalorder %s7070_s22, %s7631_s15 }
 0x108   : > { %p7074_p6 = pneg %p7073_p2  ;;  %p7078_p4 = por %p7077_p8, %p7076_p0 }
 0x10a   : > { %p7080_p7 = por %p7079_p10, %p7078_p4 }
 0x10c   : > { %p7081_p12 = pnand %p7080_p7, %p7074_p6 }
 0x10e   : > { %7084 = shalt.err (!%p7081_p12)
}
 0x10f   : > { %s7085_s4 = scalar_lea.vmem %s7633_s13, 448  ;;  %s7264_s7 = smov [#allocation2]  }
 0x110   : > { %p7086_p13 = scmp.ne.s32.totalorder %s7633_s13, %s7085_s4  ;;  %s7090_s29 = sshll.u32 %s7264_s7, 4  ;;  %s7091_s29 = int_to_ptr.vmem [resolvable:$false] %s7090_s29 }
 0x111   : > { %s7092_s17 = scalar_lea.vmem %s7091_s29, 896  ;;  %p7093_p11 = scmp.lt.s32.totalorder %s7633_s13, %s7091_s29 }
 0x112   : > { %p7088_p5 = pnand %p7086_p13, %p8055_p1  ;;  %p7094_p3 = scmp.lt.s32.totalorder %s7092_s17, %s7085_s4 }
 0x114   : > { %p7089_p9 = pneg %p7088_p5  ;;  %p7095_p2 = por %p7094_p3, %p7093_p11 }
 0x116   : > { %p7096_p0 = pnand %p7095_p2, %p7089_p9 }
 0x118   : > { %7099 = shalt.err (!%p7096_p0)
}
 0x119   : > { %p8056_p6 = scmp.ne.s32.totalorder %s8047_s18, 0  ;;  %s536_s9 = scalar_lea.vmem [#allocation7], %s5283_s1 }
 0x11a   : > { %s543_s23 = sshll.u32 %s536_s9, 4  ;;  %s7100_s8 = scalar_lea.hbm %s7638_s20, 128  ;;  %s544_s23 = int_to_ptr.vmem [resolvable:$true] %s543_s23 }
 0x11b   : > { %6004 = dma.hbm_to_vmem [thread:$0]  (!%p8056_p6), %s7631_s15, 448, %s7633_s13, %s496_s26  }
 0x11c   : > { %p7101_p8 = scmp.ne.s32.totalorder %s7638_s20, %s7100_s8  ;;  %s7105_s14 = scalar_lea.hbm %s7983_s2, 256 }
 0x11d   : > { %p7106_p7 = scmp.lt.u32.totalorder %s7638_s20, %s7983_s2  ;;  %p7107_p12 = scmp.lt.u32.totalorder %s7105_s14, %s7100_s8 }
 0x11e   : > { %p7103_p4 = pnand %p7101_p8, %p8055_p1  ;;  %p7109_p5 = scmp.lt.u32.totalorder %s7100_s8, %s7638_s20 }
 0x11f   : > { %p7108_p13 = por %p7107_p12, %p7106_p7 }
 0x120   : > { %p7104_p10 = pneg %p7103_p4 }
 0x121   : > { %p7110_p9 = por %p7109_p5, %p7108_p13 }
 0x123   : > { %p7111_p11 = pnand %p7110_p9, %p7104_p10 }
 0x125   : > { %7114 = shalt.err (!%p7111_p11)
}
 0x126   : > { %s7115_s24 = scalar_lea.vmem %s544_s23, 128  ;;  %s7265_s1 = smov [#allocation7]  }
 0x127   : > { %p7116_p3 = scmp.ne.s32.totalorder %s544_s23, %s7115_s24  ;;  %s7120_s15 = sshll.u32 %s7265_s1, 4  ;;  %s7121_s15 = int_to_ptr.vmem [resolvable:$false] %s7120_s15 }
 0x128   : > { %s7122_s13 = scalar_lea.vmem %s7121_s15, 256  ;;  %p7123_p8 = scmp.lt.s32.totalorder %s544_s23, %s7121_s15 }
 0x129   : > { %p7118_p2 = pnand %p7116_p3, %p8055_p1  ;;  %p7124_p4 = scmp.lt.s32.totalorder %s7122_s13, %s7115_s24 }
 0x12b   : > { %p7119_p0 = pneg %p7118_p2  ;;  %p7125_p6 = por %p7124_p4, %p7123_p8 }
 0x12d   : > { %p7126_p7 = pnand %p7125_p6, %p7119_p0 }
 0x12f   : > { %7129 = shalt.err (!%p7126_p7)
}
 0x130   : > { %p8057_p12 = scmp.ne.s32.totalorder %s8047_s18, 0  ;;  %s8058_s26 = sld [smem:[#allocation32_spill]] }
 0x132   : > { %6010 = dma.hbm_to_vmem [thread:$0]  (!%p8057_p12), %s7638_s20, 128, %s544_s23, %s7519_s5  }
 0x136   : > { %p8059_p10 = scmp.ne.s32.totalorder %s8058_s26, 0 }
 0x137   : > { %s7685_s28 = sand.u32 (!%p8059_p10), 1, %s7240_s30   ;;  %p8060_p1 = scmp.ne.s32.totalorder (!%p8059_p10), %s8042_s25, 0 }
 0x138   : > { %552 = sbr.rel (%p8059_p10) target bundleno = 1843 (0x733), region = 72  ;;  %s555_s4 = scalar_lea.sflag (!%p8059_p10), [#allocation3], %s7685_s28 }
 0x139   : > { %s5938_s21 = smul.u32 (!%p8059_p10), 28, %s7685_s28 }
 0x13b   : > { %s7689_s7 = scalar_lea.vmem (!%p8059_p10), [#allocation2], %s5938_s21 }
 0x13f   : > { %7203 = dma.done.wait (%p8060_p1), %s555_s4, 448  }
 0x140   : > { %7205 = vsyncadd (%p8060_p1), %s555_s4, 4294966848  ;;  %s563_s5 = sand.u32 1, %s7366_s19   ;;  %s5286_s18 = sshll.u32 %s7685_s28, 2 }
 0x141   : > { %s564_s20 = scalar_lea.sflag [#allocation6], %s563_s5  ;;  %s7697_s29 = scalar_lea.vmem [#allocation5], %s5286_s18 }
 0x142   : > { %7207 = dma.done.wait (%p8060_p1), %s564_s20, 192  }
 0x143   : > { %7209 = vsyncadd (%p8060_p1), %s564_s20, 4294967104  ;;  %s5287_s17 = sshll.u32 %s7685_s28, 3  ;;  %p8061_p6 = scmp.eq.s32.totalorder %s7366_s19, 0 }
 0x144   : > { %s7706_s9 = scalar_lea.vmem [#allocation7], %s5287_s17 }
 0x145   : > { %7211 = dma.done.wait (%p8061_p6), [#allocation9], 29184   ;;  %p8062_p13 = pmov %p8061_p6 }
 0x146   : > { %p8063_p5 = pmov %p8061_p6 }
 0x147   : > { %7213 = vsyncadd (%p8062_p13), [#allocation9], 4294938112 }
 0x148   : > { %7215 = dma.done.wait (%p8063_p5), [#allocation12], 4160   ;;  %p8064_p9 = pmov %p8063_p5 }
 0x149   : > { %p8065_p11 = pmov %p8063_p5 }
 0x14a   : > { %7217 = vsyncadd (%p8064_p9), [#allocation12], 4294963136 }
 0x14b   : > { %7219 = dma.done.wait (%p8065_p11), [#allocation15], 2112   ;;  %p8066_p3 = pmov %p8063_p5 }
 0x14d   : > { %7221 = vsyncadd (%p8066_p3), [#allocation15], 4294965184  ;;  %p8067_p2 = pmov %p8066_p3 }
 0x14f   : > { %7223 = dma.done.wait (%p8067_p2), [#allocation18], 28672   ;;  %p8068_p0 = pmov %p8067_p2 }
 0x150   : > { %v7266_v0 = vmov 0   ;;  %vm919_vm0 = vcmask 1044480   ;;  %v6081_v1 = vld [vmem:[#allocation10 + $0x4] ss:$16 sps:$4 sm:$0x1f]   ;;  %vm915_vm1 = vcmask 80896  }
 0x151   : > { %7225 = vsyncadd (%p8068_p0), [#allocation18], 4294938624  ;;  %1005 = vmatprep.mubr.bf16.mxu1 %v7266_v0  ;;  %964 = vmatprep.mubr.bf16.mxu0 %v7266_v0  ;;  %v6083_v2 = vld [vmem:[#allocation10 + $0xc] ss:$16 sps:$4 sm:$0x1f]   ;;  %s8069_s8 = sld [smem:[#allocation43_spill]] }
 0x152   : > { %5300 = vmatprep.subr.msk.bf16.mxu0 %vm919_vm0, %v6081_v1  ;;  %v6085_v3 = vld [vmem:[#allocation10] ss:$16 sps:$4 sm:$0x1f]   ;;  %v6086_v4 = vld [vmem:[#allocation10 + $0x8] ss:$16 sps:$4 sm:$0x1f]   ;;  %5302 = vmatprep.subr.msk.bf16.mxu1 %vm919_vm0, %v6083_v2 }
 0x153   : > { %v669_v5 = vld [vmem:[%s7697_s29] sm:$0xf]  ;;  %v921_v6 = vsel %vm919_vm0, %v6085_v3, 0  ;;  %v927_v7 = vsel %vm919_vm0, %v6086_v4, 0  ;;  %v6087_v8 = vld [vmem:[#allocation8] ss:$16 sps:$4 sm:$0xff]  }
 0x154   : > { %v6089_v9 = vld [vmem:[#allocation8 + $0x4] ss:$16 sps:$4 sm:$0xff]   ;;  %933 = vmatpush1.bf16.msra.mxu0 %v921_v6  ;;  %974 = vmatpush1.bf16.msra.mxu1 %v927_v7  ;;  %v6090_v10 = vld [vmem:[#allocation8 + $0x200] ss:$16 sps:$4 sm:$0xff]   ;;  %s8070_s13 = sld [smem:[#allocation41_spill]]  ;;  %s7825_s26 = scalar_lea.vmem [#allocation20], %s5287_s17 }
 0x155   : > { %2159 = vmatprep.subr.bf16.mxu0 %v6089_v9  ;;  %v6092_v11 = vld [vmem:[#allocation8 + $0x204] ss:$16 sps:$4 sm:$0xff]   ;;  %v6096_v14 = vld [vmem:[#allocation8 + $0x220] ss:$16 sps:$4 sm:$0xff]   ;;  %s7267_s21 = smov 64   ;;  %vm3084_vm2 = vcmask 523264  }
 0x156   : > { %v6095_v12 = vld [vmem:[#allocation8 + $0x24] ss:$16 sps:$4 sm:$0xff]   ;;  %2200 = vmatprep.subr.bf16.mxu1 %v6092_v11  ;;  %v6093_v15 = vld [vmem:[#allocation8 + $0x20] ss:$16 sps:$4 sm:$0xff]   ;;  %s8071_s5 = sld [smem:[#allocation44_spill]]  ;;  %s5939_s18 = smul.u32 56, %s7685_s28 }
 0x157   : > { %5303 = vmatmul.mubr.msk.bf16.vlgmr.msra.gmra.mrb[0].mxu1 %vm915_vm1, %v669_v5  ;;  %v6098_v13 = vld [vmem:[#allocation8 + $0x224] ss:$16 sps:$4 sm:$0xff]   ;;  %5301 = vmatmul.mubr.msk.bf16.vlgmr.msra.gmra.mrb[0].mxu0 %vm915_vm1, %v669_v5  ;;  %v6099_v18 = vld [vmem:[#allocation8 + $0x40] ss:$16 sps:$4 sm:$0xff]   ;;  %s5827_s17 = sshll.u32 %s7366_s19, 7  ;;  %s8073_s22 = sld [smem:[#allocation46_spill]] }
 0x158   : > { %2201 = vmatpush1.bf16.msra.mxu1 %v6090_v10  ;;  %2160 = vmatpush1.bf16.msra.mxu0 %v6087_v8  ;;  %v6101_v16 = vld [vmem:[#allocation8 + $0x44] ss:$16 sps:$4 sm:$0xff]   ;;  %v6102_v19 = vld [vmem:[#allocation8 + $0x240] ss:$16 sps:$4 sm:$0xff]   ;;  %s7886_s20 = scalar_lea.vmem [#allocation19], %s5939_s18  ;;  %s5031_s14 = scalar_lea.sflag [#allocation21], %s7685_s28 }
 0x159   : > { %2202 = vmatprep.subr.bf16.mxu1 %v6098_v13  ;;  %2161 = vmatprep.subr.bf16.mxu0 %v6095_v12  ;;  %v6104_v17 = vld [vmem:[#allocation8 + $0x244] ss:$16 sps:$4 sm:$0xff]   ;;  %v6105_v22 = vld [vmem:[#allocation8 + $0x60] ss:$16 sps:$4 sm:$0xff]   ;;  %s7268_s12 = smov [#allocation20]  }
 0x15a   : > { %v6110_v20 = vld [vmem:[#allocation8 + $0x264] ss:$16 sps:$4 sm:$0xff]   ;;  %v6108_v23 = vld [vmem:[#allocation8 + $0x260] ss:$16 sps:$4 sm:$0xff]   ;;  %s7134_s24 = sshll.u32 %s7268_s12, 4  ;;  %s7135_s24 = int_to_ptr.vmem [resolvable:$false] %s7134_s24 }
 0x15b   : > { %v6107_v21 = vld [vmem:[#allocation8 + $0x64] ss:$16 sps:$4 sm:$0xff]   ;;  %v6111_v26 = vld [vmem:[#allocation8 + $0x80] ss:$16 sps:$4 sm:$0xff]   ;;  %s7136_s1 = scalar_lea.vmem %s7135_s24, 256 }
 0x15c   : > { %2203 = vmatpush1.bf16.msra.mxu1 %v6096_v14  ;;  %2162 = vmatpush1.bf16.msra.mxu0 %v6093_v15  ;;  %v6116_v24 = vld [vmem:[#allocation8 + $0x284] ss:$16 sps:$4 sm:$0xff]   ;;  %v6114_v27 = vld [vmem:[#allocation8 + $0x280] ss:$16 sps:$4 sm:$0xff]  }
 0x15d   : > { %2204 = vmatprep.subr.bf16.mxu1 %v6104_v17  ;;  %2163 = vmatprep.subr.bf16.mxu0 %v6101_v16  ;;  %v6113_v25 = vld [vmem:[#allocation8 + $0x84] ss:$16 sps:$4 sm:$0xff]   ;;  %v6117_v30 = vld [vmem:[#allocation8 + $0xa0] ss:$16 sps:$4 sm:$0xff]   ;;  %s7897_s27 = scalar_lea.hbm %s8073_s22, %s5827_s17 }
 0x15e   : > { %v6122_v28 = vld [vmem:[#allocation8 + $0x2a4] ss:$16 sps:$4 sm:$0xff]   ;;  %v6120_v31 = vld [vmem:[#allocation8 + $0x2a0] ss:$16 sps:$4 sm:$0xff]  }
 0x15f   : > { %v6119_v29 = vld [vmem:[#allocation8 + $0xa4] ss:$16 sps:$4 sm:$0xff]   ;;  %v6123_v34 = vld [vmem:[#allocation8 + $0xc0] ss:$16 sps:$4 sm:$0xff]  }
 0x160   : > { %2205 = vmatpush1.bf16.msra.mxu1 %v6102_v19  ;;  %2164 = vmatpush1.bf16.msra.mxu0 %v6099_v18  ;;  %v6128_v32 = vld [vmem:[#allocation8 + $0x2c4] ss:$16 sps:$4 sm:$0xff]   ;;  %v6126_v35 = vld [vmem:[#allocation8 + $0x2c0] ss:$16 sps:$4 sm:$0xff]  }
 0x161   : > { %2206 = vmatprep.subr.bf16.mxu1 %v6110_v20  ;;  %2165 = vmatprep.subr.bf16.mxu0 %v6107_v21  ;;  %v6125_v33 = vld [vmem:[#allocation8 + $0xc4] ss:$16 sps:$4 sm:$0xff]   ;;  %v6129_v38 = vld [vmem:[#allocation8 + $0xe0] ss:$16 sps:$4 sm:$0xff]  }
 0x162   : > { %v6134_v36 = vld [vmem:[#allocation8 + $0x2e4] ss:$16 sps:$4 sm:$0xff]   ;;  %v6132_v39 = vld [vmem:[#allocation8 + $0x2e0] ss:$16 sps:$4 sm:$0xff]  }
 0x163   : > { %v6131_v37 = vld [vmem:[#allocation8 + $0xe4] ss:$16 sps:$4 sm:$0xff]   ;;  %v6135_v42 = vld [vmem:[#allocation8 + $0x100] ss:$16 sps:$4 sm:$0xff]  }
 0x164   : > { %2207 = vmatpush1.bf16.msra.mxu1 %v6108_v23  ;;  %2166 = vmatpush1.bf16.msra.mxu0 %v6105_v22  ;;  %v6140_v40 = vld [vmem:[#allocation8 + $0x304] ss:$16 sps:$4 sm:$0xff]   ;;  %v6138_v43 = vld [vmem:[#allocation8 + $0x300] ss:$16 sps:$4 sm:$0xff]  }
 0x165   : > { %2208 = vmatprep.subr.bf16.mxu1 %v6116_v24  ;;  %2167 = vmatprep.subr.bf16.mxu0 %v6113_v25  ;;  %v6137_v41 = vld [vmem:[#allocation8 + $0x104] ss:$16 sps:$4 sm:$0xff]   ;;  %v6141_v46 = vld [vmem:[#allocation8 + $0x120] ss:$16 sps:$4 sm:$0xff]  }
 0x166   : > { %v6146_v44 = vld [vmem:[#allocation8 + $0x324] ss:$16 sps:$4 sm:$0xff]   ;;  %v6144_v47 = vld [vmem:[#allocation8 + $0x320] ss:$16 sps:$4 sm:$0xff]  }
 0x167   : > { %v6143_v45 = vld [vmem:[#allocation8 + $0x124] ss:$16 sps:$4 sm:$0xff]   ;;  %v6147_v50 = vld [vmem:[#allocation8 + $0x140] ss:$16 sps:$4 sm:$0xff]  }
 0x168   : > { %2209 = vmatpush1.bf16.msra.mxu1 %v6114_v27  ;;  %2168 = vmatpush1.bf16.msra.mxu0 %v6111_v26  ;;  %v6152_v48 = vld [vmem:[#allocation8 + $0x344] ss:$16 sps:$4 sm:$0xff]   ;;  %v6150_v51 = vld [vmem:[#allocation8 + $0x340] ss:$16 sps:$4 sm:$0xff]  }
 0x169   : > { %2210 = vmatprep.subr.bf16.mxu1 %v6122_v28  ;;  %2169 = vmatprep.subr.bf16.mxu0 %v6119_v29  ;;  %v6149_v49 = vld [vmem:[#allocation8 + $0x144] ss:$16 sps:$4 sm:$0xff]   ;;  %v6156_v58 = vld [vmem:[#allocation8 + $0x360] ss:$16 sps:$4 sm:$0xff]  }
 0x16a   : > { %v6158_v52 = vld [vmem:[#allocation8 + $0x364] ss:$16 sps:$4 sm:$0xff]   ;;  %v6153_v59 = vld [vmem:[#allocation8 + $0x160] ss:$16 sps:$4 sm:$0xff]  }
 0x16b   : > { %v665_v53 = vld [vmem:[%s7689_s7] sm:$0xff]  ;;  %v666_v54 = vld [vmem:[%s7689_s7 + $0x8] sm:$0xff] }
 0x16c   : > { %2211 = vmatpush1.bf16.msra.mxu1 %v6120_v31  ;;  %2170 = vmatpush1.bf16.msra.mxu0 %v6117_v30  ;;  %v6155_v55 = vld [vmem:[#allocation8 + $0x164] ss:$16 sps:$4 sm:$0xff]   ;;  %v7735_v56 = vcombine.high %v665_v53, %v665_v53  ;;  %v7737_v57 = vcombine.high %v666_v54, %v666_v54  ;;  %v6162_v62 = vld [vmem:[#allocation8 + $0x380] ss:$16 sps:$4 sm:$0xff]   ;;  %v7741_v15 = vcombine.low %v666_v54, %v666_v54  ;;  %v6247_v54 = vld [vmem:[#allocation8 + $0x2c] ss:$16 sps:$4 sm:$0xff]  }
 0x16d   : > { %2212 = vmatprep.subr.bf16.mxu1 %v6128_v32  ;;  %2171 = vmatprep.subr.bf16.mxu0 %v6125_v33  ;;  %v6164_v60 = vld [vmem:[#allocation8 + $0x384] ss:$16 sps:$4 sm:$0xff]   ;;  %v6159_v63 = vld [vmem:[#allocation8 + $0x180] ss:$16 sps:$4 sm:$0xff]   ;;  %v7743_v16 = vcombine.low %v665_v53, %v665_v53 }
 0x16e   : > { %2191 = vmatprep.mubr.bf16.mxu0 %v7735_v56  ;;  %v6161_v61 = vld [vmem:[#allocation8 + $0x184] ss:$16 sps:$4 sm:$0xff]   ;;  %2232 = vmatprep.mubr.bf16.mxu1 %v7737_v57  ;;  %v6168_v3 = vld [vmem:[#allocation8 + $0x3a0] ss:$16 sps:$4 sm:$0xff]  }
 0x16f   : > { %v6170_v1 = vld [vmem:[#allocation8 + $0x3a4] ss:$16 sps:$4 sm:$0xff]   ;;  %v6165_v4 = vld [vmem:[#allocation8 + $0x1a0] ss:$16 sps:$4 sm:$0xff]  }
 0x170   : > { %2213 = vmatpush1.bf16.msra.mxu1 %v6126_v35  ;;  %2172 = vmatpush1.bf16.msra.mxu0 %v6123_v34  ;;  %v6167_v2 = vld [vmem:[#allocation8 + $0x1a4] ss:$16 sps:$4 sm:$0xff]   ;;  %v6174_v7 = vld [vmem:[#allocation8 + $0x3c0] ss:$16 sps:$4 sm:$0xff]  }
 0x171   : > { %2214 = vmatprep.subr.bf16.mxu1 %v6134_v36  ;;  %2173 = vmatprep.subr.bf16.mxu0 %v6131_v37  ;;  %v6176_v5 = vld [vmem:[#allocation8 + $0x3c4] ss:$16 sps:$4 sm:$0xff]   ;;  %v6171_v8 = vld [vmem:[#allocation8 + $0x1c0] ss:$16 sps:$4 sm:$0xff]  }
 0x172   : > { %v6173_v6 = vld [vmem:[#allocation8 + $0x1c4] ss:$16 sps:$4 sm:$0xff]   ;;  %v6180_v11 = vld [vmem:[#allocation8 + $0x3e0] ss:$16 sps:$4 sm:$0xff]  }
 0x173   : > { %v6182_v9 = vld [vmem:[#allocation8 + $0x3e4] ss:$16 sps:$4 sm:$0xff]   ;;  %v6177_v12 = vld [vmem:[#allocation8 + $0x1e0] ss:$16 sps:$4 sm:$0xff]  }
 0x174   : > { %2215 = vmatpush1.bf16.msra.mxu1 %v6132_v39  ;;  %2174 = vmatpush1.bf16.msra.mxu0 %v6129_v38  ;;  %v6179_v10 = vld [vmem:[#allocation8 + $0x1e4] ss:$16 sps:$4 sm:$0xff]   ;;  %v6187_v17 = vld [vmem:[#allocation8 + $0x400] ss:$16 sps:$4 sm:$0xff]  }
 0x175   : > { %2216 = vmatprep.subr.bf16.mxu1 %v6140_v40  ;;  %2175 = vmatprep.subr.bf16.mxu0 %v6137_v41  ;;  %v6192_v13 = vld [vmem:[#allocation8 + $0x604] ss:$16 sps:$4 sm:$0xff]   ;;  %v6190_v18 = vld [vmem:[#allocation8 + $0x600] ss:$16 sps:$4 sm:$0xff]  }
 0x176   : > { %v6189_v14 = vld [vmem:[#allocation8 + $0x404] ss:$16 sps:$4 sm:$0xff]   ;;  %v6193_v21 = vld [vmem:[#allocation8 + $0x420] ss:$16 sps:$4 sm:$0xff]  }
 0x177   : > { %v6198_v19 = vld [vmem:[#allocation8 + $0x624] ss:$16 sps:$4 sm:$0xff]   ;;  %v6196_v22 = vld [vmem:[#allocation8 + $0x620] ss:$16 sps:$4 sm:$0xff]  }
 0x178   : > { %2217 = vmatpush1.bf16.msra.mxu1 %v6138_v43  ;;  %2176 = vmatpush1.bf16.msra.mxu0 %v6135_v42  ;;  %v6195_v20 = vld [vmem:[#allocation8 + $0x424] ss:$16 sps:$4 sm:$0xff]   ;;  %v6199_v25 = vld [vmem:[#allocation8 + $0x440] ss:$16 sps:$4 sm:$0xff]  }
 0x179   : > { %2218 = vmatprep.subr.bf16.mxu1 %v6146_v44  ;;  %2177 = vmatprep.subr.bf16.mxu0 %v6143_v45  ;;  %v6204_v23 = vld [vmem:[#allocation8 + $0x644] ss:$16 sps:$4 sm:$0xff]   ;;  %v6202_v26 = vld [vmem:[#allocation8 + $0x640] ss:$16 sps:$4 sm:$0xff]  }
 0x17a   : > { %v6201_v24 = vld [vmem:[#allocation8 + $0x444] ss:$16 sps:$4 sm:$0xff]   ;;  %v6205_v29 = vld [vmem:[#allocation8 + $0x460] ss:$16 sps:$4 sm:$0xff]  }
 0x17b   : > { %v6210_v27 = vld [vmem:[#allocation8 + $0x664] ss:$16 sps:$4 sm:$0xff]   ;;  %v6208_v30 = vld [vmem:[#allocation8 + $0x660] ss:$16 sps:$4 sm:$0xff]  }
 0x17c   : > { %2219 = vmatpush1.bf16.msra.mxu1 %v6144_v47  ;;  %2178 = vmatpush1.bf16.msra.mxu0 %v6141_v46  ;;  %v6207_v28 = vld [vmem:[#allocation8 + $0x464] ss:$16 sps:$4 sm:$0xff]   ;;  %v6211_v33 = vld [vmem:[#allocation8 + $0x480] ss:$16 sps:$4 sm:$0xff]  }
 0x17d   : > { %2220 = vmatprep.subr.bf16.mxu1 %v6152_v48  ;;  %2179 = vmatprep.subr.bf16.mxu0 %v6149_v49  ;;  %v6216_v31 = vld [vmem:[#allocation8 + $0x684] ss:$16 sps:$4 sm:$0xff]   ;;  %v6214_v34 = vld [vmem:[#allocation8 + $0x680] ss:$16 sps:$4 sm:$0xff]   ;;  %v6241_v49 = vld [vmem:[#allocation8 + $0xc] ss:$16 sps:$4 sm:$0xff]  }
 0x17e   : > { %v6213_v32 = vld [vmem:[#allocation8 + $0x484] ss:$16 sps:$4 sm:$0xff]   ;;  %v6217_v37 = vld [vmem:[#allocation8 + $0x4a0] ss:$16 sps:$4 sm:$0xff]  }
 0x17f   : > { %v6222_v35 = vld [vmem:[#allocation8 + $0x6a4] ss:$16 sps:$4 sm:$0xff]   ;;  %v6220_v38 = vld [vmem:[#allocation8 + $0x6a0] ss:$16 sps:$4 sm:$0xff]  }
 0x180   : > { %2221 = vmatpush1.bf16.msra.mxu1 %v6150_v51  ;;  %2180 = vmatpush1.bf16.msra.mxu0 %v6147_v50  ;;  %v6219_v36 = vld [vmem:[#allocation8 + $0x4a4] ss:$16 sps:$4 sm:$0xff]   ;;  %v6226_v43 = vld [vmem:[#allocation8 + $0x6c0] ss:$16 sps:$4 sm:$0xff]  }
 0x181   : > { %2222 = vmatprep.subr.bf16.mxu1 %v6158_v52  ;;  %2181 = vmatprep.subr.bf16.mxu0 %v6155_v55  ;;  %v6228_v39 = vld [vmem:[#allocation8 + $0x6c4] ss:$16 sps:$4 sm:$0xff]   ;;  %v6223_v44 = vld [vmem:[#allocation8 + $0x4c0] ss:$16 sps:$4 sm:$0xff]   ;;  %v6239_v52 = vld [vmem:[#allocation8 + $0x8] ss:$16 sps:$4 sm:$0xff]  }
 0x182   : > { %v7749_v40 = vld [vmem:[%s7689_s7 + $0x10] sm:$0xff]  ;;  %v6238_v51 = vld [vmem:[%s7689_s7 + $0x18] ss:$0 sps:$4 sm:$0xff]  }
 0x183   : > { %v6225_v41 = vld [vmem:[#allocation8 + $0x4c4] ss:$16 sps:$4 sm:$0xff]   ;;  %v7753_v42 = vcombine.high %v7749_v40, %v7749_v40  ;;  %v6232_v47 = vld [vmem:[#allocation8 + $0x6e0] ss:$16 sps:$4 sm:$0xff]  }
 0x184   : > { %2223 = vmatpush1.bf16.msra.mxu1 %v6156_v58  ;;  %2182 = vmatpush1.bf16.msra.mxu0 %v6153_v59  ;;  %v6234_v45 = vld [vmem:[#allocation8 + $0x6e4] ss:$16 sps:$4 sm:$0xff]   ;;  %v6229_v48 = vld [vmem:[#allocation8 + $0x4e0] ss:$16 sps:$4 sm:$0xff]   ;;  %v6245_v58 = vld [vmem:[#allocation8 + $0x28] ss:$16 sps:$4 sm:$0xff]  }
 0x185   : > { %2224 = vmatprep.subr.bf16.mxu1 %v6164_v60  ;;  %2183 = vmatprep.subr.bf16.mxu0 %v6161_v61  ;;  %v6231_v46 = vld [vmem:[#allocation8 + $0x4e4] ss:$16 sps:$4 sm:$0xff]   ;;  %v6235_v53 = vld [vmem:[#allocation8 + $0x500] ss:$16 sps:$4 sm:$0xff]   ;;  %v6253_v60 = vld [vmem:[#allocation8 + $0x4c] ss:$16 sps:$4 sm:$0xff]  }
 0x186   : > { %v6237_v50 = vld [vmem:[#allocation8 + $0x504] ss:$16 sps:$4 sm:$0xff]   ;;  %v6242_v59 = vld [vmem:[#allocation8 + $0x520] ss:$16 sps:$4 sm:$0xff]  }
 0x187   : > { %v6244_v55 = vld [vmem:[#allocation8 + $0x524] ss:$16 sps:$4 sm:$0xff]  }
 0x188   : > { %2225 = vmatpush1.bf16.msra.mxu1 %v6162_v62  ;;  %2184 = vmatpush1.bf16.msra.mxu0 %v6159_v63  ;;  %v6250_v61 = vld [vmem:[#allocation8 + $0x544] ss:$16 sps:$4 sm:$0xff]   ;;  %v6251_v62 = vld [vmem:[#allocation8 + $0x48] ss:$16 sps:$4 sm:$0xff]   ;;  %v6248_v63 = vld [vmem:[#allocation8 + $0x540] ss:$16 sps:$4 sm:$0xff]  }
 0x189   : > { %2226 = vmatprep.subr.bf16.mxu1 %v6170_v1  ;;  %2185 = vmatprep.subr.bf16.mxu0 %v6167_v2  ;;  %v6259_v1 = vld [vmem:[#allocation8 + $0x6c] ss:$16 sps:$4 sm:$0xff]   ;;  %v6256_v2 = vld [vmem:[#allocation8 + $0x564] ss:$16 sps:$4 sm:$0xff]  }
 0x18c   : > { %2227 = vmatpush1.bf16.msra.mxu1 %v6168_v3  ;;  %2186 = vmatpush1.bf16.msra.mxu0 %v6165_v4  ;;  %v6257_v3 = vld [vmem:[#allocation8 + $0x68] ss:$16 sps:$4 sm:$0xff]   ;;  %v6254_v4 = vld [vmem:[#allocation8 + $0x560] ss:$16 sps:$4 sm:$0xff]  }
 0x18d   : > { %2228 = vmatprep.subr.bf16.mxu1 %v6176_v5  ;;  %2187 = vmatprep.subr.bf16.mxu0 %v6173_v6  ;;  %v6262_v5 = vld [vmem:[#allocation8 + $0x584] ss:$16 sps:$4 sm:$0xff]   ;;  %v6263_v6 = vld [vmem:[#allocation8 + $0x88] ss:$16 sps:$4 sm:$0xff]  }
 0x190   : > { %2229 = vmatpush1.bf16.msra.mxu1 %v6174_v7  ;;  %2188 = vmatpush1.bf16.msra.mxu0 %v6171_v8  ;;  %v6260_v7 = vld [vmem:[#allocation8 + $0x580] ss:$16 sps:$4 sm:$0xff]   ;;  %v6271_v8 = vld [vmem:[#allocation8 + $0xac] ss:$16 sps:$4 sm:$0xff]  }
 0x191   : > { %2230 = vmatprep.subr.bf16.mxu1 %v6182_v9  ;;  %2189 = vmatprep.subr.bf16.mxu0 %v6179_v10  ;;  %v6268_v9 = vld [vmem:[#allocation8 + $0x5a4] ss:$16 sps:$4 sm:$0xff]   ;;  %v6269_v10 = vld [vmem:[#allocation8 + $0xa8] ss:$16 sps:$4 sm:$0xff]  }
 0x194   : > { %2231 = vmatpush1.bf16.msra.mxu1 %v6180_v11  ;;  %2190 = vmatpush1.bf16.msra.mxu0 %v6177_v12  ;;  %v6266_v11 = vld [vmem:[#allocation8 + $0x5a0] ss:$16 sps:$4 sm:$0xff]   ;;  %v6277_v12 = vld [vmem:[#allocation8 + $0xcc] ss:$16 sps:$4 sm:$0xff]  }
 0x195   : > { %2282 = vmatprep.subr.bf16.mxu1 %v6192_v13  ;;  %2241 = vmatprep.subr.bf16.mxu0 %v6189_v14  ;;  %v6274_v13 = vld [vmem:[#allocation8 + $0x5c4] ss:$16 sps:$4 sm:$0xff]   ;;  %v6275_v14 = vld [vmem:[#allocation8 + $0xc8] ss:$16 sps:$4 sm:$0xff]  }
 0x197   : > { %2233 = vmatmul.mubr.bf16.vlgmr.msra.gmra.mrb[4].mxu1 %v7741_v15  ;;  %2192 = vmatmul.mubr.bf16.vlgmr.msra.gmra.mrb[4].mxu0 %v7743_v16 }
 0x198   : > { %2283 = vmatpush1.bf16.msra.mxu1 %v6190_v18  ;;  %2242 = vmatpush1.bf16.msra.mxu0 %v6187_v17  ;;  %v6272_v17 = vld [vmem:[#allocation8 + $0x5c0] ss:$16 sps:$4 sm:$0xff]   ;;  %v6283_v18 = vld [vmem:[#allocation8 + $0xec] ss:$16 sps:$4 sm:$0xff]  }
 0x199   : > { %2284 = vmatprep.subr.bf16.mxu1 %v6198_v19  ;;  %2243 = vmatprep.subr.bf16.mxu0 %v6195_v20  ;;  %v6280_v19 = vld [vmem:[#allocation8 + $0x5e4] ss:$16 sps:$4 sm:$0xff]   ;;  %v6281_v20 = vld [vmem:[#allocation8 + $0xe8] ss:$16 sps:$4 sm:$0xff]  }
 0x19a   : > { %2314 = vmatprep.mubr.bf16.mxu1 %v7266_v0  ;;  %2273 = vmatprep.mubr.bf16.mxu0 %v7753_v42 }
 0x19c   : > { %2285 = vmatpush1.bf16.msra.mxu1 %v6196_v22  ;;  %2244 = vmatpush1.bf16.msra.mxu0 %v6193_v21  ;;  %v6278_v21 = vld [vmem:[#allocation8 + $0x5e0] ss:$16 sps:$4 sm:$0xff]   ;;  %v6288_v22 = vld [vmem:[#allocation8 + $0x10c] ss:$16 sps:$4 sm:$0xff]  }
 0x19d   : > { %2286 = vmatprep.subr.bf16.mxu1 %v6204_v23  ;;  %2245 = vmatprep.subr.bf16.mxu0 %v6201_v24  ;;  %v6291_v23 = vld [vmem:[#allocation8 + $0x20c] ss:$16 sps:$4 sm:$0xff]   ;;  %v7760_v24 = vcombine.low %v7749_v40, %v7749_v40 }
 0x19e   : > { %v6315_v40 = vld [vmem:[#allocation8 + $0x28c] ss:$16 sps:$4 sm:$0xff]  }
 0x1a0   : > { %2287 = vmatpush1.bf16.msra.mxu1 %v6202_v26  ;;  %2246 = vmatpush1.bf16.msra.mxu0 %v6199_v25  ;;  %v6286_v25 = vld [vmem:[#allocation8 + $0x108] ss:$16 sps:$4 sm:$0xff]  }
 0x1a1   : > { %2288 = vmatprep.subr.bf16.mxu1 %v6210_v27  ;;  %2247 = vmatprep.subr.bf16.mxu0 %v6207_v28  ;;  %v6289_v26 = vld [vmem:[#allocation8 + $0x208] ss:$16 sps:$4 sm:$0xff]   ;;  %v6294_v27 = vld [vmem:[#allocation8 + $0x12c] ss:$16 sps:$4 sm:$0xff]  }
 0x1a2   : > { %v6297_v28 = vld [vmem:[#allocation8 + $0x22c] ss:$16 sps:$4 sm:$0xff]  }
 0x1a4   : > { %2289 = vmatpush1.bf16.msra.mxu1 %v6208_v30  ;;  %2248 = vmatpush1.bf16.msra.mxu0 %v6205_v29  ;;  %v6292_v29 = vld [vmem:[#allocation8 + $0x128] ss:$16 sps:$4 sm:$0xff]  }
 0x1a5   : > { %2290 = vmatprep.subr.bf16.mxu1 %v6216_v31  ;;  %2249 = vmatprep.subr.bf16.mxu0 %v6213_v32  ;;  %v6295_v30 = vld [vmem:[#allocation8 + $0x228] ss:$16 sps:$4 sm:$0xff]   ;;  %v6300_v31 = vld [vmem:[#allocation8 + $0x14c] ss:$16 sps:$4 sm:$0xff]  }
 0x1a6   : > { %v6303_v32 = vld [vmem:[#allocation8 + $0x24c] ss:$16 sps:$4 sm:$0xff]  }
 0x1a8   : > { %2291 = vmatpush1.bf16.msra.mxu1 %v6214_v34  ;;  %2250 = vmatpush1.bf16.msra.mxu0 %v6211_v33  ;;  %v6298_v33 = vld [vmem:[#allocation8 + $0x148] ss:$16 sps:$4 sm:$0xff]  }
 0x1a9   : > { %2292 = vmatprep.subr.bf16.mxu1 %v6222_v35  ;;  %2251 = vmatprep.subr.bf16.mxu0 %v6219_v36  ;;  %v6301_v34 = vld [vmem:[#allocation8 + $0x248] ss:$16 sps:$4 sm:$0xff]   ;;  %v6306_v35 = vld [vmem:[#allocation8 + $0x16c] ss:$16 sps:$4 sm:$0xff]  }
 0x1aa   : > { %v6309_v36 = vld [vmem:[#allocation8 + $0x26c] ss:$16 sps:$4 sm:$0xff]  }
 0x1ac   : > { %2293 = vmatpush1.bf16.msra.mxu1 %v6220_v38  ;;  %2252 = vmatpush1.bf16.msra.mxu0 %v6217_v37  ;;  %v6304_v37 = vld [vmem:[#allocation8 + $0x168] ss:$16 sps:$4 sm:$0xff]  }
 0x1ad   : > { %2294 = vmatprep.subr.bf16.mxu1 %v6228_v39  ;;  %2253 = vmatprep.subr.bf16.mxu0 %v6225_v41  ;;  %v6307_v38 = vld [vmem:[#allocation8 + $0x268] ss:$16 sps:$4 sm:$0xff]   ;;  %v6312_v39 = vld [vmem:[#allocation8 + $0x18c] ss:$16 sps:$4 sm:$0xff]  }
 0x1ae   : > { %v6310_v41 = vld [vmem:[#allocation8 + $0x188] ss:$16 sps:$4 sm:$0xff]  }
 0x1b0   : > { %2295 = vmatpush1.bf16.msra.mxu1 %v6226_v43  ;;  %2254 = vmatpush1.bf16.msra.mxu0 %v6223_v44  ;;  %v6318_v43 = vld [vmem:[#allocation8 + $0x1ac] ss:$16 sps:$4 sm:$0xff]  }
 0x1b1   : > { %2296 = vmatprep.subr.bf16.mxu1 %v6234_v45  ;;  %2255 = vmatprep.subr.bf16.mxu0 %v6231_v46  ;;  %v6321_v44 = vld [vmem:[#allocation8 + $0x2ac] ss:$16 sps:$4 sm:$0xff]   ;;  %v6316_v45 = vld [vmem:[#allocation8 + $0x1a8] ss:$16 sps:$4 sm:$0xff]  }
 0x1b2   : > { %v6319_v46 = vld [vmem:[#allocation8 + $0x2a8] ss:$16 sps:$4 sm:$0xff]  }
 0x1b4   : > { %2297 = vmatpush1.bf16.msra.mxu1 %v6232_v47  ;;  %2256 = vmatpush1.bf16.msra.mxu0 %v6229_v48  ;;  %v6324_v47 = vld [vmem:[#allocation8 + $0x1cc] ss:$16 sps:$4 sm:$0xff]  }
 0x1b5   : > { %2323 = vmatprep.subr.bf16.mxu1 %v6241_v49  ;;  %2257 = vmatprep.subr.bf16.mxu0 %v6237_v50  ;;  %v6327_v48 = vld [vmem:[#allocation8 + $0x2cc] ss:$16 sps:$4 sm:$0xff]   ;;  %v6322_v49 = vld [vmem:[#allocation8 + $0x1c8] ss:$16 sps:$4 sm:$0xff]  }
 0x1b6   : > { %v6325_v50 = vld [vmem:[#allocation8 + $0x2c8] ss:$16 sps:$4 sm:$0xff]  }
 0x1b7   : > { %2315 = vmatmul.mubr.bf16.vlgmr.msra.gmra.mrb[8].mxu1 %v6238_v51  ;;  %v6330_v51 = vld [vmem:[#allocation8 + $0x1ec] ss:$16 sps:$4 sm:$0xff]  }
 0x1b8   : > { %2324 = vmatpush1.bf16.msra.mxu1 %v6239_v52  ;;  %2355 = vmatprep.mubr.bf16.mxu1 %v7735_v56  ;;  %v6265_v56 = vld [vmem:[#allocation8 + $0x8c] ss:$16 sps:$4 sm:$0xff]  }
 0x1b9   : > { %2258 = vmatpush1.bf16.msra.mxu0 %v6235_v53  ;;  %2325 = vmatprep.subr.bf16.mxu1 %v6247_v54  ;;  %v6333_v52 = vld [vmem:[#allocation8 + $0x2ec] ss:$16 sps:$4 sm:$0xff]   ;;  %v6328_v53 = vld [vmem:[#allocation8 + $0x1e8] ss:$16 sps:$4 sm:$0xff]  }
 0x1ba   : > { %2259 = vmatprep.subr.bf16.mxu0 %v6244_v55  ;;  %v6331_v54 = vld [vmem:[#allocation8 + $0x2e8] ss:$16 sps:$4 sm:$0xff]   ;;  %v6339_v55 = vld [vmem:[#allocation8 + $0x40c] ss:$16 sps:$4 sm:$0xff]  }
 0x1bc   : > { %2326 = vmatpush1.bf16.msra.mxu1 %v6245_v58  ;;  %v6336_v58 = vld [vmem:[#allocation8 + $0x30c] ss:$16 sps:$4 sm:$0xff]  }
 0x1bd   : > { %2260 = vmatpush1.bf16.msra.mxu0 %v6242_v59  ;;  %2327 = vmatprep.subr.bf16.mxu1 %v6253_v60  ;;  %v6337_v59 = vld [vmem:[#allocation8 + $0x408] ss:$16 sps:$4 sm:$0xff]  }
 0x1be   : > { %2261 = vmatprep.subr.bf16.mxu0 %v6250_v61  ;;  %v6334_v60 = vld [vmem:[#allocation8 + $0x308] ss:$16 sps:$4 sm:$0xff]   ;;  %v6345_v61 = vld [vmem:[#allocation8 + $0x42c] ss:$16 sps:$4 sm:$0xff]  }
 0x1c0   : > { %2328 = vmatpush1.bf16.msra.mxu1 %v6251_v62  ;;  %v6342_v62 = vld [vmem:[#allocation8 + $0x32c] ss:$16 sps:$4 sm:$0xff]  }
 0x1c1   : > { %2262 = vmatpush1.bf16.msra.mxu0 %v6248_v63  ;;  %2329 = vmatprep.subr.bf16.mxu1 %v6259_v1  ;;  %v6343_v63 = vld [vmem:[#allocation8 + $0x428] ss:$16 sps:$4 sm:$0xff]  }
 0x1c2   : > { %2263 = vmatprep.subr.bf16.mxu0 %v6256_v2  ;;  %v6340_v1 = vld [vmem:[#allocation8 + $0x328] ss:$16 sps:$4 sm:$0xff]   ;;  %v6351_v2 = vld [vmem:[#allocation8 + $0x44c] ss:$16 sps:$4 sm:$0xff]  }
 0x1c4   : > { %2330 = vmatpush1.bf16.msra.mxu1 %v6257_v3  ;;  %v6348_v3 = vld [vmem:[#allocation8 + $0x34c] ss:$16 sps:$4 sm:$0xff]  }
 0x1c5   : > { %2264 = vmatpush1.bf16.msra.mxu0 %v6254_v4  ;;  %2331 = vmatprep.subr.bf16.mxu1 %v6265_v56  ;;  %v6349_v4 = vld [vmem:[#allocation8 + $0x448] ss:$16 sps:$4 sm:$0xff]  }
 0x1c6   : > { %2265 = vmatprep.subr.bf16.mxu0 %v6262_v5  ;;  %v6346_v56 = vld [vmem:[#allocation8 + $0x348] ss:$16 sps:$4 sm:$0xff]   ;;  %v6357_v5 = vld [vmem:[#allocation8 + $0x46c] ss:$16 sps:$4 sm:$0xff]  }
 0x1c8   : > { %2332 = vmatpush1.bf16.msra.mxu1 %v6263_v6  ;;  %v6354_v6 = vld [vmem:[#allocation8 + $0x36c] ss:$16 sps:$4 sm:$0xff]  }
 0x1c9   : > { %2266 = vmatpush1.bf16.msra.mxu0 %v6260_v7  ;;  %2333 = vmatprep.subr.bf16.mxu1 %v6271_v8  ;;  %v6355_v7 = vld [vmem:[#allocation8 + $0x468] ss:$16 sps:$4 sm:$0xff]  }
 0x1ca   : > { %2267 = vmatprep.subr.bf16.mxu0 %v6268_v9  ;;  %v6352_v8 = vld [vmem:[#allocation8 + $0x368] ss:$16 sps:$4 sm:$0xff]   ;;  %v6360_v9 = vld [vmem:[#allocation8 + $0x38c] ss:$16 sps:$4 sm:$0xff]  }
 0x1cc   : > { %2334 = vmatpush1.bf16.msra.mxu1 %v6269_v10  ;;  %v6358_v10 = vld [vmem:[#allocation8 + $0x388] ss:$16 sps:$4 sm:$0xff]  }
 0x1cd   : > { %2268 = vmatpush1.bf16.msra.mxu0 %v6266_v11  ;;  %2335 = vmatprep.subr.bf16.mxu1 %v6277_v12  ;;  %v6369_v11 = vld [vmem:[#allocation8 + $0x4ac] ss:$16 sps:$4 sm:$0xff]  }
 0x1ce   : > { %2269 = vmatprep.subr.bf16.mxu0 %v6274_v13  ;;  %v6366_v12 = vld [vmem:[#allocation8 + $0x3ac] ss:$16 sps:$4 sm:$0xff]   ;;  %v6367_v13 = vld [vmem:[#allocation8 + $0x4a8] ss:$16 sps:$4 sm:$0xff]  }
 0x1d0   : > { %2336 = vmatpush1.bf16.msra.mxu1 %v6275_v14  ;;  %v6364_v14 = vld [vmem:[#allocation8 + $0x3a8] ss:$16 sps:$4 sm:$0xff]  }
 0x1d1   : > { %2270 = vmatpush1.bf16.msra.mxu0 %v6272_v17  ;;  %2337 = vmatprep.subr.bf16.mxu1 %v6283_v18  ;;  %v6375_v17 = vld [vmem:[#allocation8 + $0x4cc] ss:$16 sps:$4 sm:$0xff]  }
 0x1d2   : > { %2271 = vmatprep.subr.bf16.mxu0 %v6280_v19  ;;  %v6372_v18 = vld [vmem:[#allocation8 + $0x3cc] ss:$16 sps:$4 sm:$0xff]   ;;  %v6373_v19 = vld [vmem:[#allocation8 + $0x4c8] ss:$16 sps:$4 sm:$0xff]  }
 0x1d4   : > { %2338 = vmatpush1.bf16.msra.mxu1 %v6281_v20  ;;  %v6370_v20 = vld [vmem:[#allocation8 + $0x3c8] ss:$16 sps:$4 sm:$0xff]  }
 0x1d5   : > { %2272 = vmatpush1.bf16.msra.mxu0 %v6278_v21  ;;  %2339 = vmatprep.subr.bf16.mxu1 %v6288_v22  ;;  %v6381_v21 = vld [vmem:[#allocation8 + $0x4ec] ss:$16 sps:$4 sm:$0xff]  }
 0x1d6   : > { %2364 = vmatprep.subr.bf16.mxu0 %v6291_v23  ;;  %v6378_v22 = vld [vmem:[#allocation8 + $0x3ec] ss:$16 sps:$4 sm:$0xff]   ;;  %v6376_v23 = vld [vmem:[#allocation8 + $0x3e8] ss:$16 sps:$4 sm:$0xff]  }
 0x1d8   : > { %2274 = vmatmul.mubr.bf16.vlgmr.msra.gmra.mrb[8].mxu0 %v7760_v24  ;;  %2340 = vmatpush1.bf16.msra.mxu1 %v6286_v25  ;;  %v6379_v25 = vld [vmem:[#allocation8 + $0x4e8] ss:$16 sps:$4 sm:$0xff]  }
 0x1d9   : > { %2365 = vmatpush1.bf16.msra.mxu0 %v6289_v26  ;;  %2341 = vmatprep.subr.bf16.mxu1 %v6294_v27  ;;  %v6384_v26 = vld [vmem:[#allocation8 + $0x50c] ss:$16 sps:$4 sm:$0xff]   ;;  %v6430_v27 = vld [vmem:[#allocation13 + $0x40] sm:$0xff]  }
 0x1da   : > { %2366 = vmatprep.subr.bf16.mxu0 %v6297_v28  ;;  %2396 = vmatprep.mubr.bf16.mxu0 %v7737_v57  ;;  %v6313_v57 = vld [vmem:[#allocation8 + $0x288] ss:$16 sps:$4 sm:$0xff]  }
 0x1db   : > { %v6382_v28 = vld [vmem:[#allocation8 + $0x508] ss:$16 sps:$4 sm:$0xff]  }
 0x1dc   : > { %2342 = vmatpush1.bf16.msra.mxu1 %v6292_v29  ;;  %v6387_v29 = vld [vmem:[#allocation8 + $0x52c] ss:$16 sps:$4 sm:$0xff]  }
 0x1dd   : > { %2367 = vmatpush1.bf16.msra.mxu0 %v6295_v30  ;;  %2343 = vmatprep.subr.bf16.mxu1 %v6300_v31  ;;  %v6431_v30 = vld [vmem:[#allocation13] sm:$0xff]   ;;  %v6432_v31 = vld [vmem:[#allocation13 + $0x48] sm:$0xff]  }
 0x1de   : > { %2368 = vmatprep.subr.bf16.mxu0 %v6303_v32  ;;  %v6385_v32 = vld [vmem:[#allocation8 + $0x528] ss:$16 sps:$4 sm:$0xff]  }
 0x1e0   : > { %2344 = vmatpush1.bf16.msra.mxu1 %v6298_v33  ;;  %v6390_v33 = vld [vmem:[#allocation8 + $0x54c] ss:$16 sps:$4 sm:$0xff]  }
 0x1e1   : > { %2369 = vmatpush1.bf16.msra.mxu0 %v6301_v34  ;;  %2345 = vmatprep.subr.bf16.mxu1 %v6306_v35  ;;  %v6433_v34 = vld [vmem:[#allocation13 + $0x8] sm:$0xff]   ;;  %v6434_v35 = vld [vmem:[#allocation13 + $0x50] sm:$0xff]  }
 0x1e2   : > { %2370 = vmatprep.subr.bf16.mxu0 %v6309_v36  ;;  %v6388_v36 = vld [vmem:[#allocation8 + $0x548] ss:$16 sps:$4 sm:$0xff]  }
 0x1e4   : > { %2346 = vmatpush1.bf16.msra.mxu1 %v6304_v37  ;;  %v6393_v37 = vld [vmem:[#allocation8 + $0x56c] ss:$16 sps:$4 sm:$0xff]  }
 0x1e5   : > { %2371 = vmatpush1.bf16.msra.mxu0 %v6307_v38  ;;  %2347 = vmatprep.subr.bf16.mxu1 %v6312_v39  ;;  %v6435_v38 = vld [vmem:[#allocation13 + $0x10] sm:$0xff]   ;;  %v6436_v39 = vld [vmem:[#allocation13 + $0x58] sm:$0xff]  }
 0x1e6   : > { %2372 = vmatprep.subr.bf16.mxu0 %v6315_v40  ;;  %v6391_v40 = vld [vmem:[#allocation8 + $0x568] ss:$16 sps:$4 sm:$0xff]  }
 0x1e8   : > { %2348 = vmatpush1.bf16.msra.mxu1 %v6310_v41  ;;  %v6396_v41 = vld [vmem:[#allocation8 + $0x58c] ss:$16 sps:$4 sm:$0xff]  }
 0x1e9   : > { %2373 = vmatpush1.bf16.msra.mxu0 %v6313_v57  ;;  %2349 = vmatprep.subr.bf16.mxu1 %v6318_v43  ;;  %v6437_v57 = vld [vmem:[#allocation13 + $0x18] sm:$0xff]   ;;  %v6438_v43 = vld [vmem:[#allocation13 + $0x60] sm:$0xff]  }
 0x1ea   : > { %2374 = vmatprep.subr.bf16.mxu0 %v6321_v44  ;;  %v6399_v44 = vld [vmem:[#allocation8 + $0x5ac] ss:$16 sps:$4 sm:$0xff]  }
 0x1ec   : > { %2350 = vmatpush1.bf16.msra.mxu1 %v6316_v45  ;;  %v6439_v45 = vld [vmem:[#allocation13 + $0x20] sm:$0xff]  }
 0x1ed   : > { %2375 = vmatpush1.bf16.msra.mxu0 %v6319_v46  ;;  %2351 = vmatprep.subr.bf16.mxu1 %v6324_v47  ;;  %v6397_v46 = vld [vmem:[#allocation8 + $0x5a8] ss:$16 sps:$4 sm:$0xff]   ;;  %v6402_v47 = vld [vmem:[#allocation8 + $0x5cc] ss:$16 sps:$4 sm:$0xff]  }
 0x1ee   : > { %2376 = vmatprep.subr.bf16.mxu0 %v6327_v48 }
 0x1f0   : > { %2352 = vmatpush1.bf16.msra.mxu1 %v6322_v49  ;;  %v6400_v49 = vld [vmem:[#allocation8 + $0x5c8] ss:$16 sps:$4 sm:$0xff]  }
 0x1f1   : > { %2377 = vmatpush1.bf16.msra.mxu0 %v6325_v50  ;;  %2353 = vmatprep.subr.bf16.mxu1 %v6330_v51  ;;  %v6440_v50 = vld [vmem:[#allocation13 + $0x68] sm:$0xff]  }
 0x1f2   : > { %2378 = vmatprep.subr.bf16.mxu0 %v6333_v52 }
 0x1f4   : > { %2354 = vmatpush1.bf16.msra.mxu1 %v6328_v53  ;;  %v6441_v53 = vld [vmem:[#allocation13 + $0x28] sm:$0xff]  }
 0x1f5   : > { %2379 = vmatpush1.bf16.msra.mxu0 %v6331_v54  ;;  %2405 = vmatprep.subr.bf16.mxu1 %v6339_v55 }
 0x1f6   : > { %2380 = vmatprep.subr.bf16.mxu0 %v6336_v58 }
 0x1f7   : > { %2356 = vmatmul.mubr.bf16.vlgmr.msra.gmra.mrb[12].mxu1 %v7743_v16  ;;  %v6363_v16 = vld [vmem:[#allocation8 + $0x48c] ss:$16 sps:$4 sm:$0xff]  }
 0x1f8   : > { %2406 = vmatpush1.bf16.msra.mxu1 %v6337_v59  ;;  %2437 = vmatprep.mubr.bf16.mxu1 %v7753_v42  ;;  %v6361_v42 = vld [vmem:[#allocation8 + $0x488] ss:$16 sps:$4 sm:$0xff]   ;;  %v6405_v59 = vld [vmem:[#allocation8 + $0x5ec] ss:$16 sps:$4 sm:$0xff]  }
 0x1f9   : > { %2381 = vmatpush1.bf16.msra.mxu0 %v6334_v60  ;;  %2407 = vmatprep.subr.bf16.mxu1 %v6345_v61  ;;  %v6403_v61 = vld [vmem:[#allocation8 + $0x5e8] ss:$16 sps:$4 sm:$0xff]  }
 0x1fa   : > { %2382 = vmatprep.subr.bf16.mxu0 %v6342_v62 }
 0x1fc   : > { %2408 = vmatpush1.bf16.msra.mxu1 %v6343_v63  ;;  %v6442_v63 = vld [vmem:[#allocation13 + $0x70] sm:$0xff]  }
 0x1fd   : > { %2383 = vmatpush1.bf16.msra.mxu0 %v6340_v1  ;;  %2409 = vmatprep.subr.bf16.mxu1 %v6351_v2  ;;  %v6408_v1 = vld [vmem:[#allocation8 + $0x60c] ss:$16 sps:$4 sm:$0xff]   ;;  %v6443_v2 = vld [vmem:[#allocation13 + $0x30] sm:$0xff]  }
 0x1fe   : > { %2384 = vmatprep.subr.bf16.mxu0 %v6348_v3  ;;  %v6406_v3 = vld [vmem:[#allocation8 + $0x608] ss:$16 sps:$4 sm:$0xff]  }
 0x200   : > { %2410 = vmatpush1.bf16.msra.mxu1 %v6349_v4  ;;  %v6444_v4 = vld [vmem:[#allocation13 + $0x78] sm:$0xff]  }
 0x201   : > { %2385 = vmatpush1.bf16.msra.mxu0 %v6346_v56  ;;  %2411 = vmatprep.subr.bf16.mxu1 %v6357_v5  ;;  %v6411_v56 = vld [vmem:[#allocation8 + $0x62c] ss:$16 sps:$4 sm:$0xff]  }
 0x202   : > { %2386 = vmatprep.subr.bf16.mxu0 %v6354_v6  ;;  %v6445_v5 = vld [vmem:[#allocation13 + $0x38] sm:$0xff]   ;;  %v6409_v6 = vld [vmem:[#allocation8 + $0x628] ss:$16 sps:$4 sm:$0xff]  }
 0x204   : > { %2412 = vmatpush1.bf16.msra.mxu1 %v6355_v7  ;;  %v6414_v7 = vld [vmem:[#allocation8 + $0x64c] ss:$16 sps:$4 sm:$0xff]  }
 0x205   : > { %2387 = vmatpush1.bf16.msra.mxu0 %v6352_v8  ;;  %2413 = vmatprep.subr.bf16.mxu1 %v6363_v16  ;;  %v6412_v8 = vld [vmem:[#allocation8 + $0x648] ss:$16 sps:$4 sm:$0xff]   ;;  %v6417_v16 = vld [vmem:[#allocation8 + $0x66c] ss:$16 sps:$4 sm:$0xff]  }
 0x206   : > { %2388 = vmatprep.subr.bf16.mxu0 %v6360_v9  ;;  %v6415_v9 = vld [vmem:[#allocation8 + $0x668] ss:$16 sps:$4 sm:$0xff]  }
 0x208   : > { %2414 = vmatpush1.bf16.msra.mxu1 %v6361_v42  ;;  %v6420_v42 = vld [vmem:[#allocation8 + $0x68c] ss:$16 sps:$4 sm:$0xff]  }
 0x209   : > { %2389 = vmatpush1.bf16.msra.mxu0 %v6358_v10  ;;  %2415 = vmatprep.subr.bf16.mxu1 %v6369_v11  ;;  %v6418_v10 = vld [vmem:[#allocation8 + $0x688] ss:$16 sps:$4 sm:$0xff]   ;;  %v6423_v11 = vld [vmem:[#allocation8 + $0x6ac] ss:$16 sps:$4 sm:$0xff]  }
 0x20a   : > { %2390 = vmatprep.subr.bf16.mxu0 %v6366_v12  ;;  %v6421_v12 = vld [vmem:[#allocation8 + $0x6a8] ss:$16 sps:$4 sm:$0xff]  }
 0x20c   : > { %2416 = vmatpush1.bf16.msra.mxu1 %v6367_v13  ;;  %v6424_v13 = vld [vmem:[#allocation8 + $0x6c8] ss:$16 sps:$4 sm:$0xff]  }
 0x20d   : > { %2391 = vmatpush1.bf16.msra.mxu0 %v6364_v14  ;;  %2417 = vmatprep.subr.bf16.mxu1 %v6375_v17  ;;  %v6429_v14 = vld [vmem:[#allocation8 + $0x6ec] ss:$16 sps:$4 sm:$0xff]   ;;  %v6427_v17 = vld [vmem:[#allocation8 + $0x6e8] ss:$16 sps:$4 sm:$0xff]  }
 0x20e   : > { %2392 = vmatprep.subr.bf16.mxu0 %v6372_v18  ;;  %v6842_v18 = vld [vmem:[%s7689_s7 + $0x18] ss:$0 sps:$4 sm:$0xff]  }
 0x210   : > { %2418 = vmatpush1.bf16.msra.mxu1 %v6373_v19 }
 0x211   : > { %2393 = vmatpush1.bf16.msra.mxu0 %v6370_v20  ;;  %2419 = vmatprep.subr.bf16.mxu1 %v6381_v21 }
 0x212   : > { %2394 = vmatprep.subr.bf16.mxu0 %v6378_v22 }
 0x214   : > { %2420 = vmatpush1.bf16.msra.mxu1 %v6379_v25 }
 0x215   : > { %2395 = vmatpush1.bf16.msra.mxu0 %v6376_v23  ;;  %2421 = vmatprep.subr.bf16.mxu1 %v6384_v26 }
 0x216   : > { %5830 = vmatprep.subr.bf16.mxu0 %v6430_v27 }
 0x218   : > { %2397 = vmatmul.mubr.bf16.vlgmr.msra.gmra.mrb[12].mxu0 %v7741_v15  ;;  %2422 = vmatpush1.bf16.msra.mxu1 %v6382_v28  ;;  %v6394_v15 = vld [vmem:[#allocation8 + $0x588] ss:$16 sps:$4 sm:$0xff]  }
 0x219   : > { %2423 = vmatprep.subr.bf16.mxu1 %v6387_v29  ;;  %5831 = vmatpush3.bf16.msra.mxu0 %v6431_v30 }
 0x21a   : > { %5832 = vmatprep.subr.bf16.mxu0 %v6432_v31 }
 0x21c   : > { %2424 = vmatpush1.bf16.msra.mxu1 %v6385_v32 }
 0x21d   : > { %2425 = vmatprep.subr.bf16.mxu1 %v6390_v33  ;;  %5833 = vmatpush3.bf16.msra.mxu0 %v6433_v34 }
 0x21e   : > { %5834 = vmatprep.subr.bf16.mxu0 %v6434_v35 }
 0x220   : > { %2426 = vmatpush1.bf16.msra.mxu1 %v6388_v36  ;;  %v6446_v36 = vld [vmem:[#allocation13 + $0xc0] sm:$0xff]  }
 0x221   : > { %2427 = vmatprep.subr.bf16.mxu1 %v6393_v37  ;;  %5835 = vmatpush3.bf16.msra.mxu0 %v6435_v38  ;;  %v6447_v37 = vld [vmem:[#allocation13 + $0x80] sm:$0xff]   ;;  %v6448_v38 = vld [vmem:[#allocation13 + $0xc8] sm:$0xff]  }
 0x222   : > { %5836 = vmatprep.subr.bf16.mxu0 %v6436_v39  ;;  %v6449_v39 = vld [vmem:[#allocation13 + $0x88] sm:$0xff]  }
 0x224   : > { %2428 = vmatpush1.bf16.msra.mxu1 %v6391_v40  ;;  %v6450_v40 = vld [vmem:[#allocation13 + $0xd0] sm:$0xff]  }
 0x225   : > { %2429 = vmatprep.subr.bf16.mxu1 %v6396_v41  ;;  %5837 = vmatpush3.bf16.msra.mxu0 %v6437_v57  ;;  %v6451_v41 = vld [vmem:[#allocation13 + $0x90] sm:$0xff]   ;;  %v6452_v57 = vld [vmem:[#allocation13 + $0xd8] sm:$0xff]  }
 0x226   : > { %5838 = vmatprep.subr.bf16.mxu0 %v6438_v43  ;;  %v6453_v43 = vld [vmem:[#allocation13 + $0x98] sm:$0xff]  }
 0x228   : > { %2430 = vmatpush1.bf16.msra.mxu1 %v6394_v15  ;;  %v6454_v15 = vld [vmem:[#allocation13 + $0xe0] sm:$0xff]  }
 0x229   : > { %2431 = vmatprep.subr.bf16.mxu1 %v6399_v44  ;;  %5839 = vmatpush3.bf16.msra.mxu0 %v6439_v45  ;;  %v6455_v44 = vld [vmem:[#allocation13 + $0xa0] sm:$0xff]   ;;  %v6456_v45 = vld [vmem:[#allocation13 + $0xe8] sm:$0xff]  }
 0x22a   : > { %v7767_v48 = vpop.f32.mrb[0].mxu1  ;;  %v7771_v52 = vpop.f32.mrb[0].mxu0  ;;  %5840 = vmatprep.subr.bf16.mxu0 %v6440_v50  ;;  %v2487_v50 = vld [vmem:[#allocation11] sm:$0xf] }
 0x22b   : > { %v7769_v51 = vpop.f32.mrb[1].mxu1  ;;  %v968_v55 = vpop.f32.mrb[1].mxu0 }
 0x22c   : > { %v1011_v54 = vpop.f32.mrb[2].mxu1  ;;  %2432 = vmatpush1.bf16.msra.mxu1 %v6397_v46  ;;  %v970_v60 = vpop.f32.mrb[2].mxu0  ;;  %v2489_v46 = vlaneseq }
 0x22d   : > { %v1012_v58 = vpop.f32.mrb[3].mxu1  ;;  %2433 = vmatprep.subr.bf16.mxu1 %v6402_v47  ;;  %5841 = vmatpush3.bf16.msra.mxu0 %v6441_v53  ;;  %v971_v62 = vpop.f32.mrb[3].mxu0  ;;  %v6457_v53 = vld [vmem:[#allocation13 + $0xa8] sm:$0xff]   ;;  %v6458_v60 = vld [vmem:[#allocation13 + $0xf0] sm:$0xff]  }
 0x22e   : > { %5842 = vmatprep.subr.bf16.mxu0 %v6442_v63  ;;  %v7777_v47 = vshrl.u32 %v2489_v46, 7 }
 0x230   : > { %2434 = vmatpush1.bf16.msra.mxu1 %v6400_v49  ;;  %v7780_v49 = vsub.s32 0, %v7777_v47 }
 0x231   : > { %2435 = vmatprep.subr.bf16.mxu1 %v6405_v59  ;;  %5843 = vmatpush3.bf16.msra.mxu0 %v6443_v2 }
 0x232   : > { %5844 = vmatprep.subr.bf16.mxu0 %v6444_v4  ;;  %v2492_v58 = vrot.slane %v2487_v50, %v7780_v49 }
 0x234   : > { %2436 = vmatpush1.bf16.msra.mxu1 %v6403_v61 }
 0x235   : > { %2446 = vmatprep.subr.bf16.mxu1 %v6408_v1  ;;  %5845 = vmatpush3.bf16.msra.mxu0 %v6445_v5  ;;  %v6459_v1 = vld [vmem:[#allocation13 + $0xb0] sm:$0xff]   ;;  %v6460_v5 = vld [vmem:[#allocation13 + $0xf8] sm:$0xff]  }
 0x237   : > { %2438 = vmatmul.mubr.bf16.vlgmr.msra.gmra.mrb[16].mxu1 %v7760_v24  ;;  %v6426_v24 = vld [vmem:[#allocation8 + $0x6cc] ss:$16 sps:$4 sm:$0xff]  }
 0x238   : > { %2447 = vmatpush1.bf16.msra.mxu1 %v6406_v3  ;;  %2478 = vmatprep.mubr.bf16.mxu1 %v7266_v0 }
 0x239   : > { %2448 = vmatprep.subr.bf16.mxu1 %v6411_v56 }
 0x23c   : > { %2449 = vmatpush1.bf16.msra.mxu1 %v6409_v6 }
 0x23d   : > { %2450 = vmatprep.subr.bf16.mxu1 %v6414_v7  ;;  %v6461_v7 = vld [vmem:[#allocation13 + $0xb8] sm:$0xff]  }
 0x240   : > { %2451 = vmatpush1.bf16.msra.mxu1 %v6412_v8 }
 0x241   : > { %2452 = vmatprep.subr.bf16.mxu1 %v6417_v16 }
 0x244   : > { %2453 = vmatpush1.bf16.msra.mxu1 %v6415_v9 }
 0x245   : > { %2454 = vmatprep.subr.bf16.mxu1 %v6420_v42 }
 0x248   : > { %2455 = vmatpush1.bf16.msra.mxu1 %v6418_v10 }
 0x249   : > { %2456 = vmatprep.subr.bf16.mxu1 %v6423_v11 }
 0x24c   : > { %2457 = vmatpush1.bf16.msra.mxu1 %v6421_v12 }
 0x24d   : > { %2458 = vmatprep.subr.bf16.mxu1 %v6426_v24 }
 0x250   : > { %2459 = vmatpush1.bf16.msra.mxu1 %v6424_v13 }
 0x251   : > { %2460 = vmatprep.subr.bf16.mxu1 %v6429_v14 }
 0x254   : > { %2461 = vmatpush1.bf16.msra.mxu1 %v6427_v17 }
 0x255   : > { %5852 = vmatprep.subr.bf16.mxu1 %v6446_v36 }
 0x257   : > { %2479 = vmatmul.mubr.bf16.vlgmr.msra.gmra.mrb[20].mxu1 %v6842_v18 }
 0x258   : > { %5853 = vmatpush3.bf16.msra.mxu1 %v6447_v37 }
 0x259   : > { %5854 = vmatprep.subr.bf16.mxu1 %v6448_v38 }
 0x25c   : > { %5855 = vmatpush3.bf16.msra.mxu1 %v6449_v39 }
 0x25d   : > { %5856 = vmatprep.subr.bf16.mxu1 %v6450_v40 }
 0x260   : > { %5857 = vmatpush3.bf16.msra.mxu1 %v6451_v41 }
 0x261   : > { %5858 = vmatprep.subr.bf16.mxu1 %v6452_v57 }
 0x264   : > { %5859 = vmatpush3.bf16.msra.mxu1 %v6453_v43 }
 0x265   : > { %5860 = vmatprep.subr.bf16.mxu1 %v6454_v15 }
 0x268   : > { %5861 = vmatpush3.bf16.msra.mxu1 %v6455_v44 }
 0x269   : > { %5862 = vmatprep.subr.bf16.mxu1 %v6456_v45 }
 0x26a   : > { %v2234_v19 = vpop.f32.mrb[4].mxu1  ;;  %v2193_v20 = vpop.f32.mrb[4].mxu0 }
 0x26b   : > { %v2236_v21 = vpop.f32.mrb[5].mxu1  ;;  %v2194_v22 = vadd.f32 %v2193_v20, %v7771_v52  ;;  %v2195_v23 = vpop.f32.mrb[5].mxu0  ;;  %v7783_v52 = vsub.s32 1, %v7777_v47 }
 0x26c   : > { %v2238_v25 = vpop.f32.mrb[6].mxu1  ;;  %v2196_v26 = vadd.f32 %v2195_v23, %v968_v55  ;;  %v2197_v28 = vpop.f32.mrb[6].mxu0  ;;  %5863 = vmatpush3.bf16.msra.mxu1 %v6457_v53  ;;  %v6462_v53 = vld [vmem:[%s8069_s8 + $0x4] ss:$16 sps:$4 sm:$0x1f]  }
 0x26d   : > { %v2239_v27 = vpop.f32.mrb[7].mxu1  ;;  %v2235_v29 = vadd.f32 %v2234_v19, %v2194_v22  ;;  %v2198_v30 = vpop.f32.mrb[7].mxu0  ;;  %v2496_v62 = vrot.slane %v2487_v50, %v7783_v52  ;;  %5864 = vmatprep.subr.bf16.mxu1 %v6458_v60  ;;  %5572 = vmatprep.subr.msk.bf16.mxu0 %vm919_vm0, %v6462_v53  ;;  %v6470_v60 = vld [vmem:[#allocation14 + $0x4] ss:$16 sps:$4 sm:$0xff]   ;;  %v6512_v53 = vld [vmem:[#allocation17 + $0xac] ss:$28 sps:$4 sm:$0xff]  }
 0x26e   : > { %v2237_v31 = vadd.f32 %v2236_v21, %v2196_v26  ;;  %v7791_v30 = vsub.s32 2, %v7777_v47 }
 0x270   : > { %5865 = vmatpush3.bf16.msra.mxu1 %v6459_v1  ;;  %v6471_v1 = vld [vmem:[#allocation14 + $0x8] ss:$16 sps:$4 sm:$0xff]  }
 0x271   : > { %5866 = vmatprep.subr.bf16.mxu1 %v6460_v5  ;;  %v6477_v5 = vld [vmem:[#allocation14 + $0x28] ss:$16 sps:$4 sm:$0xff]  }
 0x274   : > { %5867 = vmatpush3.bf16.msra.mxu1 %v6461_v7  ;;  %v6485_v7 = vld [vmem:[#allocation14 + $0x4c] ss:$16 sps:$4 sm:$0xff]  }
 0x28a   : > { %v2316_v32 = vpop.f32.mrb[8].mxu1 }
 0x28b   : > { %v2318_v33 = vpop.f32.mrb[9].mxu1 }
 0x28c   : > { %v2320_v34 = vpop.f32.mrb[10].mxu1 }
 0x28d   : > { %v2321_v35 = vpop.f32.mrb[11].mxu1 }
 0x2ab   : > { %v2275_v54 = vpop.f32.mrb[8].mxu0 }
 0x2ac   : > { %v2276_v55 = vadd.f32 %v2275_v54, %v2235_v29  ;;  %v2277_v59 = vpop.f32.mrb[9].mxu0  ;;  %v6464_v54 = vld [vmem:[%s8069_s8] ss:$16 sps:$4 sm:$0x1f]  }
 0x2ad   : > { %v2278_v61 = vadd.f32 %v2277_v59, %v2237_v31  ;;  %v2279_v63 = vpop.f32.mrb[10].mxu0  ;;  %v2911_v59 = vsel %vm919_vm0, %v6464_v54, 0  ;;  %v6515_v54 = vld [vmem:[#allocation17 + $0xb4] ss:$28 sps:$4 sm:$0xff]  }
 0x2ae   : > { %v2317_v2 = vadd.f32 %v2316_v32, %v2276_v55  ;;  %v2280_v3 = vpop.f32.mrb[11].mxu0  ;;  %v6465_v55 = vld [vmem:[%s8069_s8 + $0xc] ss:$16 sps:$4 sm:$0x1f]   ;;  %v6473_v63 = vld [vmem:[#allocation14 + $0xc] ss:$16 sps:$4 sm:$0xff]  }
 0x2af   : > { %v2319_v4 = vadd.f32 %v2318_v33, %v2278_v61  ;;  %5574 = vmatprep.subr.msk.bf16.mxu1 %vm919_vm0, %v6465_v55  ;;  %v6479_v3 = vld [vmem:[#allocation14 + $0x2c] ss:$16 sps:$4 sm:$0xff]  }
 0x2b0   : > { %v2509_v56 = vadd.f32 %v2492_v58, %v2317_v2  ;;  %v6467_v58 = vld [vmem:[%s8069_s8 + $0x8] ss:$16 sps:$4 sm:$0x1f]   ;;  %v6510_v55 = vld [vmem:[#allocation17 + $0xa8] ss:$28 sps:$4 sm:$0xff]  }
 0x2b1   : > { %v2510_v6 = vadd.f32 %v2496_v62, %v2319_v4  ;;  %v2917_v61 = vsel %vm919_vm0, %v6467_v58, 0  ;;  %v6468_v62 = vld [vmem:[#allocation14] ss:$16 sps:$4 sm:$0xff]   ;;  %v6476_v2 = vld [vmem:[#allocation14 + $0x24] ss:$16 sps:$4 sm:$0xff]  }
 0x2b2   : > { %v2513_v8 = vmax.f32 %v2509_v56, 0.0  ;;  %v6843_v4 = vld [vmem:[%s7697_s29] sm:$0xf]  ;;  %v6474_v56 = vld [vmem:[#allocation14 + $0x20] ss:$16 sps:$4 sm:$0xff]   ;;  %s8072_s29 = sld [smem:[#allocation35_spill]] }
 0x2b3   : > { %v2514_v16 = vmax.f32 %v2510_v6, 0.0  ;;  %v6482_v6 = vld [vmem:[#allocation14 + $0x44] ss:$16 sps:$4 sm:$0xff]  }
 0x2b4   : > { %v2517_v42 = vpack.c.bf16 %v2513_v8, %v2513_v8  ;;  %v6480_v8 = vld [vmem:[#allocation14 + $0x40] ss:$16 sps:$4 sm:$0xff]  }
 0x2b5   : > { %v2518_v9 = vpack.c.bf16 %v2514_v16, %v2514_v16  ;;  %v6483_v16 = vld [vmem:[#allocation14 + $0x48] ss:$16 sps:$4 sm:$0xff]   ;;  %v6513_v58 = vld [vmem:[#allocation17 + $0xb0] ss:$28 sps:$4 sm:$0xff]  }
 0x2b7   : > { %2816 = vmatprep.mubr.bf16.mxu0 %v2518_v9  ;;  %v5535_v9 = vld [vmem:[%s8070_s13] ss:$0 sm:$0xff] }
 0x2b8   : > { %2817 = vmatmul.mubr.bf16.vlgmr.msra.gmra.mrb[16].mxu0 %v2517_v42  ;;  %p8074_p4 = scmp.ne.s32.totalorder %s8072_s29, 0 }
 0x2b9   : > { %2954 = vmatprep.mubr.bf16.mxu0 %v7266_v0  ;;  %2923 = vmatpush1.bf16.msra.mxu0 %v2911_v59  ;;  %v6518_v59 = vld [vmem:[#allocation17 + $0xe4] ss:$28 sps:$4 sm:$0xff]  }
 0x2ba   : > { %3088 = vmatprep.subr.bf16.mxu0 %v6470_v60  ;;  %v6521_v60 = vld [vmem:[#allocation17 + $0xec] ss:$28 sps:$4 sm:$0xff]  }
 0x2c0   : > { %5573 = vmatmul.mubr.msk.bf16.vlgmr.msra.gmra.mrb[20].mxu0 %vm915_vm1, %v6843_v4 }
 0x2c1   : > { %3089 = vmatpush1.bf16.msra.mxu0 %v6468_v62  ;;  %3120 = vmatprep.mubr.bf16.mxu0 %v7266_v0  ;;  %v6519_v62 = vld [vmem:[#allocation17 + $0xe8] ss:$28 sps:$4 sm:$0xff]  }
 0x2c2   : > { %3090 = vmatprep.subr.bf16.mxu0 %v6476_v2  ;;  %v6522_v2 = vld [vmem:[#allocation17 + $0x118] ss:$28 sps:$4 sm:$0xff]  }
 0x2c5   : > { %3091 = vmatpush1.bf16.msra.mxu0 %v6474_v56  ;;  %v6533_v56 = vld [vmem:[#allocation17 + $0x15c] ss:$28 sps:$4 sm:$0xff]  }
 0x2c6   : > { %3092 = vmatprep.subr.bf16.mxu0 %v6482_v6  ;;  %v6531_v6 = vld [vmem:[#allocation17 + $0x158] ss:$28 sps:$4 sm:$0xff]  }
 0x2c9   : > { %3093 = vmatpush1.bf16.msra.mxu0 %v6480_v8  ;;  %v6539_v8 = vld [vmem:[#allocation17 + $0x194] ss:$28 sps:$4 sm:$0xff]  }
 0x2ca   : > { %v2357_v10 = vpop.f32.mrb[12].mxu1 }
 0x2cb   : > { %v2358_v11 = vadd.f32 %v2357_v10, %v7767_v48  ;;  %v2359_v12 = vpop.f32.mrb[13].mxu1  ;;  %v7794_v48 = vsub.s32 3, %v7777_v47 }
 0x2cc   : > { %v2360_v24 = vadd.f32 %v2359_v12, %v7769_v51  ;;  %v2361_v13 = vpop.f32.mrb[14].mxu1  ;;  %v2500_v51 = vrot.slane %v2487_v50, %v7791_v30 }
 0x2cd   : > { %v2362_v14 = vpop.f32.mrb[15].mxu1  ;;  %v2504_v32 = vrot.slane %v2487_v50, %v7794_v48 }
 0x2eb   : > { %v2398_v17 = vpop.f32.mrb[12].mxu0 }
 0x2ec   : > { %v2399_v18 = vadd.f32 %v2398_v17, %v2358_v11  ;;  %v2400_v19 = vpop.f32.mrb[13].mxu0 }
 0x2ed   : > { %v2401_v20 = vadd.f32 %v2400_v19, %v2360_v24  ;;  %v2402_v21 = vpop.f32.mrb[14].mxu0  ;;  %v6491_v19 = vld [vmem:[#allocation14 + $0x6c] ss:$16 sps:$4 sm:$0xff]  }
 0x2ee   : > { %v2403_v22 = vpop.f32.mrb[15].mxu0  ;;  %v6489_v21 = vld [vmem:[#allocation14 + $0x68] ss:$16 sps:$4 sm:$0xff]  }
 0x2ef   : > { %v6494_v22 = vld [vmem:[#allocation17 + $0x4] ss:$28 sps:$4 sm:$0xff]  }
 0x30a   : > { %v2439_v23 = vpop.f32.mrb[16].mxu1 }
 0x30b   : > { %v2440_v25 = vadd.f32 %v2439_v23, %v2399_v18  ;;  %v2441_v26 = vpop.f32.mrb[17].mxu1  ;;  %v6488_v18 = vld [vmem:[#allocation14 + $0x64] ss:$16 sps:$4 sm:$0xff]   ;;  %v6497_v23 = vld [vmem:[#allocation17 + $0xc] ss:$28 sps:$4 sm:$0xff]  }
 0x30c   : > { %v2442_v27 = vadd.f32 %v2441_v26, %v2401_v20  ;;  %v2443_v28 = vpop.f32.mrb[18].mxu1  ;;  %v6486_v20 = vld [vmem:[#allocation14 + $0x60] ss:$16 sps:$4 sm:$0xff]   ;;  %3094 = vmatprep.subr.bf16.mxu0 %v6488_v18 }
 0x30d   : > { %v2444_v29 = vpop.f32.mrb[19].mxu1  ;;  %3095 = vmatpush1.bf16.msra.mxu0 %v6486_v20  ;;  %v6557_v18 = vld [vmem:[#allocation17 + $0x23c] ss:$28 sps:$4 sm:$0xff]  }
 0x30e   : > { %4649 = vmatprep.subr.bf16.mxu0 %v6494_v22  ;;  %v6555_v20 = vld [vmem:[#allocation17 + $0x238] ss:$28 sps:$4 sm:$0xff]  }
 0x30f   : > { %v6563_v22 = vld [vmem:[#allocation17 + $0x274] ss:$28 sps:$4 sm:$0xff]  }
 0x32a   : > { %v2480_v31 = vpop.f32.mrb[20].mxu1 }
 0x32b   : > { %v2481_v33 = vadd.f32 %v2480_v31, %v2440_v25  ;;  %v2482_v34 = vpop.f32.mrb[21].mxu1 }
 0x32c   : > { %v2483_v35 = vadd.f32 %v2482_v34, %v2442_v27  ;;  %v2484_v36 = vpop.f32.mrb[22].mxu1  ;;  %v670_v34 = vld [vmem:[%s7706_s9] sm:$0xff]  ;;  %s5058_s9 = sshll.u32 %s7825_s26, 4  ;;  %s7899_s9 = int_to_ptr.vmem [resolvable:$true] %s5058_s9 }
 0x32d   : > { %v2511_v37 = vadd.f32 %v2500_v51, %v2481_v33  ;;  %v2485_v38 = vpop.f32.mrb[23].mxu1  ;;  %s7130_s3 = scalar_lea.vmem %s7899_s9, 128  ;;  %p7137_p10 = scmp.lt.s32.totalorder %s7899_s9, %s7135_s24 }
 0x32e   : > { %v2512_v39 = vadd.f32 %v2504_v32, %v2483_v35  ;;  %v6492_v38 = vld [vmem:[#allocation17] ss:$28 sps:$4 sm:$0xff]   ;;  %p7131_p8 = scmp.ne.s32.totalorder %s7899_s9, %s7130_s3  ;;  %p7138_p1 = scmp.lt.s32.totalorder %s7136_s1, %s7130_s3 }
 0x32f   : > { %v2515_v40 = vmax.f32 %v2511_v37, 0.0 }
 0x330   : > { %v2516_v41 = vmax.f32 %v2512_v39, 0.0  ;;  %v6495_v39 = vld [vmem:[#allocation17 + $0x8] ss:$28 sps:$4 sm:$0xff]   ;;  %p7132_p7 = pnand %p7131_p8, %p8074_p4  ;;  %p7139_p6 = por %p7138_p1, %p7137_p10 }
 0x331   : > { %v2519_v43 = vpack.c.bf16 %v2515_v40, %v2515_v40 }
 0x332   : > { %v2520_v57 = vpack.c.bf16 %v2516_v41, %v2516_v41  ;;  %v6500_v41 = vld [vmem:[#allocation17 + $0x3c] ss:$28 sps:$4 sm:$0xff]   ;;  %p7133_p12 = pneg %p7132_p7 }
 0x334   : > { %2856 = vmatprep.mubr.bf16.mxu1 %v2520_v57  ;;  %v6503_v57 = vld [vmem:[#allocation17 + $0x44] ss:$28 sps:$4 sm:$0xff]   ;;  %p7140_p13 = pnand %p7139_p6, %p7133_p12 }
 0x335   : > { %2857 = vmatmul.mubr.bf16.vlgmr.msra.gmra.mrb[24].mxu1 %v2519_v43  ;;  %v6498_v43 = vld [vmem:[#allocation17 + $0x38] ss:$28 sps:$4 sm:$0xff]  }
 0x336   : > { %2995 = vmatprep.mubr.bf16.mxu1 %v7266_v0  ;;  %2964 = vmatpush1.bf16.msra.mxu1 %v2917_v61  ;;  %v6516_v61 = vld [vmem:[#allocation17 + $0xe0] ss:$28 sps:$4 sm:$0xff]  }
 0x337   : > { %3129 = vmatprep.subr.bf16.mxu1 %v6473_v63  ;;  %v6524_v63 = vld [vmem:[#allocation17 + $0x11c] ss:$28 sps:$4 sm:$0xff]  }
 0x33d   : > { %5575 = vmatmul.mubr.msk.bf16.vlgmr.msra.gmra.mrb[28].mxu1 %vm915_vm1, %v6843_v4  ;;  %v6530_v4 = vld [vmem:[#allocation17 + $0x154] ss:$28 sps:$4 sm:$0xff]  }
 0x33e   : > { %3130 = vmatpush1.bf16.msra.mxu1 %v6471_v1  ;;  %3161 = vmatprep.mubr.bf16.mxu1 %v7266_v0  ;;  %v6527_v1 = vld [vmem:[#allocation17 + $0x124] ss:$28 sps:$4 sm:$0xff]  }
 0x33f   : > { %3131 = vmatprep.subr.bf16.mxu1 %v6479_v3  ;;  %v6525_v3 = vld [vmem:[#allocation17 + $0x120] ss:$28 sps:$4 sm:$0xff]  }
 0x342   : > { %3132 = vmatpush1.bf16.msra.mxu1 %v6477_v5  ;;  %v6528_v5 = vld [vmem:[#allocation17 + $0x150] ss:$28 sps:$4 sm:$0xff]  }
 0x343   : > { %3133 = vmatprep.subr.bf16.mxu1 %v6485_v7  ;;  %v6536_v7 = vld [vmem:[#allocation17 + $0x18c] ss:$28 sps:$4 sm:$0xff]  }
 0x346   : > { %3134 = vmatpush1.bf16.msra.mxu1 %v6483_v16  ;;  %v6534_v16 = vld [vmem:[#allocation17 + $0x188] ss:$28 sps:$4 sm:$0xff]  }
 0x347   : > { %3135 = vmatprep.subr.bf16.mxu1 %v6491_v19  ;;  %v6552_v19 = vld [vmem:[#allocation17 + $0x230] ss:$28 sps:$4 sm:$0xff]  }
 0x34a   : > { %3136 = vmatpush1.bf16.msra.mxu1 %v6489_v21  ;;  %v6560_v21 = vld [vmem:[#allocation17 + $0x26c] ss:$28 sps:$4 sm:$0xff]  }
 0x34b   : > { %4731 = vmatprep.subr.bf16.mxu1 %v6497_v23  ;;  %v6558_v23 = vld [vmem:[#allocation17 + $0x268] ss:$28 sps:$4 sm:$0xff]  }
 0x38b   : > { %v5846_v15 = vpop.f32.mrb[16].mxu0 }
 0x38c   : > { %v5847_v44 = vpop.f32.mrb[17].mxu0 }
 0x38d   : > { %v5848_v45 = vadd.f32 %v5847_v44, %v5846_v15  ;;  %v5849_v46 = vpop.f32.mrb[18].mxu0  ;;  %v6501_v15 = vld [vmem:[#allocation17 + $0x40] ss:$28 sps:$4 sm:$0xff]   ;;  %v6506_v44 = vld [vmem:[#allocation17 + $0x74] ss:$28 sps:$4 sm:$0xff]  }
 0x38e   : > { %v5850_v50 = vpop.f32.mrb[19].mxu0  ;;  %v6504_v46 = vld [vmem:[#allocation17 + $0x70] ss:$28 sps:$4 sm:$0xff]  }
 0x38f   : > { %v2819_v11 = vadd.f32 %v5848_v45, %v5535_v9  ;;  %v6509_v45 = vld [vmem:[#allocation17 + $0x7c] ss:$28 sps:$4 sm:$0xff]   ;;  %v6537_v9 = vld [vmem:[#allocation17 + $0x190] ss:$28 sps:$4 sm:$0xff]  }
 0x390   : > { %v6507_v50 = vld [vmem:[#allocation17 + $0x78] ss:$28 sps:$4 sm:$0xff]  }
 0x393   : > { %v7828_v26 = vpop.f32.mrb[20].mxu0 }
 0x394   : > { %v7830_v27 = vpop.f32.mrb[21].mxu0 }
 0x395   : > { %v2960_v29 = vpop.f32.mrb[22].mxu0 }
 0x396   : > { %v2961_v31 = vpop.f32.mrb[23].mxu0  ;;  %v6566_v29 = vld [vmem:[#allocation17 + $0x2a4] ss:$28 sps:$4 sm:$0xff]  }
 0x397   : > { %v6569_v31 = vld [vmem:[#allocation17 + $0x2ac] ss:$28 sps:$4 sm:$0xff]  }
 0x408   : > { %v5868_v42 = vpop.f32.mrb[24].mxu1 }
 0x409   : > { %v5869_v10 = vpop.f32.mrb[25].mxu1 }
 0x40a   : > { %v5870_v12 = vadd.f32 %v5869_v10, %v5868_v42  ;;  %v5871_v24 = vpop.f32.mrb[26].mxu1  ;;  %v6542_v42 = vld [vmem:[#allocation17 + $0x1c4] ss:$28 sps:$4 sm:$0xff]   ;;  %v6545_v10 = vld [vmem:[#allocation17 + $0x1cc] ss:$28 sps:$4 sm:$0xff]  }
 0x40b   : > { %v5872_v13 = vpop.f32.mrb[27].mxu1  ;;  %v6548_v24 = vld [vmem:[#allocation17 + $0x1fc] ss:$28 sps:$4 sm:$0xff]  }
 0x40c   : > { %v2859_v0 = vadd.f32 %v5870_v12, %v2819_v11  ;;  %v6540_v11 = vld [vmem:[#allocation17 + $0x1c0] ss:$28 sps:$4 sm:$0xff]   ;;  %v6543_v12 = vld [vmem:[#allocation17 + $0x1c8] ss:$28 sps:$4 sm:$0xff]  }
 0x40d   : > { %v6551_v13 = vld [vmem:[#allocation17 + $0x204] ss:$28 sps:$4 sm:$0xff]  }
 0x40e   : > { %v2864_v14 = vmul.f32 0.5, %v2859_v0  ;;  %5024 = vst [vmem:[%s7825_s26] sm:$0xff] %v2859_v0 }
 0x410   : > { %v2865_v17 = vmul.f32 1.442695, %v2864_v14  ;;  %v7832_v28 = vpop.f32.mrb[28].mxu1  ;;  %v6549_v14 = vld [vmem:[#allocation17 + $0x200] ss:$28 sps:$4 sm:$0xff]  }
 0x411   : > { %v7834_v51 = vpop.f32.mrb[29].mxu1 }
 0x412   : > { %6812 = vpow2.f32 %v2865_v17  ;;  %v3001_v32 = vpop.f32.mrb[30].mxu1  ;;  %v6554_v17 = vld [vmem:[#allocation17 + $0x234] ss:$28 sps:$4 sm:$0xff]  }
 0x413   : > { %v3002_v33 = vpop.f32.mrb[31].mxu1  ;;  %v6564_v32 = vld [vmem:[#allocation17 + $0x2a0] ss:$28 sps:$4 sm:$0xff]  }
 0x414   : > { %v6567_v33 = vld [vmem:[#allocation17 + $0x2a8] ss:$28 sps:$4 sm:$0xff]  }
 0x41c   : > { %v6813_v25 = vpop.eup %6812 }
 0x41d   : > { %2868 = vrot.lane.b32.xlu0 %v6813_v25, %s7267_s21  ;;  %v6561_v25 = vld [vmem:[#allocation17 + $0x270] ss:$28 sps:$4 sm:$0xff]  }
 0x48f   : > { %v2869_v35 = vpop.permute.xlu0 %2868 }
 0x490   : > { %v2871_v36 = vmul.f32 %v2869_v35, %v670_v34  ;;  %v6572_v34 = vld [vmem:[#allocation17 + $0x2dc] ss:$28 sps:$4 sm:$0xff]   ;;  %v6575_v35 = vld [vmem:[#allocation17 + $0x2e4] ss:$28 sps:$4 sm:$0xff]  }
 0x492   : > { %v2872_v37 = vadd.f32 %v2871_v36, %v2859_v0  ;;  %v6546_v0 = vld [vmem:[#allocation17 + $0x1f8] ss:$28 sps:$4 sm:$0xff]  }
 0x493   : > { %v6570_v36 = vld [vmem:[#allocation17 + $0x2d8] ss:$28 sps:$4 sm:$0xff]  }
 0x494   : > { %v2873_v40 = vpack.c.bf16 %v2872_v37, %v2872_v37  ;;  %v6573_v37 = vld [vmem:[#allocation17 + $0x2e0] ss:$28 sps:$4 sm:$0xff]  }
 0x496   : > { %5592 = vmatmul.mubr.msk.bf16.vlgmr.msra.gmra.mrb[24].mxu0 %vm3084_vm2, %v2873_v40  ;;  %5593 = vmatmul.mubr.msk.bf16.vlgmr.msra.gmra.mrb[32].mxu1 %vm3084_vm2, %v2873_v40  ;;  %v6576_v40 = vld [vmem:[#allocation17 + $0x310] ss:$28 sps:$4 sm:$0xff]  }
 0x497   : > { %4650 = vmatpush1.bf16.msra.mxu0 %v6492_v38  ;;  %4732 = vmatpush1.bf16.msra.mxu1 %v6495_v39  ;;  %v6578_v38 = vld [vmem:[#allocation17 + $0x314] ss:$28 sps:$4 sm:$0xff]   ;;  %v6581_v39 = vld [vmem:[#allocation17 + $0x31c] ss:$28 sps:$4 sm:$0xff]  }
 0x498   : > { %4651 = vmatprep.subr.bf16.mxu0 %v6500_v41  ;;  %4733 = vmatprep.subr.bf16.mxu1 %v6503_v57  ;;  %v6579_v41 = vld [vmem:[#allocation17 + $0x318] ss:$28 sps:$4 sm:$0xff]   ;;  %v6584_v57 = vld [vmem:[#allocation17 + $0x34c] ss:$28 sps:$4 sm:$0xff]  }
 0x49b   : > { %4652 = vmatpush1.bf16.msra.mxu0 %v6498_v43  ;;  %4734 = vmatpush1.bf16.msra.mxu1 %v6501_v15  ;;  %v6587_v43 = vld [vmem:[#allocation17 + $0x354] ss:$28 sps:$4 sm:$0xff]   ;;  %v6582_v15 = vld [vmem:[#allocation17 + $0x348] ss:$28 sps:$4 sm:$0xff]  }
 0x49c   : > { %4653 = vmatprep.subr.bf16.mxu0 %v6506_v44  ;;  %4735 = vmatprep.subr.bf16.mxu1 %v6509_v45  ;;  %v6585_v44 = vld [vmem:[#allocation17 + $0x350] ss:$28 sps:$4 sm:$0xff]   ;;  %v6590_v45 = vld [vmem:[#allocation17 + $0x384] ss:$28 sps:$4 sm:$0xff]  }
 0x49f   : > { %4654 = vmatpush1.bf16.msra.mxu0 %v6504_v46  ;;  %4736 = vmatpush1.bf16.msra.mxu1 %v6507_v50  ;;  %v6593_v46 = vld [vmem:[#allocation17 + $0x38c] ss:$28 sps:$4 sm:$0xff]   ;;  %v3170_v50 = vld [vmem:[#allocation16] sm:$0xf] }
 0x4a0   : > { %4655 = vmatprep.subr.bf16.mxu0 %v6512_v53  ;;  %4737 = vmatprep.subr.bf16.mxu1 %v6515_v54  ;;  %v3175_v53 = vrot.slane %v3170_v50, %v7780_v49  ;;  %v3183_v54 = vrot.slane %v3170_v50, %v7791_v30 }
 0x4a3   : > { %4656 = vmatpush1.bf16.msra.mxu0 %v6510_v55  ;;  %4738 = vmatpush1.bf16.msra.mxu1 %v6513_v58 }
 0x4a4   : > { %4657 = vmatprep.subr.bf16.mxu0 %v6518_v59  ;;  %4739 = vmatprep.subr.bf16.mxu1 %v6521_v60  ;;  %v3179_v59 = vrot.slane %v3170_v50, %v7783_v52  ;;  %v3187_v60 = vrot.slane %v3170_v50, %v7794_v48  ;;  %v6636_v50 = vld [vmem:[#allocation17 + $0x540] ss:$28 sps:$4 sm:$0xff]  }
 0x4a7   : > { %4658 = vmatpush1.bf16.msra.mxu0 %v6516_v61  ;;  %4740 = vmatpush1.bf16.msra.mxu1 %v6519_v62 }
 0x4a8   : > { %4659 = vmatprep.subr.bf16.mxu0 %v6524_v63  ;;  %4741 = vmatprep.subr.bf16.mxu1 %v6527_v1 }
 0x4ab   : > { %4660 = vmatpush1.bf16.msra.mxu0 %v6522_v2  ;;  %4742 = vmatpush1.bf16.msra.mxu1 %v6525_v3 }
 0x4ac   : > { %4661 = vmatprep.subr.bf16.mxu0 %v6530_v4  ;;  %4743 = vmatprep.subr.bf16.mxu1 %v6533_v56 }
 0x4af   : > { %4662 = vmatpush1.bf16.msra.mxu0 %v6528_v5  ;;  %4744 = vmatpush1.bf16.msra.mxu1 %v6531_v6 }
 0x4b0   : > { %4663 = vmatprep.subr.bf16.mxu0 %v6536_v7  ;;  %4745 = vmatprep.subr.bf16.mxu1 %v6539_v8 }
 0x4b3   : > { %4664 = vmatpush1.bf16.msra.mxu0 %v6534_v16  ;;  %4746 = vmatpush1.bf16.msra.mxu1 %v6537_v9 }
 0x4b4   : > { %4665 = vmatprep.subr.bf16.mxu0 %v6542_v42  ;;  %4747 = vmatprep.subr.bf16.mxu1 %v6545_v10 }
 0x4b7   : > { %4666 = vmatpush1.bf16.msra.mxu0 %v6540_v11  ;;  %4748 = vmatpush1.bf16.msra.mxu1 %v6543_v12  ;;  %v6591_v12 = vld [vmem:[#allocation17 + $0x388] ss:$28 sps:$4 sm:$0xff]  }
 0x4b8   : > { %4667 = vmatprep.subr.bf16.mxu0 %v6548_v24  ;;  %4749 = vmatprep.subr.bf16.mxu1 %v6551_v13 }
 0x4bb   : > { %4668 = vmatpush1.bf16.msra.mxu0 %v6546_v0  ;;  %4750 = vmatpush1.bf16.msra.mxu1 %v6549_v14  ;;  %v6594_v0 = vld [vmem:[#allocation17 + $0x3b8] ss:$28 sps:$4 sm:$0xff]   ;;  %v6597_v14 = vld [vmem:[#allocation17 + $0x3c0] ss:$28 sps:$4 sm:$0xff]  }
 0x4bc   : > { %4669 = vmatprep.subr.bf16.mxu0 %v6554_v17  ;;  %4751 = vmatprep.subr.bf16.mxu1 %v6557_v18  ;;  %v6602_v17 = vld [vmem:[#allocation17 + $0x3f4] ss:$28 sps:$4 sm:$0xff]   ;;  %v6605_v18 = vld [vmem:[#allocation17 + $0x3fc] ss:$28 sps:$4 sm:$0xff]  }
 0x4bf   : > { %4670 = vmatpush1.bf16.msra.mxu0 %v6552_v19  ;;  %4752 = vmatpush1.bf16.msra.mxu1 %v6555_v20  ;;  %v6600_v19 = vld [vmem:[#allocation17 + $0x3f0] ss:$28 sps:$4 sm:$0xff]   ;;  %v6603_v20 = vld [vmem:[#allocation17 + $0x3f8] ss:$28 sps:$4 sm:$0xff]  }
 0x4c0   : > { %4671 = vmatprep.subr.bf16.mxu0 %v6560_v21  ;;  %4753 = vmatprep.subr.bf16.mxu1 %v6563_v22  ;;  %v6608_v21 = vld [vmem:[#allocation17 + $0x42c] ss:$28 sps:$4 sm:$0xff]   ;;  %v6611_v22 = vld [vmem:[#allocation17 + $0x434] ss:$28 sps:$4 sm:$0xff]  }
 0x4c3   : > { %4672 = vmatpush1.bf16.msra.mxu0 %v6558_v23  ;;  %4754 = vmatpush1.bf16.msra.mxu1 %v6561_v25  ;;  %v6606_v23 = vld [vmem:[#allocation17 + $0x428] ss:$28 sps:$4 sm:$0xff]   ;;  %v6609_v25 = vld [vmem:[#allocation17 + $0x430] ss:$28 sps:$4 sm:$0xff]  }
 0x4c4   : > { %4673 = vmatprep.subr.bf16.mxu0 %v6566_v29  ;;  %4755 = vmatprep.subr.bf16.mxu1 %v6569_v31  ;;  %v6614_v29 = vld [vmem:[#allocation17 + $0x464] ss:$28 sps:$4 sm:$0xff]   ;;  %v6617_v31 = vld [vmem:[#allocation17 + $0x46c] ss:$28 sps:$4 sm:$0xff]  }
 0x4c7   : > { %4674 = vmatpush1.bf16.msra.mxu0 %v6564_v32  ;;  %4756 = vmatpush1.bf16.msra.mxu1 %v6567_v33  ;;  %v6612_v32 = vld [vmem:[#allocation17 + $0x460] ss:$28 sps:$4 sm:$0xff]   ;;  %v6615_v33 = vld [vmem:[#allocation17 + $0x468] ss:$28 sps:$4 sm:$0xff]  }
 0x4c8   : > { %4675 = vmatprep.subr.bf16.mxu0 %v6572_v34  ;;  %4757 = vmatprep.subr.bf16.mxu1 %v6575_v35  ;;  %v6620_v34 = vld [vmem:[#allocation17 + $0x49c] ss:$28 sps:$4 sm:$0xff]   ;;  %v6623_v35 = vld [vmem:[#allocation17 + $0x4a4] ss:$28 sps:$4 sm:$0xff]  }
 0x4cb   : > { %4676 = vmatpush1.bf16.msra.mxu0 %v6570_v36  ;;  %4758 = vmatpush1.bf16.msra.mxu1 %v6573_v37  ;;  %v6618_v36 = vld [vmem:[#allocation17 + $0x498] ss:$28 sps:$4 sm:$0xff]   ;;  %v6621_v37 = vld [vmem:[#allocation17 + $0x4a0] ss:$28 sps:$4 sm:$0xff]  }
 0x4cc   : > { %4677 = vmatprep.subr.bf16.mxu0 %v6578_v38  ;;  %4759 = vmatprep.subr.bf16.mxu1 %v6581_v39  ;;  %v6626_v38 = vld [vmem:[#allocation17 + $0x4d4] ss:$28 sps:$4 sm:$0xff]   ;;  %v6629_v39 = vld [vmem:[#allocation17 + $0x4dc] ss:$28 sps:$4 sm:$0xff]  }
 0x4cf   : > { %4678 = vmatpush1.bf16.msra.mxu0 %v6576_v40  ;;  %4760 = vmatpush1.bf16.msra.mxu1 %v6579_v41  ;;  %v6624_v40 = vld [vmem:[#allocation17 + $0x4d0] ss:$28 sps:$4 sm:$0xff]   ;;  %v6627_v41 = vld [vmem:[#allocation17 + $0x4d8] ss:$28 sps:$4 sm:$0xff]  }
 0x4d0   : > { %4679 = vmatprep.subr.bf16.mxu0 %v6584_v57  ;;  %4761 = vmatprep.subr.bf16.mxu1 %v6587_v43  ;;  %v6632_v57 = vld [vmem:[#allocation17 + $0x50c] ss:$28 sps:$4 sm:$0xff]   ;;  %v6635_v43 = vld [vmem:[#allocation17 + $0x514] ss:$28 sps:$4 sm:$0xff]  }
 0x4d3   : > { %4680 = vmatpush1.bf16.msra.mxu0 %v6582_v15  ;;  %4762 = vmatpush1.bf16.msra.mxu1 %v6585_v44  ;;  %v6630_v15 = vld [vmem:[#allocation17 + $0x508] ss:$28 sps:$4 sm:$0xff]   ;;  %v6633_v44 = vld [vmem:[#allocation17 + $0x510] ss:$28 sps:$4 sm:$0xff]  }
 0x4d4   : > { %4690 = vmatprep.subr.bf16.mxu0 %v6590_v45  ;;  %4772 = vmatprep.subr.bf16.mxu1 %v6593_v46  ;;  %v6638_v45 = vld [vmem:[#allocation17 + $0x544] ss:$28 sps:$4 sm:$0xff]   ;;  %v6641_v46 = vld [vmem:[#allocation17 + $0x54c] ss:$28 sps:$4 sm:$0xff]  }
 0x569   : > { %v3122_v55 = vpop.f32.mrb[24].mxu0  ;;  %v3163_v58 = vpop.f32.mrb[32].mxu1 }
 0x56a   : > { %v3123_v61 = vadd.f32 %v3122_v55, %v7828_v26  ;;  %v3164_v62 = vadd.f32 %v3163_v58, %v7832_v28  ;;  %v3124_v63 = vpop.f32.mrb[25].mxu0  ;;  %v3165_v1 = vpop.f32.mrb[33].mxu1  ;;  %v6588_v28 = vld [vmem:[#allocation17 + $0x380] ss:$28 sps:$4 sm:$0xff]   ;;  %v6642_v58 = vld [vmem:[#allocation17 + $0x578] ss:$28 sps:$4 sm:$0xff]  }
 0x56b   : > { %v3125_v2 = vadd.f32 %v3124_v63, %v7830_v27  ;;  %v3166_v3 = vadd.f32 %v3165_v1, %v7834_v51  ;;  %v3126_v4 = vpop.f32.mrb[26].mxu0  ;;  %v3167_v56 = vpop.f32.mrb[34].mxu1  ;;  %v6596_v27 = vld [vmem:[#allocation17 + $0x3bc] ss:$28 sps:$4 sm:$0xff]   ;;  %v6599_v51 = vld [vmem:[#allocation17 + $0x3c4] ss:$28 sps:$4 sm:$0xff]  }
 0x56c   : > { %v3192_v5 = vadd.f32 %v3175_v53, %v3123_v61  ;;  %v7845_v6 = vadd.f32 %v3183_v54, %v3164_v62  ;;  %v3127_v7 = vpop.f32.mrb[27].mxu0  ;;  %v3168_v8 = vpop.f32.mrb[35].mxu1  ;;  %v6639_v53 = vld [vmem:[#allocation17 + $0x548] ss:$28 sps:$4 sm:$0xff]   ;;  %v6644_v54 = vld [vmem:[#allocation17 + $0x57c] ss:$28 sps:$4 sm:$0xff]  }
 0x56d   : > { %v3193_v16 = vadd.f32 %v3179_v59, %v3125_v2  ;;  %v3195_v9 = vadd.f32 %v3187_v60, %v3166_v3  ;;  %v6647_v55 = vld [vmem:[#allocation17 + $0x584] ss:$28 sps:$4 sm:$0xff]   ;;  %v6650_v60 = vld [vmem:[#allocation17 + $0x5b4] ss:$28 sps:$4 sm:$0xff]   ;;  %v6653_v61 = vld [vmem:[#allocation17 + $0x5bc] ss:$28 sps:$4 sm:$0xff]  }
 0x56e   : > { %v3196_v42 = vmax.f32 %v3192_v5, 0.0  ;;  %v6645_v59 = vld [vmem:[#allocation17 + $0x580] ss:$28 sps:$4 sm:$0xff]   ;;  %v6648_v62 = vld [vmem:[#allocation17 + $0x5b0] ss:$28 sps:$4 sm:$0xff]  }
 0x56f   : > { %v3197_v10 = vmax.f32 %v3193_v16, 0.0  ;;  %v3199_v26 = vmax.f32 %v3195_v9, 0.0  ;;  %v6651_v63 = vld [vmem:[#allocation17 + $0x5b8] ss:$28 sps:$4 sm:$0xff]   ;;  %v6656_v1 = vld [vmem:[#allocation17 + $0x5ec] ss:$28 sps:$4 sm:$0xff]  }
 0x570   : > { %v7849_v24 = vpack.c.bf16 %v3196_v42, %v3196_v42  ;;  %v6659_v2 = vld [vmem:[#allocation17 + $0x5f4] ss:$28 sps:$4 sm:$0xff]   ;;  %v6654_v3 = vld [vmem:[#allocation17 + $0x5e8] ss:$28 sps:$4 sm:$0xff]   ;;  %v6660_v7 = vld [vmem:[#allocation17 + $0x620] ss:$28 sps:$4 sm:$0xff]  }
 0x571   : > { %v7847_v11 = vpack.c.bf16 %v3197_v10, %v3197_v10  ;;  %v7853_v13 = vpack.c.bf16 %v3199_v26, %v3199_v26  ;;  %v6657_v4 = vld [vmem:[#allocation17 + $0x5f0] ss:$28 sps:$4 sm:$0xff]   ;;  %v6662_v56 = vld [vmem:[#allocation17 + $0x624] ss:$28 sps:$4 sm:$0xff]   ;;  %v6668_v16 = vld [vmem:[#allocation17 + $0x65c] ss:$28 sps:$4 sm:$0xff]  }
 0x572   : > { %v6665_v5 = vld [vmem:[#allocation17 + $0x62c] ss:$28 sps:$4 sm:$0xff]   ;;  %v6671_v9 = vld [vmem:[#allocation17 + $0x664] ss:$28 sps:$4 sm:$0xff]   ;;  %v6666_v42 = vld [vmem:[#allocation17 + $0x658] ss:$28 sps:$4 sm:$0xff]  }
 0x573   : > { %4681 = vmatprep.mubr.bf16.mxu0 %v7847_v11  ;;  %4763 = vmatprep.mubr.bf16.mxu1 %v7847_v11  ;;  %v6663_v8 = vld [vmem:[#allocation17 + $0x628] ss:$28 sps:$4 sm:$0xff]   ;;  %v6669_v10 = vld [vmem:[#allocation17 + $0x660] ss:$28 sps:$4 sm:$0xff]   ;;  %v6674_v26 = vld [vmem:[#allocation17 + $0x694] ss:$28 sps:$4 sm:$0xff]  }
 0x574   : > { %4682 = vmatmul.mubr.bf16.vlgmr.msra.gmra.mrb[28].mxu0 %v7849_v24  ;;  %4764 = vmatmul.mubr.bf16.vlgmr.msra.gmra.mrb[36].mxu1 %v7849_v24 }
 0x575   : > { %4691 = vmatpush1.bf16.msra.mxu0 %v6588_v28  ;;  %4773 = vmatpush1.bf16.msra.mxu1 %v6591_v12  ;;  %v6677_v28 = vld [vmem:[#allocation17 + $0x69c] ss:$28 sps:$4 sm:$0xff]   ;;  %v6672_v12 = vld [vmem:[#allocation17 + $0x690] ss:$28 sps:$4 sm:$0xff]  }
 0x576   : > { %4722 = vmatprep.mubr.bf16.mxu0 %v7853_v13  ;;  %4804 = vmatprep.mubr.bf16.mxu1 %v7853_v13 }
 0x577   : > { %4692 = vmatprep.subr.bf16.mxu0 %v6596_v27  ;;  %4774 = vmatprep.subr.bf16.mxu1 %v6599_v51  ;;  %v6675_v27 = vld [vmem:[#allocation17 + $0x698] ss:$28 sps:$4 sm:$0xff]   ;;  %v6680_v51 = vld [vmem:[#allocation17 + $0x6cc] ss:$28 sps:$4 sm:$0xff]  }
 0x579   : > { %4693 = vmatpush1.bf16.msra.mxu0 %v6594_v0  ;;  %4775 = vmatpush1.bf16.msra.mxu1 %v6597_v14  ;;  %v6683_v0 = vld [vmem:[#allocation17 + $0x6d4] ss:$28 sps:$4 sm:$0xff]   ;;  %v6678_v14 = vld [vmem:[#allocation17 + $0x6c8] ss:$28 sps:$4 sm:$0xff]  }
 0x57a   : > { %4694 = vmatprep.subr.bf16.mxu0 %v6602_v17  ;;  %4776 = vmatprep.subr.bf16.mxu1 %v6605_v18  ;;  %v6681_v17 = vld [vmem:[#allocation17 + $0x6d0] ss:$28 sps:$4 sm:$0xff]   ;;  %v3198_v18 = vmax.f32 %v7845_v6, 0.0  ;;  %v6689_v6 = vld [vmem:[#allocation17 + $0x48] ss:$28 sps:$4 sm:$0xff]  }
 0x57d   : > { %4695 = vmatpush1.bf16.msra.mxu0 %v6600_v19  ;;  %4777 = vmatpush1.bf16.msra.mxu1 %v6603_v20  ;;  %v6686_v19 = vld [vmem:[#allocation17 + $0x14] ss:$28 sps:$4 sm:$0xff]  }
 0x57e   : > { %4696 = vmatprep.subr.bf16.mxu0 %v6608_v21  ;;  %4778 = vmatprep.subr.bf16.mxu1 %v6611_v22  ;;  %v6687_v20 = vld [vmem:[#allocation17 + $0x1d8] ss:$28 sps:$4 sm:$0xff]   ;;  %v6684_v21 = vld [vmem:[#allocation17 + $0x10] ss:$28 sps:$4 sm:$0xff]   ;;  %v7860_v22 = vpack.c.bf16 %v3198_v18, %v3198_v18 }
 0x57f   : > { %v6753_v18 = vld [vmem:[#allocation17 + $0x4b0] ss:$28 sps:$4 sm:$0xff]  }
 0x581   : > { %4697 = vmatpush1.bf16.msra.mxu0 %v6606_v23  ;;  %4779 = vmatpush1.bf16.msra.mxu1 %v6609_v25  ;;  %v6688_v23 = vld [vmem:[#allocation17 + $0x18] ss:$28 sps:$4 sm:$0xff]   ;;  %v6691_v25 = vld [vmem:[#allocation17 + $0x4c] ss:$28 sps:$4 sm:$0xff]  }
 0x582   : > { %4698 = vmatprep.subr.bf16.mxu0 %v6614_v29  ;;  %4780 = vmatprep.subr.bf16.mxu1 %v6617_v31  ;;  %v6692_v29 = vld [vmem:[#allocation17 + $0x210] ss:$28 sps:$4 sm:$0xff]  }
 0x583   : > { %v6693_v31 = vld [vmem:[#allocation17 + $0x50] ss:$28 sps:$4 sm:$0xff]  }
 0x585   : > { %4699 = vmatpush1.bf16.msra.mxu0 %v6612_v32  ;;  %4781 = vmatpush1.bf16.msra.mxu1 %v6615_v33  ;;  %v6696_v32 = vld [vmem:[#allocation17 + $0x84] ss:$28 sps:$4 sm:$0xff]  }
 0x586   : > { %4700 = vmatprep.subr.bf16.mxu0 %v6620_v34  ;;  %4782 = vmatprep.subr.bf16.mxu1 %v6623_v35  ;;  %v6697_v33 = vld [vmem:[#allocation17 + $0x248] ss:$28 sps:$4 sm:$0xff]   ;;  %v6694_v34 = vld [vmem:[#allocation17 + $0x80] ss:$28 sps:$4 sm:$0xff]  }
 0x587   : > { %v6698_v35 = vld [vmem:[#allocation17 + $0x88] ss:$28 sps:$4 sm:$0xff]  }
 0x589   : > { %4701 = vmatpush1.bf16.msra.mxu0 %v6618_v36  ;;  %4783 = vmatpush1.bf16.msra.mxu1 %v6621_v37  ;;  %v6701_v36 = vld [vmem:[#allocation17 + $0xbc] ss:$28 sps:$4 sm:$0xff]  }
 0x58a   : > { %4702 = vmatprep.subr.bf16.mxu0 %v6626_v38  ;;  %4784 = vmatprep.subr.bf16.mxu1 %v6629_v39  ;;  %v6702_v37 = vld [vmem:[#allocation17 + $0x280] ss:$28 sps:$4 sm:$0xff]   ;;  %v6699_v38 = vld [vmem:[#allocation17 + $0xb8] ss:$28 sps:$4 sm:$0xff]  }
 0x58b   : > { %v6703_v39 = vld [vmem:[#allocation17 + $0xc0] ss:$28 sps:$4 sm:$0xff]  }
 0x58d   : > { %4703 = vmatpush1.bf16.msra.mxu0 %v6624_v40  ;;  %4785 = vmatpush1.bf16.msra.mxu1 %v6627_v41  ;;  %v6706_v40 = vld [vmem:[#allocation17 + $0xf4] ss:$28 sps:$4 sm:$0xff]  }
 0x58e   : > { %4704 = vmatprep.subr.bf16.mxu0 %v6632_v57  ;;  %4786 = vmatprep.subr.bf16.mxu1 %v6635_v43  ;;  %v6704_v41 = vld [vmem:[#allocation17 + $0xf0] ss:$28 sps:$4 sm:$0xff]   ;;  %v6708_v57 = vld [vmem:[#allocation17 + $0xf8] ss:$28 sps:$4 sm:$0xff]  }
 0x58f   : > { %v6711_v43 = vld [vmem:[#allocation17 + $0x12c] ss:$28 sps:$4 sm:$0xff]  }
 0x591   : > { %4705 = vmatpush1.bf16.msra.mxu0 %v6630_v15  ;;  %4787 = vmatpush1.bf16.msra.mxu1 %v6633_v44  ;;  %v6712_v15 = vld [vmem:[#allocation17 + $0x2f0] ss:$28 sps:$4 sm:$0xff]   ;;  %v6709_v44 = vld [vmem:[#allocation17 + $0x128] ss:$28 sps:$4 sm:$0xff]  }
 0x592   : > { %4706 = vmatprep.subr.bf16.mxu0 %v6638_v45  ;;  %4788 = vmatprep.subr.bf16.mxu1 %v6641_v46  ;;  %v6713_v45 = vld [vmem:[#allocation17 + $0x130] ss:$28 sps:$4 sm:$0xff]   ;;  %v6716_v46 = vld [vmem:[#allocation17 + $0x164] ss:$28 sps:$4 sm:$0xff]  }
 0x595   : > { %4707 = vmatpush1.bf16.msra.mxu0 %v6636_v50  ;;  %4789 = vmatpush1.bf16.msra.mxu1 %v6639_v53  ;;  %v6717_v50 = vld [vmem:[#allocation17 + $0x328] ss:$28 sps:$4 sm:$0xff]   ;;  %v6714_v53 = vld [vmem:[#allocation17 + $0x160] ss:$28 sps:$4 sm:$0xff]  }
 0x596   : > { %4708 = vmatprep.subr.bf16.mxu0 %v6644_v54  ;;  %4790 = vmatprep.subr.bf16.mxu1 %v6647_v55  ;;  %v6718_v54 = vld [vmem:[#allocation17 + $0x168] ss:$28 sps:$4 sm:$0xff]   ;;  %v6721_v55 = vld [vmem:[#allocation17 + $0x19c] ss:$28 sps:$4 sm:$0xff]  }
 0x599   : > { %4709 = vmatpush1.bf16.msra.mxu0 %v6642_v58  ;;  %4791 = vmatpush1.bf16.msra.mxu1 %v6645_v59  ;;  %v6722_v58 = vld [vmem:[#allocation17 + $0x360] ss:$28 sps:$4 sm:$0xff]   ;;  %v6719_v59 = vld [vmem:[#allocation17 + $0x198] ss:$28 sps:$4 sm:$0xff]  }
 0x59a   : > { %4710 = vmatprep.subr.bf16.mxu0 %v6650_v60  ;;  %4792 = vmatprep.subr.bf16.mxu1 %v6653_v61  ;;  %v6723_v60 = vld [vmem:[#allocation17 + $0x1a0] ss:$28 sps:$4 sm:$0xff]   ;;  %v6726_v61 = vld [vmem:[#allocation17 + $0x1d4] ss:$28 sps:$4 sm:$0xff]  }
 0x59d   : > { %4711 = vmatpush1.bf16.msra.mxu0 %v6648_v62  ;;  %4793 = vmatpush1.bf16.msra.mxu1 %v6651_v63  ;;  %v6727_v62 = vld [vmem:[#allocation17 + $0x558] ss:$28 sps:$4 sm:$0xff]   ;;  %v6724_v63 = vld [vmem:[#allocation17 + $0x1d0] ss:$28 sps:$4 sm:$0xff]  }
 0x59e   : > { %4712 = vmatprep.subr.bf16.mxu0 %v6656_v1  ;;  %4794 = vmatprep.subr.bf16.mxu1 %v6659_v2  ;;  %v6728_v1 = vld [vmem:[#allocation17 + $0x398] ss:$28 sps:$4 sm:$0xff]   ;;  %v6731_v2 = vld [vmem:[#allocation17 + $0x20c] ss:$28 sps:$4 sm:$0xff]  }
 0x5a1   : > { %4713 = vmatpush1.bf16.msra.mxu0 %v6654_v3  ;;  %4795 = vmatpush1.bf16.msra.mxu1 %v6657_v4  ;;  %v6732_v3 = vld [vmem:[#allocation17 + $0x590] ss:$28 sps:$4 sm:$0xff]   ;;  %v6729_v4 = vld [vmem:[#allocation17 + $0x208] ss:$28 sps:$4 sm:$0xff]  }
 0x5a2   : > { %4714 = vmatprep.subr.bf16.mxu0 %v6662_v56  ;;  %4796 = vmatprep.subr.bf16.mxu1 %v6665_v5  ;;  %v6733_v56 = vld [vmem:[#allocation17 + $0x3d0] ss:$28 sps:$4 sm:$0xff]   ;;  %v6736_v5 = vld [vmem:[#allocation17 + $0x244] ss:$28 sps:$4 sm:$0xff]  }
 0x5a5   : > { %4715 = vmatpush1.bf16.msra.mxu0 %v6660_v7  ;;  %4797 = vmatpush1.bf16.msra.mxu1 %v6663_v8  ;;  %v6737_v7 = vld [vmem:[#allocation17 + $0x5c8] ss:$28 sps:$4 sm:$0xff]   ;;  %v6734_v8 = vld [vmem:[#allocation17 + $0x240] ss:$28 sps:$4 sm:$0xff]  }
 0x5a6   : > { %4716 = vmatprep.subr.bf16.mxu0 %v6668_v16  ;;  %4798 = vmatprep.subr.bf16.mxu1 %v6671_v9  ;;  %v6738_v16 = vld [vmem:[#allocation17 + $0x408] ss:$28 sps:$4 sm:$0xff]   ;;  %v6741_v9 = vld [vmem:[#allocation17 + $0x27c] ss:$28 sps:$4 sm:$0xff]  }
 0x5a9   : > { %4717 = vmatpush1.bf16.msra.mxu0 %v6666_v42  ;;  %4799 = vmatpush1.bf16.msra.mxu1 %v6669_v10  ;;  %v6742_v42 = vld [vmem:[#allocation17 + $0x600] ss:$28 sps:$4 sm:$0xff]   ;;  %v6739_v10 = vld [vmem:[#allocation17 + $0x278] ss:$28 sps:$4 sm:$0xff]  }
 0x5aa   : > { %4718 = vmatprep.subr.bf16.mxu0 %v6674_v26  ;;  %4800 = vmatprep.subr.bf16.mxu1 %v6677_v28  ;;  %v6743_v26 = vld [vmem:[#allocation17 + $0x440] ss:$28 sps:$4 sm:$0xff]   ;;  %v6746_v28 = vld [vmem:[#allocation17 + $0x2b4] ss:$28 sps:$4 sm:$0xff]  }
 0x5ad   : > { %4719 = vmatpush1.bf16.msra.mxu0 %v6672_v12  ;;  %4801 = vmatpush1.bf16.msra.mxu1 %v6675_v27  ;;  %v6747_v12 = vld [vmem:[#allocation17 + $0x638] ss:$28 sps:$4 sm:$0xff]   ;;  %v6744_v27 = vld [vmem:[#allocation17 + $0x2b0] ss:$28 sps:$4 sm:$0xff]  }
 0x5ae   : > { %4720 = vmatprep.subr.bf16.mxu0 %v6680_v51  ;;  %4802 = vmatprep.subr.bf16.mxu1 %v6683_v0  ;;  %v6748_v51 = vld [vmem:[#allocation17 + $0x478] ss:$28 sps:$4 sm:$0xff]   ;;  %v6751_v0 = vld [vmem:[#allocation17 + $0x2ec] ss:$28 sps:$4 sm:$0xff]  }
 0x5b1   : > { %4721 = vmatpush1.bf16.msra.mxu0 %v6678_v14  ;;  %4803 = vmatpush1.bf16.msra.mxu1 %v6681_v17  ;;  %v6752_v14 = vld [vmem:[#allocation17 + $0x670] ss:$28 sps:$4 sm:$0xff]   ;;  %v6749_v17 = vld [vmem:[#allocation17 + $0x2e8] ss:$28 sps:$4 sm:$0xff]  }
 0x5b2   : > { %4813 = vmatprep.subr.bf16.mxu0 %v6686_v19  ;;  %5874 = vmatprep.subr.bf16.mxu1 %v6687_v20  ;;  %v6756_v19 = vld [vmem:[#allocation17 + $0x324] ss:$28 sps:$4 sm:$0xff]  }
 0x5b3   : > { %v6757_v20 = vld [vmem:[#allocation17 + $0x6a8] ss:$28 sps:$4 sm:$0xff]  }
 0x5b4   : > { %4723 = vmatmul.mubr.bf16.vlgmr.msra.gmra.mrb[28].mxu0 %v7860_v22  ;;  %4805 = vmatmul.mubr.bf16.vlgmr.msra.gmra.mrb[36].mxu1 %v7860_v22 }
 0x5b5   : > { %4814 = vmatpush1.bf16.msra.mxu0 %v6684_v21  ;;  %4845 = vmatprep.mubr.bf16.mxu0 %v7847_v11  ;;  %v6754_v21 = vld [vmem:[#allocation17 + $0x320] ss:$28 sps:$4 sm:$0xff]  }
 0x5b6   : > { %5875 = vmatpush3.bf16.msra.mxu1 %v6688_v23  ;;  %4927 = vmatprep.mubr.bf16.mxu1 %v7847_v11  ;;  %v6707_v11 = vld [vmem:[#allocation17 + $0x2b8] ss:$28 sps:$4 sm:$0xff]   ;;  %v6758_v23 = vld [vmem:[#allocation17 + $0x4e8] ss:$28 sps:$4 sm:$0xff]  }
 0x5b7   : > { %4815 = vmatprep.subr.bf16.mxu0 %v6691_v25  ;;  %5876 = vmatprep.subr.bf16.mxu1 %v6692_v29  ;;  %v6761_v25 = vld [vmem:[#allocation17 + $0x35c] ss:$28 sps:$4 sm:$0xff]  }
 0x5b8   : > { %v6762_v29 = vld [vmem:[#allocation17 + $0x6e0] ss:$28 sps:$4 sm:$0xff]  }
 0x5b9   : > { %4816 = vmatpush1.bf16.msra.mxu0 %v6689_v6  ;;  %v6759_v6 = vld [vmem:[#allocation17 + $0x358] ss:$28 sps:$4 sm:$0xff]  }
 0x5ba   : > { %5877 = vmatpush3.bf16.msra.mxu1 %v6693_v31  ;;  %4817 = vmatprep.subr.bf16.mxu0 %v6696_v32  ;;  %v6763_v31 = vld [vmem:[#allocation17 + $0x520] ss:$28 sps:$4 sm:$0xff]   ;;  %v6766_v32 = vld [vmem:[#allocation17 + $0x394] ss:$28 sps:$4 sm:$0xff]  }
 0x5bb   : > { %5878 = vmatprep.subr.bf16.mxu1 %v6697_v33  ;;  %v6764_v33 = vld [vmem:[#allocation17 + $0x390] ss:$28 sps:$4 sm:$0xff]  }
 0x5bd   : > { %4818 = vmatpush1.bf16.msra.mxu0 %v6694_v34  ;;  %v6769_v34 = vld [vmem:[#allocation17 + $0x3cc] ss:$28 sps:$4 sm:$0xff]  }
 0x5be   : > { %5879 = vmatpush3.bf16.msra.mxu1 %v6698_v35  ;;  %4819 = vmatprep.subr.bf16.mxu0 %v6701_v36  ;;  %v6767_v35 = vld [vmem:[#allocation17 + $0x3c8] ss:$28 sps:$4 sm:$0xff]  }
 0x5bf   : > { %5880 = vmatprep.subr.bf16.mxu1 %v6702_v37  ;;  %v6772_v36 = vld [vmem:[#allocation17 + $0x404] ss:$28 sps:$4 sm:$0xff]  }
 0x5c0   : > { %v6770_v37 = vld [vmem:[#allocation17 + $0x400] ss:$28 sps:$4 sm:$0xff]  }
 0x5c1   : > { %4820 = vmatpush1.bf16.msra.mxu0 %v6699_v38  ;;  %v6775_v38 = vld [vmem:[#allocation17 + $0x43c] ss:$28 sps:$4 sm:$0xff]  }
 0x5c2   : > { %5881 = vmatpush3.bf16.msra.mxu1 %v6703_v39  ;;  %4821 = vmatprep.subr.bf16.mxu0 %v6706_v40  ;;  %v6773_v39 = vld [vmem:[#allocation17 + $0x438] ss:$28 sps:$4 sm:$0xff]  }
 0x5c3   : > { %5882 = vmatprep.subr.bf16.mxu1 %v6707_v11  ;;  %v6778_v40 = vld [vmem:[#allocation17 + $0x474] ss:$28 sps:$4 sm:$0xff]  }
 0x5c4   : > { %v6776_v11 = vld [vmem:[#allocation17 + $0x470] ss:$28 sps:$4 sm:$0xff]  }
 0x5c5   : > { %4822 = vmatpush1.bf16.msra.mxu0 %v6704_v41  ;;  %v6779_v41 = vld [vmem:[#allocation17 + $0x4a8] ss:$28 sps:$4 sm:$0xff]  }
 0x5c6   : > { %5883 = vmatpush3.bf16.msra.mxu1 %v6708_v57  ;;  %4823 = vmatprep.subr.bf16.mxu0 %v6711_v43  ;;  %v6784_v57 = vld [vmem:[#allocation17 + $0x4e4] ss:$28 sps:$4 sm:$0xff]   ;;  %v6787_v43 = vld [vmem:[#allocation17 + $0x51c] ss:$28 sps:$4 sm:$0xff]  }
 0x5c7   : > { %5884 = vmatprep.subr.bf16.mxu1 %v6712_v15  ;;  %v6785_v15 = vld [vmem:[#allocation17 + $0x518] ss:$28 sps:$4 sm:$0xff]  }
 0x5c9   : > { %4824 = vmatpush1.bf16.msra.mxu0 %v6709_v44  ;;  %v6790_v44 = vld [vmem:[#allocation17 + $0x554] ss:$28 sps:$4 sm:$0xff]  }
 0x5ca   : > { %5885 = vmatpush3.bf16.msra.mxu1 %v6713_v45  ;;  %4825 = vmatprep.subr.bf16.mxu0 %v6716_v46  ;;  %v6788_v45 = vld [vmem:[#allocation17 + $0x550] ss:$28 sps:$4 sm:$0xff]  }
 0x5cb   : > { %5886 = vmatprep.subr.bf16.mxu1 %v6717_v50  ;;  %v6793_v46 = vld [vmem:[#allocation17 + $0x58c] ss:$28 sps:$4 sm:$0xff]  }
 0x5cc   : > { %v6791_v50 = vld [vmem:[#allocation17 + $0x588] ss:$28 sps:$4 sm:$0xff]  }
 0x5cd   : > { %4826 = vmatpush1.bf16.msra.mxu0 %v6714_v53  ;;  %v6796_v53 = vld [vmem:[#allocation17 + $0x5c4] ss:$28 sps:$4 sm:$0xff]  }
 0x5ce   : > { %5887 = vmatpush3.bf16.msra.mxu1 %v6718_v54  ;;  %4827 = vmatprep.subr.bf16.mxu0 %v6721_v55  ;;  %v6794_v54 = vld [vmem:[#allocation17 + $0x5c0] ss:$28 sps:$4 sm:$0xff]  }
 0x5cf   : > { %5888 = vmatprep.subr.bf16.mxu1 %v6722_v58  ;;  %v6799_v55 = vld [vmem:[#allocation17 + $0x5fc] ss:$28 sps:$4 sm:$0xff]  }
 0x5d0   : > { %v6797_v58 = vld [vmem:[#allocation17 + $0x5f8] ss:$28 sps:$4 sm:$0xff]  }
 0x5d1   : > { %4828 = vmatpush1.bf16.msra.mxu0 %v6719_v59  ;;  %v6802_v59 = vld [vmem:[#allocation17 + $0x634] ss:$28 sps:$4 sm:$0xff]  }
 0x5d2   : > { %5889 = vmatpush3.bf16.msra.mxu1 %v6723_v60  ;;  %4829 = vmatprep.subr.bf16.mxu0 %v6726_v61  ;;  %v6800_v60 = vld [vmem:[#allocation17 + $0x630] ss:$28 sps:$4 sm:$0xff]  }
 0x5d3   : > { %5896 = vmatprep.subr.bf16.mxu1 %v6727_v62  ;;  %v6805_v61 = vld [vmem:[#allocation17 + $0x66c] ss:$28 sps:$4 sm:$0xff]  }
 0x5d4   : > { %v6803_v62 = vld [vmem:[#allocation17 + $0x668] ss:$28 sps:$4 sm:$0xff]  }
 0x5d5   : > { %4928 = vmatmul.mubr.bf16.vlgmr.msra.gmra.mrb[40].mxu1 %v7849_v24  ;;  %4830 = vmatpush1.bf16.msra.mxu0 %v6724_v63  ;;  %v6808_v63 = vld [vmem:[#allocation17 + $0x6a4] ss:$28 sps:$4 sm:$0xff]  }
 0x5d6   : > { %5897 = vmatpush3.bf16.msra.mxu1 %v6728_v1  ;;  %4967 = vmatprep.mubr.bf16.mxu1 %v7853_v13  ;;  %v6806_v1 = vld [vmem:[#allocation17 + $0x6a0] ss:$28 sps:$4 sm:$0xff]  }
 0x5d7   : > { %4831 = vmatprep.subr.bf16.mxu0 %v6731_v2  ;;  %5898 = vmatprep.subr.bf16.mxu1 %v6732_v3  ;;  %v6811_v2 = vld [vmem:[#allocation17 + $0x6dc] ss:$28 sps:$4 sm:$0xff]  }
 0x5d8   : > { %v6809_v3 = vld [vmem:[#allocation17 + $0x6d8] ss:$28 sps:$4 sm:$0xff]  }
 0x5d9   : > { %4832 = vmatpush1.bf16.msra.mxu0 %v6729_v4  ;;  %v7875_v4 = vld [vmem:[%s8071_s5] sm:$0xff] }
 0x5da   : > { %5899 = vmatpush3.bf16.msra.mxu1 %v6733_v56  ;;  %4833 = vmatprep.subr.bf16.mxu0 %v6736_v5  ;;  %v3465_v56 = vrot.slane %v7875_v4, %v7780_v49  ;;  %v3473_v5 = vrot.slane %v7875_v4, %v7791_v30 }
 0x5db   : > { %5900 = vmatprep.subr.bf16.mxu1 %v6737_v7  ;;  %v3469_v7 = vrot.slane %v7875_v4, %v7783_v52 }
 0x5dd   : > { %4834 = vmatpush1.bf16.msra.mxu0 %v6734_v8  ;;  %v3477_v8 = vrot.slane %v7875_v4, %v7794_v48 }
 0x5de   : > { %5901 = vmatpush3.bf16.msra.mxu1 %v6738_v16  ;;  %4835 = vmatprep.subr.bf16.mxu0 %v6741_v9 }
 0x5df   : > { %5902 = vmatprep.subr.bf16.mxu1 %v6742_v42 }
 0x5e1   : > { %4836 = vmatpush1.bf16.msra.mxu0 %v6739_v10 }
 0x5e2   : > { %5903 = vmatpush3.bf16.msra.mxu1 %v6743_v26  ;;  %4837 = vmatprep.subr.bf16.mxu0 %v6746_v28 }
 0x5e3   : > { %5904 = vmatprep.subr.bf16.mxu1 %v6747_v12 }
 0x5e5   : > { %4838 = vmatpush1.bf16.msra.mxu0 %v6744_v27 }
 0x5e6   : > { %5905 = vmatpush3.bf16.msra.mxu1 %v6748_v51  ;;  %4839 = vmatprep.subr.bf16.mxu0 %v6751_v0 }
 0x5e7   : > { %5906 = vmatprep.subr.bf16.mxu1 %v6752_v14 }
 0x5e9   : > { %4840 = vmatpush1.bf16.msra.mxu0 %v6749_v17 }
 0x5ea   : > { %5907 = vmatpush3.bf16.msra.mxu1 %v6753_v18  ;;  %4841 = vmatprep.subr.bf16.mxu0 %v6756_v19 }
 0x5eb   : > { %5908 = vmatprep.subr.bf16.mxu1 %v6757_v20 }
 0x5ed   : > { %4842 = vmatpush1.bf16.msra.mxu0 %v6754_v21 }
 0x5ee   : > { %5909 = vmatpush3.bf16.msra.mxu1 %v6758_v23  ;;  %4843 = vmatprep.subr.bf16.mxu0 %v6761_v25 }
 0x5ef   : > { %5910 = vmatprep.subr.bf16.mxu1 %v6762_v29 }
 0x5f1   : > { %4844 = vmatpush1.bf16.msra.mxu0 %v6759_v6 }
 0x5f2   : > { %5911 = vmatpush3.bf16.msra.mxu1 %v6763_v31  ;;  %4854 = vmatprep.subr.bf16.mxu0 %v6766_v32 }
 0x5f4   : > { %4846 = vmatmul.mubr.bf16.vlgmr.msra.gmra.mrb[32].mxu0 %v7849_v24  ;;  %v6781_v24 = vld [vmem:[#allocation17 + $0x4ac] ss:$28 sps:$4 sm:$0xff]  }
 0x5f5   : > { %4968 = vmatmul.mubr.bf16.vlgmr.msra.gmra.mrb[44].mxu1 %v7860_v22  ;;  %4855 = vmatpush1.bf16.msra.mxu0 %v6764_v33 }
 0x5f6   : > { %4886 = vmatprep.mubr.bf16.mxu0 %v7853_v13  ;;  %4856 = vmatprep.subr.bf16.mxu0 %v6769_v34  ;;  %v6782_v13 = vld [vmem:[#allocation17 + $0x4e0] ss:$28 sps:$4 sm:$0xff]  }
 0x5f9   : > { %4857 = vmatpush1.bf16.msra.mxu0 %v6767_v35 }
 0x5fa   : > { %4858 = vmatprep.subr.bf16.mxu0 %v6772_v36 }
 0x5fd   : > { %4859 = vmatpush1.bf16.msra.mxu0 %v6770_v37 }
 0x5fe   : > { %4860 = vmatprep.subr.bf16.mxu0 %v6775_v38 }
 0x601   : > { %4861 = vmatpush1.bf16.msra.mxu0 %v6773_v39 }
 0x602   : > { %4862 = vmatprep.subr.bf16.mxu0 %v6778_v40 }
 0x605   : > { %4863 = vmatpush1.bf16.msra.mxu0 %v6776_v11 }
 0x606   : > { %4864 = vmatprep.subr.bf16.mxu0 %v6781_v24 }
 0x609   : > { %4865 = vmatpush1.bf16.msra.mxu0 %v6779_v41 }
 0x60a   : > { %4866 = vmatprep.subr.bf16.mxu0 %v6784_v57 }
 0x60d   : > { %4867 = vmatpush1.bf16.msra.mxu0 %v6782_v13 }
 0x60e   : > { %4868 = vmatprep.subr.bf16.mxu0 %v6787_v43 }
 0x611   : > { %4869 = vmatpush1.bf16.msra.mxu0 %v6785_v15 }
 0x612   : > { %4870 = vmatprep.subr.bf16.mxu0 %v6790_v44 }
 0x615   : > { %4871 = vmatpush1.bf16.msra.mxu0 %v6788_v45 }
 0x616   : > { %4872 = vmatprep.subr.bf16.mxu0 %v6793_v46 }
 0x619   : > { %4873 = vmatpush1.bf16.msra.mxu0 %v6791_v50 }
 0x61a   : > { %4874 = vmatprep.subr.bf16.mxu0 %v6796_v53 }
 0x61d   : > { %4875 = vmatpush1.bf16.msra.mxu0 %v6794_v54 }
 0x61e   : > { %4876 = vmatprep.subr.bf16.mxu0 %v6799_v55 }
 0x621   : > { %4877 = vmatpush1.bf16.msra.mxu0 %v6797_v58 }
 0x622   : > { %4878 = vmatprep.subr.bf16.mxu0 %v6802_v59 }
 0x625   : > { %4879 = vmatpush1.bf16.msra.mxu0 %v6800_v60 }
 0x626   : > { %4880 = vmatprep.subr.bf16.mxu0 %v6805_v61 }
 0x629   : > { %4881 = vmatpush1.bf16.msra.mxu0 %v6803_v62 }
 0x62a   : > { %4882 = vmatprep.subr.bf16.mxu0 %v6808_v63 }
 0x62d   : > { %4883 = vmatpush1.bf16.msra.mxu0 %v6806_v1 }
 0x62e   : > { %4884 = vmatprep.subr.bf16.mxu0 %v6811_v2 }
 0x631   : > { %4885 = vmatpush1.bf16.msra.mxu0 %v6809_v3 }
 0x634   : > { %4887 = vmatmul.mubr.bf16.vlgmr.msra.gmra.mrb[32].mxu0 %v7860_v22 }
 0x687   : > { %v4724_v16 = vpop.f32.mrb[28].mxu0  ;;  %v4806_v9 = vpop.f32.mrb[36].mxu1 }
 0x688   : > { %v5918_v22 = vadd.f32 %v4724_v16, %v3465_v56  ;;  %v5920_v42 = vadd.f32 %v4806_v9, %v3473_v5  ;;  %v4726_v10 = vpop.f32.mrb[29].mxu0  ;;  %v4808_v26 = vpop.f32.mrb[37].mxu1 }
 0x689   : > { %v5919_v28 = vadd.f32 %v4726_v10, %v3469_v7  ;;  %v5921_v12 = vadd.f32 %v4808_v26, %v3477_v8  ;;  %v4728_v27 = vpop.f32.mrb[30].mxu0  ;;  %v4810_v51 = vpop.f32.mrb[38].mxu1 }
 0x68a   : > { %v5818_v49 = vmul.f32 -1.442695, %v5918_v22  ;;  %v5820_v0 = vmul.f32 -1.442695, %v5920_v42  ;;  %v4729_v14 = vpop.f32.mrb[31].mxu0  ;;  %v4811_v30 = vpop.f32.mrb[39].mxu1 }
 0x68b   : > { %v5819_v17 = vmul.f32 -1.442695, %v5919_v28  ;;  %v5821_v18 = vmul.f32 -1.442695, %v5921_v12 }
 0x68c   : > { %6814 = vpow2.f32 %v5818_v49 }
 0x68d   : > { %6816 = vpow2.f32 %v5820_v0 }
 0x68e   : > { %6818 = vpow2.f32 %v5819_v17 }
 0x68f   : > { %6820 = vpow2.f32 %v5821_v18 }
 0x696   : > { %v6815_v52 = vpop.eup %6814 }
 0x697   : > { %v6817_v48 = vpop.eup %6816  ;;  %v4996_v19 = vadd.f32 1.0, %v6815_v52 }
 0x698   : > { %v6819_v20 = vpop.eup %6818  ;;  %v4998_v21 = vadd.f32 1.0, %v6817_v48 }
 0x699   : > { %v6821_v23 = vpop.eup %6820  ;;  %6822 = vrcp.f32 %v4996_v19  ;;  %v4997_v25 = vadd.f32 1.0, %v6819_v20 }
 0x69a   : > { %6824 = vrcp.f32 %v4998_v21  ;;  %v4999_v29 = vadd.f32 1.0, %v6821_v23 }
 0x69b   : > { %6826 = vrcp.f32 %v4997_v25 }
 0x69c   : > { %6828 = vrcp.f32 %v4999_v29 }
 0x6a3   : > { %v6823_v6 = vpop.eup %6822 }
 0x6a4   : > { %v6825_v31 = vpop.eup %6824  ;;  %5017 = vst [vmem:[%s7886_s20] sm:$0xff] %v6823_v6 }
 0x6a5   : > { %v6827_v32 = vpop.eup %6826  ;;  %5019 = vst [vmem:[%s7886_s20 + $0x10] sm:$0xff] %v6825_v31 }
 0x6a6   : > { %v6829_v33 = vpop.eup %6828  ;;  %5018 = vst [vmem:[%s7886_s20 + $0x8] sm:$0xff] %v6827_v32 }
 0x6a7   : > { %5020 = vst [vmem:[%s7886_s20 + $0x18] sm:$0xff] %v6829_v33 }
 0x6a8   : > { %v5890_v34 = vpop.f32.mrb[40].mxu1 }
 0x6a9   : > { %v5891_v35 = vpop.f32.mrb[41].mxu1 }
 0x6aa   : > { %v5892_v36 = vadd.f32 %v5891_v35, %v5890_v34  ;;  %v5893_v37 = vpop.f32.mrb[42].mxu1 }
 0x6ab   : > { %7143 = shalt.err (!%p7140_p13)
}
 0x6ac   : > { %s7144_s15 = scalar_lea.hbm %s7897_s27, 128  ;;  %s7148_s21 = scalar_lea.hbm %s8073_s22, 256 }
 0x6ad   : > { %p7145_p5 = scmp.ne.s32.totalorder %s7897_s27, %s7144_s15  ;;  %p7149_p3 = scmp.lt.u32.totalorder %s7897_s27, %s8073_s22 }
 0x6ae   : > { %p7150_p2 = scmp.lt.u32.totalorder %s7148_s21, %s7144_s15  ;;  %p7152_p8 = scmp.lt.u32.totalorder %s7144_s15, %s7897_s27 }
 0x6af   : > { %p7146_p9 = pnand %p7145_p5, %p8074_p4 }
 0x6b0   : > { %p7151_p0 = por %p7150_p2, %p7149_p3 }
 0x6b1   : > { %p7147_p11 = pneg %p7146_p9 }
 0x6b2   : > { %p7153_p7 = por %p7152_p8, %p7151_p0 }
 0x6b4   : > { %p7154_p12 = pnand %p7153_p7, %p7147_p11 }
 0x6b6   : > { %7157 = shalt.err (!%p7154_p12)
}
 0x6b7   : > { %5976 = dma.vmem_to_hbm [thread:$0]  (%p8074_p4), %s7899_s9, 128, %s7897_s27, %s5031_s14   ;;  %v5894_v38 = vpop.f32.mrb[43].mxu1  ;;  %v3488_v39 = vsub.s32 6, %v7777_v47  ;;  %v3480_v53 = vsub.s32 4, %v7777_v47  ;;  %v3484_v54 = vsub.s32 5, %v7777_v47 }
 0x6b8   : > { %s5940_s5 = smul.u32 896, %s7366_s19  ;;  %s5045_s18 = sshll.u32 %s7886_s20, 4  ;;  %s7937_s18 = int_to_ptr.vmem [resolvable:$true] %s5045_s18 }
 0x6b9   : > { %v3489_v40 = vrot.slane %v7875_v4, %v3488_v39  ;;  %v3481_v55 = vrot.slane %v7875_v4, %v3480_v53  ;;  %v3485_v58 = vrot.slane %v7875_v4, %v3484_v54  ;;  %s8075_s25 = sld [smem:[#allocation45_spill]]  ;;  %s5026_s27 = scalar_lea.sflag [#allocation4], %s7685_s28 }
 0x6ba   : > { %s7158_s14 = scalar_lea.vmem %s7937_s18, 896  ;;  %s7269_s19 = smov [#allocation19]  }
 0x6bb   : > { %v4930_v41 = vadd.f32 %v5892_v36, %v3489_v40  ;;  %p7159_p10 = scmp.ne.s32.totalorder %s7937_s18, %s7158_s14  ;;  %s7162_s3 = sshll.u32 %s7269_s19, 4  ;;  %s7163_s3 = int_to_ptr.vmem [resolvable:$false] %s7162_s3 }
 0x6bc   : > { %s7164_s12 = scalar_lea.vmem %s7163_s3, 1792  ;;  %p7165_p13 = scmp.lt.s32.totalorder %s7937_s18, %s7163_s3 }
 0x6bd   : > { %p7160_p1 = pnand %p7159_p10, %p8074_p4  ;;  %p7166_p5 = scmp.lt.s32.totalorder %s7164_s12, %s7158_s14 }
 0x6bf   : > { %s7935_s23 = scalar_lea.hbm %s8075_s25, %s5940_s5  ;;  %p7161_p6 = pneg %p7160_p1 }
 0x6c0   : > { %p7167_p9 = por %p7166_p5, %p7165_p13 }
 0x6c2   : > { %p7168_p11 = pnand %p7167_p9, %p7161_p6 }
 0x6c8   : > { %v5912_v11 = vpop.f32.mrb[44].mxu1 }
 0x6c9   : > { %v5913_v24 = vpop.f32.mrb[45].mxu1 }
 0x6ca   : > { %v5914_v57 = vadd.f32 %v5913_v24, %v5912_v11  ;;  %v5915_v13 = vpop.f32.mrb[46].mxu1 }
 0x6cb   : > { %v5916_v43 = vpop.f32.mrb[47].mxu1 }
 0x6cc   : > { %v4970_v15 = vadd.f32 %v5914_v57, %v4930_v41 }
 0x6ce   : > { %v5824_v44 = vmul.f32 -1.442695, %v4970_v15 }
 0x6d0   : > { %6830 = vpow2.f32 %v5824_v44 }
 0x6da   : > { %v6831_v45 = vpop.eup %6830 }
 0x6db   : > { %v5002_v46 = vadd.f32 1.0, %v6831_v45 }
 0x6dd   : > { %6832 = vrcp.f32 %v5002_v46 }
 0x6e7   : > { %v6833_v50 = vpop.eup %6832 }
 0x6e8   : > { %5023 = vst [vmem:[%s7886_s20 + $0x30] sm:$0xff] %v6833_v50 }
 0x707   : > { %v4888_v59 = vpop.f32.mrb[32].mxu0 }
 0x708   : > { %v5922_v60 = vadd.f32 %v4888_v59, %v3481_v55  ;;  %v4890_v61 = vpop.f32.mrb[33].mxu0 }
 0x709   : > { %v5923_v62 = vadd.f32 %v4890_v61, %v3485_v58  ;;  %v4892_v63 = vpop.f32.mrb[34].mxu0 }
 0x70a   : > { %v5822_v1 = vmul.f32 -1.442695, %v5922_v60  ;;  %v4893_v2 = vpop.f32.mrb[35].mxu0 }
 0x70b   : > { %v5823_v3 = vmul.f32 -1.442695, %v5923_v62 }
 0x70c   : > { %6834 = vpow2.f32 %v5822_v1 }
 0x70d   : > { %6836 = vpow2.f32 %v5823_v3 }
 0x716   : > { %v6835_v47 = vpop.eup %6834 }
 0x717   : > { %v6837_v56 = vpop.eup %6836  ;;  %v5000_v5 = vadd.f32 1.0, %v6835_v47 }
 0x718   : > { %v5001_v4 = vadd.f32 1.0, %v6837_v56 }
 0x719   : > { %6838 = vrcp.f32 %v5000_v5 }
 0x71a   : > { %6840 = vrcp.f32 %v5001_v4 }
 0x723   : > { %v6839_v7 = vpop.eup %6838 }
 0x724   : > { %v6841_v8 = vpop.eup %6840  ;;  %5021 = vst [vmem:[%s7886_s20 + $0x20] sm:$0xff] %v6839_v7 }
 0x725   : > { %5022 = vst [vmem:[%s7886_s20 + $0x28] sm:$0xff] %v6841_v8 }
 0x726   : > { %7171 = shalt.err (!%p7168_p11)
}
 0x727   : > { %s7172_s28 = scalar_lea.hbm %s7935_s23, 896  ;;  %s7176_s1 = scalar_lea.hbm %s8075_s25, 1792 }
 0x728   : > { %p7173_p3 = scmp.ne.s32.totalorder %s7935_s23, %s7172_s28  ;;  %p7177_p8 = scmp.lt.u32.totalorder %s7935_s23, %s8075_s25 }
 0x729   : > { %p7178_p7 = scmp.lt.u32.totalorder %s7176_s1, %s7172_s28  ;;  %p7180_p10 = scmp.lt.u32.totalorder %s7172_s28, %s7935_s23 }
 0x72a   : > { %p7174_p2 = pnand %p7173_p3, %p8074_p4 }
 0x72b   : > { %p7179_p12 = por %p7178_p7, %p7177_p8 }
 0x72c   : > { %p7175_p0 = pneg %p7174_p2 }
 0x72d   : > { %p7181_p1 = por %p7180_p10, %p7179_p12 }
 0x72f   : > { %p7182_p6 = pnand %p7181_p1, %p7175_p0 }
 0x731   : > { %7185 = shalt.err (!%p7182_p6)
}
 0x732   : > { %5975 = dma.vmem_to_hbm [thread:$0]  (%p8074_p4), %s7937_s18, 896, %s7935_s23, %s5026_s27  }
 0x733 PF: > { %s8076_s26 = sld [smem:[#allocation30_spill]]  ;;  %s8077_s21 = sld [smem:[#allocation36_spill]] }
 0x734   : > { %p8079_p5 = scmp.ge.s32.totalorder %s7248_s16, 2 }
 0x739   : > { %s5070_s4 = sand.u32 1, %s8076_s26   ;;  %p8078_p13 = scmp.ne.s32.totalorder %s8077_s21, 0 }
 0x73a   : > { %s5071_s7 = scalar_lea.sflag [#allocation4], %s5070_s4 }
 0x73b   : > { %p6012_p9 = pnand %p8079_p5, %p8078_p13 }
 0x73d   : > { %7227 = dma.done.wait (!%p6012_p9), %s5071_s7, 896  }
 0x73e   : > { %7229 = vsyncadd (!%p6012_p9), %s5071_s7, 4294966400  ;;  %s5080_s5 = scalar_lea.sflag [#allocation21], %s5070_s4 }
 0x73f   : > { %7231 = dma.done.wait (!%p6012_p9), %s5080_s5, 128  }
 0x740   : > { %7233 = vsyncadd (!%p6012_p9), %s5080_s5, 4294967168  ;;  %s8080_s16 = sld [smem:[#allocation33_spill]]  ;;  %s8081_s17 = sld [smem:[#allocation31_spill]] }
 0x741   : > { %s8082_s15 = sld [smem:[#allocation34_spill]]  ;;  %s8083_s29 = smov %s7240_s30 }
 0x746   : > { %p38_p4 = scmp.ge.s32.totalorder %s8080_s16, 4   ;;  %s8084_s30 = smov %s8081_s17 }
 0x748   :  { %40 = sbr.rel (!%p38_p4) target bundleno = 24 (0x18), region = 186 }
 0x74f   :  { %5085 = vsyncpa [#allocation3], 1 }
 0x750   :  { %5087 = vsyncpa [#allocation3 + $0x1], 1 }
 0x751   :  { %5088 = vsyncpa [#allocation6], 1 }
 0x752   :  { %5090 = vsyncpa [#allocation6 + $0x1], 1 }
 0x753   :  { %5091 = vsyncpa [#allocation9], 1 }
 0x754   :  { %5092 = vsyncpa [#allocation12], 1 }
 0x755   :  { %5093 = vsyncpa [#allocation15], 1 }
 0x756   :  { %5094 = vsyncpa [#allocation18], 1 }
 0x757   :  { %5095 = vsyncpa [#allocation4], 1 }
 0x758   :  { %5097 = vsyncpa [#allocation4 + $0x1], 1 }
 0x759   :  { %5098 = vsyncpa [#allocation21], 1 }
 0x75a   :  { %5100 = vsyncpa [#allocation21 + $0x1], 1 }

</bundles_post_ra>
